<compile_context>
chip_gen: v5e
topology: v5e:2x2
jax: 0.10.0
libtpu: 0.0.40
codegen_flags: <defaults>
</compile_context>

<pallas_src>
import functools

import jax
import jax.numpy as jnp
from jax import lax
from jax.experimental import pallas as pl
from jax.experimental.pallas import tpu as pltpu

EPS = 1e-5
LANE = 128
VMEM_LIMIT = 48 * 1024 * 1024  # above 16/32 MiB scoped defaults, below v7x 64 MiB


def _round_up(x, m):
    return (x + m - 1) // m * m


def _pick_tile_h(H, W):
    # Largest divisor of H such that a band produces <= ~4096 output rows.
    target = max(1, 4096 // max(W, 1))
    best = 1
    for d in range(1, H + 1):
        if H % d == 0 and d <= target:
            best = d
    return best


def _conv_stats_kernel(xb_ref, w_ref, y_ref, stats_ref, *, th, W, Cin):
    """Pass 1: 3x3 conv (as 9 shifted matmuls) + per-channel sum / sum-of-sq."""
    @pl.when(pl.program_id(0) == 0)
    def _():
        stats_ref[...] = jnp.zeros_like(stats_ref)

    x = xb_ref[0]                               # (th+2, W+2, Cin) bf16
    coutp = w_ref.shape[-1]
    acc = jnp.zeros((th * W, coutp), jnp.float32)
    for k in range(9):                          # static unroll over the 3x3 taps
        kh, kw = k // 3, k % 3
        xs = x[kh:kh + th, kw:kw + W, :].reshape(th * W, Cin)
        acc = acc + jnp.dot(xs, w_ref[k], preferred_element_type=jnp.float32)

    y_ref[0] = acc
    stats_ref[0:1, :] = stats_ref[0:1, :] + jnp.sum(acc, axis=0, keepdims=True)
    stats_ref[1:2, :] = stats_ref[1:2, :] + jnp.sum(acc * acc, axis=0, keepdims=True)


def _bn_relu_kernel(y_ref, s_ref, t_ref, o_ref):
    """Pass 2: fused BatchNorm scale/shift + ReLU."""
    o_ref[...] = jnp.maximum(y_ref[...] * s_ref[...] + t_ref[...], 0.0)


def conv_bn_relu(x_nhwc, w_hwio, gamma, beta):
    N, H, W, Cin = x_nhwc.shape
    Cout = w_hwio.shape[-1]
    Coutp = _round_up(Cout, LANE)

    th = _pick_tile_h(H, W)
    nb = H // th
    bandH, Wp = th + 2, W + 2
    rows = th * W
    M = N * H * W

    # One-time spatial "same" zero padding; bf16 activations for the MXU.
    xp = jnp.pad(x_nhwc, ((0, 0), (1, 1), (1, 1), (0, 0))).astype(jnp.bfloat16)
    if nb == 1:
        bands = xp                                          # (N, H+2, W+2, Cin)
    else:
        # Overlapping row bands with a 2-row halo (small duplication, not 9x).
        bands = jnp.concatenate(
            [xp[:, i * th:i * th + bandH][:, None] for i in range(nb)], axis=1)
    bands = bands.reshape(N * nb, bandH, Wp, Cin)

    # Weights: (3,3,Cin,Cout) -> (9, Cin, Coutp), zero-padded out channels, bf16.
    w9 = jnp.pad(w_hwio.reshape(9, Cin, Cout),
                 ((0, 0), (0, 0), (0, Coutp - Cout))).astype(jnp.bfloat16)

    kernel1 = functools.partial(_conv_stats_kernel, th=th, W=W, Cin=Cin)
    y, stats = pl.pallas_call(
        kernel1,
        grid=(N * nb,),
        in_specs=[
            pl.BlockSpec((1, bandH, Wp, Cin), lambda i: (i, 0, 0, 0)),
            pl.BlockSpec((9, Cin, Coutp), lambda i: (0, 0, 0)),  # resident weights
        ],
        out_specs=(
            pl.BlockSpec((1, rows, Coutp), lambda i: (i, 0, 0)),
            pl.BlockSpec((2, Coutp), lambda i: (0, 0)),          # stats accumulator
        ),
        out_shape=(
            jax.ShapeDtypeStruct((N * nb, rows, Coutp), jnp.float32),
            jax.ShapeDtypeStruct((2, Coutp), jnp.float32),
        ),
        compiler_params=pltpu.CompilerParams(
            dimension_semantics=("arbitrary",),
            vmem_limit_bytes=VMEM_LIMIT,
        ),
    )(bands, w9)

    # Per-channel BN scale/shift (tiny, plain JAX).  The conv bias cancels
    # under training-mode BN mean subtraction, so it never enters the math.
    count = jnp.float32(M)
    mean = stats[0] / count
    var = jnp.maximum(stats[1] / count - mean * mean, 0.0)
    gp = jnp.pad(gamma, (0, Coutp - Cout), constant_values=1.0).astype(jnp.float32)
    bp = jnp.pad(beta, (0, Coutp - Cout)).astype(jnp.float32)
    scale_row = gp * lax.rsqrt(var + EPS)
    shift_row = bp - mean * scale_row
    scale = scale_row.reshape(1, Coutp)
    shift = shift_row.reshape(1, Coutp)

    # Pass 2: normalize + ReLU over M-tiles (lane-dense Coutp output).
    y2 = y.reshape(M, Coutp)
    group = max(1, 2048 // rows)
    while (N * nb) % group:
        group -= 1
    tm = rows * group

    out = pl.pallas_call(
        _bn_relu_kernel,
        grid=(M // tm,),
        in_specs=[
            pl.BlockSpec((tm, Coutp), lambda i: (i, 0)),
            pl.BlockSpec((1, Coutp), lambda i: (0, 0)),
            pl.BlockSpec((1, Coutp), lambda i: (0, 0)),
        ],
        out_specs=pl.BlockSpec((tm, Coutp), lambda i: (i, 0)),
        out_shape=jax.ShapeDtypeStruct((M, Coutp), jnp.float32),
        compiler_params=pltpu.CompilerParams(
            dimension_semantics=("parallel",),
            vmem_limit_bytes=VMEM_LIMIT,
        ),
    )(y2, scale, shift)

    return out[:, :Cout].reshape(N, H, W, Cout)


def conv_block_forward(x_nchw, params):
    x = jnp.transpose(x_nchw, (0, 2, 3, 1))  # NCHW -> NHWC
    x = conv_bn_relu(x, params["w1"], params["g1"], params["be1"])
    x = conv_bn_relu(x, params["w2"], params["g2"], params["be2"])
    return jnp.transpose(x, (0, 3, 1, 2))    # NHWC -> NCHW


def init_params(key, ch_in, ch_out):
    k1, k2, k3, k4 = jax.random.split(key, 4)
    w1 = jax.random.normal(k1, (3, 3, ch_in, ch_out), jnp.float32) * 0.1
    b1 = jax.random.normal(k2, (ch_out,), jnp.float32) * 0.1
    w2 = jax.random.normal(k3, (3, 3, ch_out, ch_out), jnp.float32) * 0.1
    b2 = jax.random.normal(k4, (ch_out,), jnp.float32) * 0.1
    return {
        "w1": w1, "b1": b1, "g1": jnp.ones((ch_out,), jnp.float32), "be1": jnp.zeros((ch_out,), jnp.float32),
        "w2": w2, "b2": b2, "g2": jnp.ones((ch_out,), jnp.float32), "be2": jnp.zeros((ch_out,), jnp.float32),
    }


def _reference(x_nchw, params):
    # Pure-JAX reference (bf16 conv inputs like the kernel, fp32 accumulation,
    # training-mode BN with the conv bias included -- it cancels numerically).
    def stage(x, w, b, g, be):
        y = lax.conv_general_dilated(
            x.astype(jnp.bfloat16), w.astype(jnp.bfloat16),
            window_strides=(1, 1), padding="SAME",
            dimension_numbers=("NHWC", "HWIO", "NHWC"),
            preferred_element_type=jnp.float32,
        ) + b
        mean = jnp.mean(y, axis=(0, 1, 2), keepdims=True)
        var = jnp.mean(jnp.square(y - mean), axis=(0, 1, 2), keepdims=True)
        y = (y - mean) * lax.rsqrt(var + EPS) * g + be
        return jnp.maximum(y, 0.0)

    x = jnp.transpose(x_nchw, (0, 2, 3, 1))
    x = stage(x, params["w1"], params["b1"], params["g1"], params["be1"])
    x = stage(x, params["w2"], params["b2"], params["g2"], params["be2"])
    return jnp.transpose(x, (0, 3, 1, 2))


if __name__ == "__main__":
    key = jax.random.PRNGKey(0)
    k_x, k_p = jax.random.split(key)

    N, ch_in, H, W = 2, 4, 16, 16
    ch_out = 8

    x = jax.random.normal(k_x, (N, ch_in, H, W), jnp.float32)
    params = init_params(k_p, ch_in, ch_out)

    out = jax.jit(conv_block_forward)(x, params)
    out = jax.block_until_ready(out)

    ref = _reference(x, params)
    assert out.shape == (N, ch_out, H, W)
    # bf16 conv inputs in both paths; tolerance covers accumulation-order and
    # stage-2 re-rounding differences while still catching real bugs.
    assert jnp.allclose(out, ref, atol=1e-2, rtol=1e-2), float(jnp.max(jnp.abs(out - ref)))

    print("KERNEL_OK")
</pallas_src>

<mosaic_0001>
module attributes {stable_mosaic.version = 11 : i64} {
  func.func @_conv_stats_kernel(%arg0: i32, %arg1: memref<1x18x18x4xbf16, #tpu.memory_space<vmem>>, %arg2: memref<9x4x128xbf16, #tpu.memory_space<vmem>>, %arg3: memref<1x256x128xf32, #tpu.memory_space<vmem>>, %arg4: memref<2x128xf32, #tpu.memory_space<vmem>>) attributes {dimension_semantics = [#tpu.dimension_semantics<arbitrary>], iteration_bounds = array<i64: 2>, scalar_prefetch = 0 : i64, scratch_operands = 0 : i64, tpu.core_type = #tpu.core_type<tc>, window_params = [{transform_indices = @transform_0, window_bounds = array<i64: 1, 18, 18, 4>}, {pipeline_mode = #tpu.pipeline_mode<synchronous>, transform_indices = @transform_1, window_bounds = array<i64: 9, 4, 128>}, {transform_indices = @transform_2, window_bounds = array<i64: 1, 256, 128>}, {pipeline_mode = #tpu.pipeline_mode<synchronous>, transform_indices = @transform_3, window_bounds = array<i64: 2, 128>}]} {
    %c0_i32 = arith.constant 0 : i32
    %0 = arith.cmpi eq, %arg0, %c0_i32 : i32
    %1 = arith.extui %0 : i1 to i32
    %c0_i32_0 = arith.constant 0 : i32
    %2 = arith.cmpi ne, %1, %c0_i32_0 : i32
    scf.if %2 {
      %cst_45 = arith.constant 0.000000e+00 : f32
      %74 = vector.broadcast %cst_45 : f32 to vector<2x128xf32>
      %c0_46 = arith.constant 0 : index
      %c0_47 = arith.constant 0 : index
      %75 = vector.load %arg4[%c0_46, %c0_47] : memref<2x128xf32, #tpu.memory_space<vmem>>, vector<2x128xf32>
      tpu.vector_store %arg4[%c0_46, %c0_47], %74 {strides = array<i32>} : memref<2x128xf32, #tpu.memory_space<vmem>>, vector<2x128xf32>,
    } else {
    }
    %c0 = arith.constant 0 : index
    %c0_1 = arith.constant 0 : index
    %c0_2 = arith.constant 0 : index
    %c0_3 = arith.constant 0 : index
    %3 = vector.load %arg1[%c0, %c0_1, %c0_2, %c0_3] : memref<1x18x18x4xbf16, #tpu.memory_space<vmem>>, vector<1x18x18x4xbf16>
    %4 = vector.shape_cast %3 : vector<1x18x18x4xbf16> to vector<18x18x4xbf16>
    %cst = arith.constant 0.000000e+00 : f32
    %5 = vector.broadcast %cst : f32 to vector<256x128xf32>
    %6 = vector.extract_strided_slice %4 {offsets = [0, 0, 0], sizes = [16, 16, 4], strides = [1, 1, 1]} : vector<18x18x4xbf16> to vector<16x16x4xbf16>
    %7 = vector.shape_cast %6 : vector<16x16x4xbf16> to vector<256x4xbf16>
    %c0_4 = arith.constant 0 : index
    %c0_5 = arith.constant 0 : index
    %c0_6 = arith.constant 0 : index
    %8 = vector.load %arg2[%c0_4, %c0_5, %c0_6] : memref<9x4x128xbf16, #tpu.memory_space<vmem>>, vector<1x4x128xbf16>
    %9 = vector.shape_cast %8 : vector<1x4x128xbf16> to vector<4x128xbf16>
    %cst_7 = arith.constant dense<0.000000e+00> : vector<256x128xf32>
    %10 = tpu.matmul %7, %9, %cst_7 {dimension_numbers = #tpu.dot_dimension_numbers<[1], [0], [0], [1], [0, 0, 1, 1], [], []>} : vector<256x4xbf16>, vector<4x128xbf16>, vector<256x128xf32> -> vector<256x128xf32>
    %11 = arith.addf %5, %10 : vector<256x128xf32>
    %12 = vector.extract_strided_slice %4 {offsets = [0, 1, 0], sizes = [16, 16, 4], strides = [1, 1, 1]} : vector<18x18x4xbf16> to vector<16x16x4xbf16>
    %13 = vector.shape_cast %12 : vector<16x16x4xbf16> to vector<256x4xbf16>
    %c1 = arith.constant 1 : index
    %c0_8 = arith.constant 0 : index
    %c0_9 = arith.constant 0 : index
    %14 = vector.load %arg2[%c1, %c0_8, %c0_9] : memref<9x4x128xbf16, #tpu.memory_space<vmem>>, vector<1x4x128xbf16>
    %15 = vector.shape_cast %14 : vector<1x4x128xbf16> to vector<4x128xbf16>
    %cst_10 = arith.constant dense<0.000000e+00> : vector<256x128xf32>
    %16 = tpu.matmul %13, %15, %cst_10 {dimension_numbers = #tpu.dot_dimension_numbers<[1], [0], [0], [1], [0, 0, 1, 1], [], []>} : vector<256x4xbf16>, vector<4x128xbf16>, vector<256x128xf32> -> vector<256x128xf32>
    %17 = arith.addf %11, %16 : vector<256x128xf32>
    %18 = vector.extract_strided_slice %4 {offsets = [0, 2, 0], sizes = [16, 16, 4], strides = [1, 1, 1]} : vector<18x18x4xbf16> to vector<16x16x4xbf16>
    %19 = vector.shape_cast %18 : vector<16x16x4xbf16> to vector<256x4xbf16>
    %c2 = arith.constant 2 : index
    %c0_11 = arith.constant 0 : index
    %c0_12 = arith.constant 0 : index
    %20 = vector.load %arg2[%c2, %c0_11, %c0_12] : memref<9x4x128xbf16, #tpu.memory_space<vmem>>, vector<1x4x128xbf16>
    %21 = vector.shape_cast %20 : vector<1x4x128xbf16> to vector<4x128xbf16>
    %cst_13 = arith.constant dense<0.000000e+00> : vector<256x128xf32>
    %22 = tpu.matmul %19, %21, %cst_13 {dimension_numbers = #tpu.dot_dimension_numbers<[1], [0], [0], [1], [0, 0, 1, 1], [], []>} : vector<256x4xbf16>, vector<4x128xbf16>, vector<256x128xf32> -> vector<256x128xf32>
    %23 = arith.addf %17, %22 : vector<256x128xf32>
    %24 = vector.extract_strided_slice %4 {offsets = [1, 0, 0], sizes = [16, 16, 4], strides = [1, 1, 1]} : vector<18x18x4xbf16> to vector<16x16x4xbf16>
    %25 = vector.shape_cast %24 : vector<16x16x4xbf16> to vector<256x4xbf16>
    %c3 = arith.constant 3 : index
    %c0_14 = arith.constant 0 : index
    %c0_15 = arith.constant 0 : index
    %26 = vector.load %arg2[%c3, %c0_14, %c0_15] : memref<9x4x128xbf16, #tpu.memory_space<vmem>>, vector<1x4x128xbf16>
    %27 = vector.shape_cast %26 : vector<1x4x128xbf16> to vector<4x128xbf16>
    %cst_16 = arith.constant dense<0.000000e+00> : vector<256x128xf32>
    %28 = tpu.matmul %25, %27, %cst_16 {dimension_numbers = #tpu.dot_dimension_numbers<[1], [0], [0], [1], [0, 0, 1, 1], [], []>} : vector<256x4xbf16>, vector<4x128xbf16>, vector<256x128xf32> -> vector<256x128xf32>
    %29 = arith.addf %23, %28 : vector<256x128xf32>
    %30 = vector.extract_strided_slice %4 {offsets = [1, 1, 0], sizes = [16, 16, 4], strides = [1, 1, 1]} : vector<18x18x4xbf16> to vector<16x16x4xbf16>
    %31 = vector.shape_cast %30 : vector<16x16x4xbf16> to vector<256x4xbf16>
    %c4 = arith.constant 4 : index
    %c0_17 = arith.constant 0 : index
    %c0_18 = arith.constant 0 : index
    %32 = vector.load %arg2[%c4, %c0_17, %c0_18] : memref<9x4x128xbf16, #tpu.memory_space<vmem>>, vector<1x4x128xbf16>
    %33 = vector.shape_cast %32 : vector<1x4x128xbf16> to vector<4x128xbf16>
    %cst_19 = arith.constant dense<0.000000e+00> : vector<256x128xf32>
    %34 = tpu.matmul %31, %33, %cst_19 {dimension_numbers = #tpu.dot_dimension_numbers<[1], [0], [0], [1], [0, 0, 1, 1], [], []>} : vector<256x4xbf16>, vector<4x128xbf16>, vector<256x128xf32> -> vector<256x128xf32>
    %35 = arith.addf %29, %34 : vector<256x128xf32>
    %36 = vector.extract_strided_slice %4 {offsets = [1, 2, 0], sizes = [16, 16, 4], strides = [1, 1, 1]} : vector<18x18x4xbf16> to vector<16x16x4xbf16>
    %37 = vector.shape_cast %36 : vector<16x16x4xbf16> to vector<256x4xbf16>
    %c5 = arith.constant 5 : index
    %c0_20 = arith.constant 0 : index
    %c0_21 = arith.constant 0 : index
    %38 = vector.load %arg2[%c5, %c0_20, %c0_21] : memref<9x4x128xbf16, #tpu.memory_space<vmem>>, vector<1x4x128xbf16>
    %39 = vector.shape_cast %38 : vector<1x4x128xbf16> to vector<4x128xbf16>
    %cst_22 = arith.constant dense<0.000000e+00> : vector<256x128xf32>
    %40 = tpu.matmul %37, %39, %cst_22 {dimension_numbers = #tpu.dot_dimension_numbers<[1], [0], [0], [1], [0, 0, 1, 1], [], []>} : vector<256x4xbf16>, vector<4x128xbf16>, vector<256x128xf32> -> vector<256x128xf32>
    %41 = arith.addf %35, %40 : vector<256x128xf32>
    %42 = vector.extract_strided_slice %4 {offsets = [2, 0, 0], sizes = [16, 16, 4], strides = [1, 1, 1]} : vector<18x18x4xbf16> to vector<16x16x4xbf16>
    %43 = vector.shape_cast %42 : vector<16x16x4xbf16> to vector<256x4xbf16>
    %c6 = arith.constant 6 : index
    %c0_23 = arith.constant 0 : index
    %c0_24 = arith.constant 0 : index
    %44 = vector.load %arg2[%c6, %c0_23, %c0_24] : memref<9x4x128xbf16, #tpu.memory_space<vmem>>, vector<1x4x128xbf16>
    %45 = vector.shape_cast %44 : vector<1x4x128xbf16> to vector<4x128xbf16>
    %cst_25 = arith.constant dense<0.000000e+00> : vector<256x128xf32>
    %46 = tpu.matmul %43, %45, %cst_25 {dimension_numbers = #tpu.dot_dimension_numbers<[1], [0], [0], [1], [0, 0, 1, 1], [], []>} : vector<256x4xbf16>, vector<4x128xbf16>, vector<256x128xf32> -> vector<256x128xf32>
    %47 = arith.addf %41, %46 : vector<256x128xf32>
    %48 = vector.extract_strided_slice %4 {offsets = [2, 1, 0], sizes = [16, 16, 4], strides = [1, 1, 1]} : vector<18x18x4xbf16> to vector<16x16x4xbf16>
    %49 = vector.shape_cast %48 : vector<16x16x4xbf16> to vector<256x4xbf16>
    %c7 = arith.constant 7 : index
    %c0_26 = arith.constant 0 : index
    %c0_27 = arith.constant 0 : index
    %50 = vector.load %arg2[%c7, %c0_26, %c0_27] : memref<9x4x128xbf16, #tpu.memory_space<vmem>>, vector<1x4x128xbf16>
    %51 = vector.shape_cast %50 : vector<1x4x128xbf16> to vector<4x128xbf16>
    %cst_28 = arith.constant dense<0.000000e+00> : vector<256x128xf32>
    %52 = tpu.matmul %49, %51, %cst_28 {dimension_numbers = #tpu.dot_dimension_numbers<[1], [0], [0], [1], [0, 0, 1, 1], [], []>} : vector<256x4xbf16>, vector<4x128xbf16>, vector<256x128xf32> -> vector<256x128xf32>
    %53 = arith.addf %47, %52 : vector<256x128xf32>
    %54 = vector.extract_strided_slice %4 {offsets = [2, 2, 0], sizes = [16, 16, 4], strides = [1, 1, 1]} : vector<18x18x4xbf16> to vector<16x16x4xbf16>
    %55 = vector.shape_cast %54 : vector<16x16x4xbf16> to vector<256x4xbf16>
    %c8 = arith.constant 8 : index
    %c0_29 = arith.constant 0 : index
    %c0_30 = arith.constant 0 : index
    %56 = vector.load %arg2[%c8, %c0_29, %c0_30] : memref<9x4x128xbf16, #tpu.memory_space<vmem>>, vector<1x4x128xbf16>
    %57 = vector.shape_cast %56 : vector<1x4x128xbf16> to vector<4x128xbf16>
    %cst_31 = arith.constant dense<0.000000e+00> : vector<256x128xf32>
    %58 = tpu.matmul %55, %57, %cst_31 {dimension_numbers = #tpu.dot_dimension_numbers<[1], [0], [0], [1], [0, 0, 1, 1], [], []>} : vector<256x4xbf16>, vector<4x128xbf16>, vector<256x128xf32> -> vector<256x128xf32>
    %59 = arith.addf %53, %58 : vector<256x128xf32>
    %c0_32 = arith.constant 0 : index
    %c0_33 = arith.constant 0 : index
    %c0_34 = arith.constant 0 : index
    %60 = vector.load %arg3[%c0_32, %c0_33, %c0_34] : memref<1x256x128xf32, #tpu.memory_space<vmem>>, vector<1x256x128xf32>
    %61 = vector.shape_cast %60 : vector<1x256x128xf32> to vector<256x128xf32>
    %62 = vector.shape_cast %59 : vector<256x128xf32> to vector<1x256x128xf32>
    tpu.vector_store %arg3[%c0_32, %c0_33, %c0_34], %62 {strides = array<i32>} : memref<1x256x128xf32, #tpu.memory_space<vmem>>, vector<1x256x128xf32>,
    %c0_35 = arith.constant 0 : index
    %c0_36 = arith.constant 0 : index
    %63 = vector.load %arg4[%c0_35, %c0_36] : memref<2x128xf32, #tpu.memory_space<vmem>>, vector<1x128xf32>
    %cst_37 = arith.constant dense<0.000000e+00> : vector<128xf32>
    %64 = vector.multi_reduction <add>, %59, %cst_37 [0] : vector<256x128xf32> to vector<128xf32>
    %65 = vector.shape_cast %64 : vector<128xf32> to vector<1x128xf32>
    %66 = arith.addf %63, %65 : vector<1x128xf32>
    %c0_38 = arith.constant 0 : index
    %c0_39 = arith.constant 0 : index
    %67 = vector.load %arg4[%c0_38, %c0_39] : memref<2x128xf32, #tpu.memory_space<vmem>>, vector<1x128xf32>
    tpu.vector_store %arg4[%c0_38, %c0_39], %66 {strides = array<i32>} : memref<2x128xf32, #tpu.memory_space<vmem>>, vector<1x128xf32>,
    %c1_40 = arith.constant 1 : index
    %c0_41 = arith.constant 0 : index
    %68 = vector.load %arg4[%c1_40, %c0_41] : memref<2x128xf32, #tpu.memory_space<vmem>>, vector<1x128xf32>
    %69 = arith.mulf %59, %59 : vector<256x128xf32>
    %cst_42 = arith.constant dense<0.000000e+00> : vector<128xf32>
    %70 = vector.multi_reduction <add>, %69, %cst_42 [0] : vector<256x128xf32> to vector<128xf32>
    %71 = vector.shape_cast %70 : vector<128xf32> to vector<1x128xf32>
    %72 = arith.addf %68, %71 : vector<1x128xf32>
    %c1_43 = arith.constant 1 : index
    %c0_44 = arith.constant 0 : index
    %73 = vector.load %arg4[%c1_43, %c0_44] : memref<2x128xf32, #tpu.memory_space<vmem>>, vector<1x128xf32>
    tpu.vector_store %arg4[%c1_43, %c0_44], %72 {strides = array<i32>} : memref<2x128xf32, #tpu.memory_space<vmem>>, vector<1x128xf32>,
    return
  }
  func.func @transform_0(%arg0: i32) -> (i32, i32, i32, i32) {
    %c0_i32 = arith.constant 0 : i32
    %c0_i32_0 = arith.constant 0 : i32
    %c0_i32_1 = arith.constant 0 : i32
    %c0_i32_2 = arith.constant 0 : i32
    return %arg0, %c0_i32, %c0_i32_0, %c0_i32_1 : i32, i32, i32, i32
  }
  func.func @transform_1(%arg0: i32) -> (i32, i32, i32) {
    %c0_i32 = arith.constant 0 : i32
    %c0_i32_0 = arith.constant 0 : i32
    %c0_i32_1 = arith.constant 0 : i32
    %c0_i32_2 = arith.constant 0 : i32
    return %c0_i32, %c0_i32_0, %c0_i32_1 : i32, i32, i32
  }
  func.func @transform_2(%arg0: i32) -> (i32, i32, i32) {
    %c0_i32 = arith.constant 0 : i32
    %c0_i32_0 = arith.constant 0 : i32
    %c0_i32_1 = arith.constant 0 : i32
    return %arg0, %c0_i32, %c0_i32_0 : i32, i32, i32
  }
  func.func @transform_3(%arg0: i32) -> (i32, i32) {
    %c0_i32 = arith.constant 0 : i32
    %c0_i32_0 = arith.constant 0 : i32
    %c0_i32_1 = arith.constant 0 : i32
    return %c0_i32, %c0_i32_0 : i32, i32
  }
}

module attributes {stable_mosaic.version = 11 : i64} {
  func.func @_bn_relu_kernel(%arg0: i32, %arg1: memref<512x128xf32, #tpu.memory_space<vmem>>, %arg2: memref<1x128xf32, #tpu.memory_space<vmem>>, %arg3: memref<1x128xf32, #tpu.memory_space<vmem>>, %arg4: memref<512x128xf32, #tpu.memory_space<vmem>>) attributes {dimension_semantics = [#tpu.dimension_semantics<parallel>], iteration_bounds = array<i64: 1>, scalar_prefetch = 0 : i64, scratch_operands = 0 : i64, tpu.core_type = #tpu.core_type<tc>, window_params = [{transform_indices = @transform_0, window_bounds = array<i64: 512, 128>}, {pipeline_mode = #tpu.pipeline_mode<synchronous>, transform_indices = @transform_1, window_bounds = array<i64: 1, 128>}, {pipeline_mode = #tpu.pipeline_mode<synchronous>, transform_indices = @transform_2, window_bounds = array<i64: 1, 128>}, {transform_indices = @transform_3, window_bounds = array<i64: 512, 128>}]} {
    %c0 = arith.constant 0 : index
    %c0_0 = arith.constant 0 : index
    %0 = vector.load %arg1[%c0, %c0_0] : memref<512x128xf32, #tpu.memory_space<vmem>>, vector<512x128xf32>
    %c0_1 = arith.constant 0 : index
    %c0_2 = arith.constant 0 : index
    %1 = vector.load %arg2[%c0_1, %c0_2] : memref<1x128xf32, #tpu.memory_space<vmem>>, vector<1x128xf32>
    %2 = vector.broadcast %1 : vector<1x128xf32> to vector<512x128xf32>
    %3 = arith.mulf %0, %2 : vector<512x128xf32>
    %c0_3 = arith.constant 0 : index
    %c0_4 = arith.constant 0 : index
    %4 = vector.load %arg3[%c0_3, %c0_4] : memref<1x128xf32, #tpu.memory_space<vmem>>, vector<1x128xf32>
    %5 = vector.broadcast %4 : vector<1x128xf32> to vector<512x128xf32>
    %6 = arith.addf %3, %5 : vector<512x128xf32>
    %cst = arith.constant 0.000000e+00 : f32
    %7 = vector.broadcast %cst : f32 to vector<512x128xf32>
    %8 = arith.maximumf %6, %7 : vector<512x128xf32>
    %c0_5 = arith.constant 0 : index
    %c0_6 = arith.constant 0 : index
    %9 = vector.load %arg4[%c0_5, %c0_6] : memref<512x128xf32, #tpu.memory_space<vmem>>, vector<512x128xf32>
    tpu.vector_store %arg4[%c0_5, %c0_6], %8 {strides = array<i32>} : memref<512x128xf32, #tpu.memory_space<vmem>>, vector<512x128xf32>,
    return
  }
  func.func @transform_0(%arg0: i32) -> (i32, i32) {
    %c0_i32 = arith.constant 0 : i32
    %c0_i32_0 = arith.constant 0 : i32
    return %arg0, %c0_i32 : i32, i32
  }
  func.func @transform_1(%arg0: i32) -> (i32, i32) {
    %c0_i32 = arith.constant 0 : i32
    %c0_i32_0 = arith.constant 0 : i32
    %c0_i32_1 = arith.constant 0 : i32
    return %c0_i32, %c0_i32_0 : i32, i32
  }
  func.func @transform_2(%arg0: i32) -> (i32, i32) {
    %c0_i32 = arith.constant 0 : i32
    %c0_i32_0 = arith.constant 0 : i32
    %c0_i32_1 = arith.constant 0 : i32
    return %c0_i32, %c0_i32_0 : i32, i32
  }
  func.func @transform_3(%arg0: i32) -> (i32, i32) {
    %c0_i32 = arith.constant 0 : i32
    %c0_i32_0 = arith.constant 0 : i32
    return %arg0, %c0_i32 : i32, i32
  }
}

module attributes {stable_mosaic.version = 11 : i64} {
  func.func @_conv_stats_kernel(%arg0: i32, %arg1: memref<1x18x18x8xbf16, #tpu.memory_space<vmem>>, %arg2: memref<9x8x128xbf16, #tpu.memory_space<vmem>>, %arg3: memref<1x256x128xf32, #tpu.memory_space<vmem>>, %arg4: memref<2x128xf32, #tpu.memory_space<vmem>>) attributes {dimension_semantics = [#tpu.dimension_semantics<arbitrary>], iteration_bounds = array<i64: 2>, scalar_prefetch = 0 : i64, scratch_operands = 0 : i64, tpu.core_type = #tpu.core_type<tc>, window_params = [{transform_indices = @transform_0, window_bounds = array<i64: 1, 18, 18, 8>}, {pipeline_mode = #tpu.pipeline_mode<synchronous>, transform_indices = @transform_1, window_bounds = array<i64: 9, 8, 128>}, {transform_indices = @transform_2, window_bounds = array<i64: 1, 256, 128>}, {pipeline_mode = #tpu.pipeline_mode<synchronous>, transform_indices = @transform_3, window_bounds = array<i64: 2, 128>}]} {
    %c0_i32 = arith.constant 0 : i32
    %0 = arith.cmpi eq, %arg0, %c0_i32 : i32
    %1 = arith.extui %0 : i1 to i32
    %c0_i32_0 = arith.constant 0 : i32
    %2 = arith.cmpi ne, %1, %c0_i32_0 : i32
    scf.if %2 {
      %cst_45 = arith.constant 0.000000e+00 : f32
      %74 = vector.broadcast %cst_45 : f32 to vector<2x128xf32>
      %c0_46 = arith.constant 0 : index
      %c0_47 = arith.constant 0 : index
      %75 = vector.load %arg4[%c0_46, %c0_47] : memref<2x128xf32, #tpu.memory_space<vmem>>, vector<2x128xf32>
      tpu.vector_store %arg4[%c0_46, %c0_47], %74 {strides = array<i32>} : memref<2x128xf32, #tpu.memory_space<vmem>>, vector<2x128xf32>,
    } else {
    }
    %c0 = arith.constant 0 : index
    %c0_1 = arith.constant 0 : index
    %c0_2 = arith.constant 0 : index
    %c0_3 = arith.constant 0 : index
    %3 = vector.load %arg1[%c0, %c0_1, %c0_2, %c0_3] : memref<1x18x18x8xbf16, #tpu.memory_space<vmem>>, vector<1x18x18x8xbf16>
    %4 = vector.shape_cast %3 : vector<1x18x18x8xbf16> to vector<18x18x8xbf16>
    %cst = arith.constant 0.000000e+00 : f32
    %5 = vector.broadcast %cst : f32 to vector<256x128xf32>
    %6 = vector.extract_strided_slice %4 {offsets = [0, 0, 0], sizes = [16, 16, 8], strides = [1, 1, 1]} : vector<18x18x8xbf16> to vector<16x16x8xbf16>
    %7 = vector.shape_cast %6 : vector<16x16x8xbf16> to vector<256x8xbf16>
    %c0_4 = arith.constant 0 : index
    %c0_5 = arith.constant 0 : index
    %c0_6 = arith.constant 0 : index
    %8 = vector.load %arg2[%c0_4, %c0_5, %c0_6] : memref<9x8x128xbf16, #tpu.memory_space<vmem>>, vector<1x8x128xbf16>
    %9 = vector.shape_cast %8 : vector<1x8x128xbf16> to vector<8x128xbf16>
    %cst_7 = arith.constant dense<0.000000e+00> : vector<256x128xf32>
    %10 = tpu.matmul %7, %9, %cst_7 {dimension_numbers = #tpu.dot_dimension_numbers<[1], [0], [0], [1], [0, 0, 1, 1], [], []>} : vector<256x8xbf16>, vector<8x128xbf16>, vector<256x128xf32> -> vector<256x128xf32>
    %11 = arith.addf %5, %10 : vector<256x128xf32>
    %12 = vector.extract_strided_slice %4 {offsets = [0, 1, 0], sizes = [16, 16, 8], strides = [1, 1, 1]} : vector<18x18x8xbf16> to vector<16x16x8xbf16>
    %13 = vector.shape_cast %12 : vector<16x16x8xbf16> to vector<256x8xbf16>
    %c1 = arith.constant 1 : index
    %c0_8 = arith.constant 0 : index
    %c0_9 = arith.constant 0 : index
    %14 = vector.load %arg2[%c1, %c0_8, %c0_9] : memref<9x8x128xbf16, #tpu.memory_space<vmem>>, vector<1x8x128xbf16>
    %15 = vector.shape_cast %14 : vector<1x8x128xbf16> to vector<8x128xbf16>
    %cst_10 = arith.constant dense<0.000000e+00> : vector<256x128xf32>
    %16 = tpu.matmul %13, %15, %cst_10 {dimension_numbers = #tpu.dot_dimension_numbers<[1], [0], [0], [1], [0, 0, 1, 1], [], []>} : vector<256x8xbf16>, vector<8x128xbf16>, vector<256x128xf32> -> vector<256x128xf32>
    %17 = arith.addf %11, %16 : vector<256x128xf32>
    %18 = vector.extract_strided_slice %4 {offsets = [0, 2, 0], sizes = [16, 16, 8], strides = [1, 1, 1]} : vector<18x18x8xbf16> to vector<16x16x8xbf16>
    %19 = vector.shape_cast %18 : vector<16x16x8xbf16> to vector<256x8xbf16>
    %c2 = arith.constant 2 : index
    %c0_11 = arith.constant 0 : index
    %c0_12 = arith.constant 0 : index
    %20 = vector.load %arg2[%c2, %c0_11, %c0_12] : memref<9x8x128xbf16, #tpu.memory_space<vmem>>, vector<1x8x128xbf16>
    %21 = vector.shape_cast %20 : vector<1x8x128xbf16> to vector<8x128xbf16>
    %cst_13 = arith.constant dense<0.000000e+00> : vector<256x128xf32>
    %22 = tpu.matmul %19, %21, %cst_13 {dimension_numbers = #tpu.dot_dimension_numbers<[1], [0], [0], [1], [0, 0, 1, 1], [], []>} : vector<256x8xbf16>, vector<8x128xbf16>, vector<256x128xf32> -> vector<256x128xf32>
    %23 = arith.addf %17, %22 : vector<256x128xf32>
    %24 = vector.extract_strided_slice %4 {offsets = [1, 0, 0], sizes = [16, 16, 8], strides = [1, 1, 1]} : vector<18x18x8xbf16> to vector<16x16x8xbf16>
    %25 = vector.shape_cast %24 : vector<16x16x8xbf16> to vector<256x8xbf16>
    %c3 = arith.constant 3 : index
    %c0_14 = arith.constant 0 : index
    %c0_15 = arith.constant 0 : index
    %26 = vector.load %arg2[%c3, %c0_14, %c0_15] : memref<9x8x128xbf16, #tpu.memory_space<vmem>>, vector<1x8x128xbf16>
    %27 = vector.shape_cast %26 : vector<1x8x128xbf16> to vector<8x128xbf16>
    %cst_16 = arith.constant dense<0.000000e+00> : vector<256x128xf32>
    %28 = tpu.matmul %25, %27, %cst_16 {dimension_numbers = #tpu.dot_dimension_numbers<[1], [0], [0], [1], [0, 0, 1, 1], [], []>} : vector<256x8xbf16>, vector<8x128xbf16>, vector<256x128xf32> -> vector<256x128xf32>
    %29 = arith.addf %23, %28 : vector<256x128xf32>
    %30 = vector.extract_strided_slice %4 {offsets = [1, 1, 0], sizes = [16, 16, 8], strides = [1, 1, 1]} : vector<18x18x8xbf16> to vector<16x16x8xbf16>
    %31 = vector.shape_cast %30 : vector<16x16x8xbf16> to vector<256x8xbf16>
    %c4 = arith.constant 4 : index
    %c0_17 = arith.constant 0 : index
    %c0_18 = arith.constant 0 : index
    %32 = vector.load %arg2[%c4, %c0_17, %c0_18] : memref<9x8x128xbf16, #tpu.memory_space<vmem>>, vector<1x8x128xbf16>
    %33 = vector.shape_cast %32 : vector<1x8x128xbf16> to vector<8x128xbf16>
    %cst_19 = arith.constant dense<0.000000e+00> : vector<256x128xf32>
    %34 = tpu.matmul %31, %33, %cst_19 {dimension_numbers = #tpu.dot_dimension_numbers<[1], [0], [0], [1], [0, 0, 1, 1], [], []>} : vector<256x8xbf16>, vector<8x128xbf16>, vector<256x128xf32> -> vector<256x128xf32>
    %35 = arith.addf %29, %34 : vector<256x128xf32>
    %36 = vector.extract_strided_slice %4 {offsets = [1, 2, 0], sizes = [16, 16, 8], strides = [1, 1, 1]} : vector<18x18x8xbf16> to vector<16x16x8xbf16>
    %37 = vector.shape_cast %36 : vector<16x16x8xbf16> to vector<256x8xbf16>
    %c5 = arith.constant 5 : index
    %c0_20 = arith.constant 0 : index
    %c0_21 = arith.constant 0 : index
    %38 = vector.load %arg2[%c5, %c0_20, %c0_21] : memref<9x8x128xbf16, #tpu.memory_space<vmem>>, vector<1x8x128xbf16>
    %39 = vector.shape_cast %38 : vector<1x8x128xbf16> to vector<8x128xbf16>
    %cst_22 = arith.constant dense<0.000000e+00> : vector<256x128xf32>
    %40 = tpu.matmul %37, %39, %cst_22 {dimension_numbers = #tpu.dot_dimension_numbers<[1], [0], [0], [1], [0, 0, 1, 1], [], []>} : vector<256x8xbf16>, vector<8x128xbf16>, vector<256x128xf32> -> vector<256x128xf32>
    %41 = arith.addf %35, %40 : vector<256x128xf32>
    %42 = vector.extract_strided_slice %4 {offsets = [2, 0, 0], sizes = [16, 16, 8], strides = [1, 1, 1]} : vector<18x18x8xbf16> to vector<16x16x8xbf16>
    %43 = vector.shape_cast %42 : vector<16x16x8xbf16> to vector<256x8xbf16>
    %c6 = arith.constant 6 : index
    %c0_23 = arith.constant 0 : index
    %c0_24 = arith.constant 0 : index
    %44 = vector.load %arg2[%c6, %c0_23, %c0_24] : memref<9x8x128xbf16, #tpu.memory_space<vmem>>, vector<1x8x128xbf16>
    %45 = vector.shape_cast %44 : vector<1x8x128xbf16> to vector<8x128xbf16>
    %cst_25 = arith.constant dense<0.000000e+00> : vector<256x128xf32>
    %46 = tpu.matmul %43, %45, %cst_25 {dimension_numbers = #tpu.dot_dimension_numbers<[1], [0], [0], [1], [0, 0, 1, 1], [], []>} : vector<256x8xbf16>, vector<8x128xbf16>, vector<256x128xf32> -> vector<256x128xf32>
    %47 = arith.addf %41, %46 : vector<256x128xf32>
    %48 = vector.extract_strided_slice %4 {offsets = [2, 1, 0], sizes = [16, 16, 8], strides = [1, 1, 1]} : vector<18x18x8xbf16> to vector<16x16x8xbf16>
    %49 = vector.shape_cast %48 : vector<16x16x8xbf16> to vector<256x8xbf16>
    %c7 = arith.constant 7 : index
    %c0_26 = arith.constant 0 : index
    %c0_27 = arith.constant 0 : index
    %50 = vector.load %arg2[%c7, %c0_26, %c0_27] : memref<9x8x128xbf16, #tpu.memory_space<vmem>>, vector<1x8x128xbf16>
    %51 = vector.shape_cast %50 : vector<1x8x128xbf16> to vector<8x128xbf16>
    %cst_28 = arith.constant dense<0.000000e+00> : vector<256x128xf32>
    %52 = tpu.matmul %49, %51, %cst_28 {dimension_numbers = #tpu.dot_dimension_numbers<[1], [0], [0], [1], [0, 0, 1, 1], [], []>} : vector<256x8xbf16>, vector<8x128xbf16>, vector<256x128xf32> -> vector<256x128xf32>
    %53 = arith.addf %47, %52 : vector<256x128xf32>
    %54 = vector.extract_strided_slice %4 {offsets = [2, 2, 0], sizes = [16, 16, 8], strides = [1, 1, 1]} : vector<18x18x8xbf16> to vector<16x16x8xbf16>
    %55 = vector.shape_cast %54 : vector<16x16x8xbf16> to vector<256x8xbf16>
    %c8 = arith.constant 8 : index
    %c0_29 = arith.constant 0 : index
    %c0_30 = arith.constant 0 : index
    %56 = vector.load %arg2[%c8, %c0_29, %c0_30] : memref<9x8x128xbf16, #tpu.memory_space<vmem>>, vector<1x8x128xbf16>
    %57 = vector.shape_cast %56 : vector<1x8x128xbf16> to vector<8x128xbf16>
    %cst_31 = arith.constant dense<0.000000e+00> : vector<256x128xf32>
    %58 = tpu.matmul %55, %57, %cst_31 {dimension_numbers = #tpu.dot_dimension_numbers<[1], [0], [0], [1], [0, 0, 1, 1], [], []>} : vector<256x8xbf16>, vector<8x128xbf16>, vector<256x128xf32> -> vector<256x128xf32>
    %59 = arith.addf %53, %58 : vector<256x128xf32>
    %c0_32 = arith.constant 0 : index
    %c0_33 = arith.constant 0 : index
    %c0_34 = arith.constant 0 : index
    %60 = vector.load %arg3[%c0_32, %c0_33, %c0_34] : memref<1x256x128xf32, #tpu.memory_space<vmem>>, vector<1x256x128xf32>
    %61 = vector.shape_cast %60 : vector<1x256x128xf32> to vector<256x128xf32>
    %62 = vector.shape_cast %59 : vector<256x128xf32> to vector<1x256x128xf32>
    tpu.vector_store %arg3[%c0_32, %c0_33, %c0_34], %62 {strides = array<i32>} : memref<1x256x128xf32, #tpu.memory_space<vmem>>, vector<1x256x128xf32>,
    %c0_35 = arith.constant 0 : index
    %c0_36 = arith.constant 0 : index
    %63 = vector.load %arg4[%c0_35, %c0_36] : memref<2x128xf32, #tpu.memory_space<vmem>>, vector<1x128xf32>
    %cst_37 = arith.constant dense<0.000000e+00> : vector<128xf32>
    %64 = vector.multi_reduction <add>, %59, %cst_37 [0] : vector<256x128xf32> to vector<128xf32>
    %65 = vector.shape_cast %64 : vector<128xf32> to vector<1x128xf32>
    %66 = arith.addf %63, %65 : vector<1x128xf32>
    %c0_38 = arith.constant 0 : index
    %c0_39 = arith.constant 0 : index
    %67 = vector.load %arg4[%c0_38, %c0_39] : memref<2x128xf32, #tpu.memory_space<vmem>>, vector<1x128xf32>
    tpu.vector_store %arg4[%c0_38, %c0_39], %66 {strides = array<i32>} : memref<2x128xf32, #tpu.memory_space<vmem>>, vector<1x128xf32>,
    %c1_40 = arith.constant 1 : index
    %c0_41 = arith.constant 0 : index
    %68 = vector.load %arg4[%c1_40, %c0_41] : memref<2x128xf32, #tpu.memory_space<vmem>>, vector<1x128xf32>
    %69 = arith.mulf %59, %59 : vector<256x128xf32>
    %cst_42 = arith.constant dense<0.000000e+00> : vector<128xf32>
    %70 = vector.multi_reduction <add>, %69, %cst_42 [0] : vector<256x128xf32> to vector<128xf32>
    %71 = vector.shape_cast %70 : vector<128xf32> to vector<1x128xf32>
    %72 = arith.addf %68, %71 : vector<1x128xf32>
    %c1_43 = arith.constant 1 : index
    %c0_44 = arith.constant 0 : index
    %73 = vector.load %arg4[%c1_43, %c0_44] : memref<2x128xf32, #tpu.memory_space<vmem>>, vector<1x128xf32>
    tpu.vector_store %arg4[%c1_43, %c0_44], %72 {strides = array<i32>} : memref<2x128xf32, #tpu.memory_space<vmem>>, vector<1x128xf32>,
    return
  }
  func.func @transform_0(%arg0: i32) -> (i32, i32, i32, i32) {
    %c0_i32 = arith.constant 0 : i32
    %c0_i32_0 = arith.constant 0 : i32
    %c0_i32_1 = arith.constant 0 : i32
    %c0_i32_2 = arith.constant 0 : i32
    return %arg0, %c0_i32, %c0_i32_0, %c0_i32_1 : i32, i32, i32, i32
  }
  func.func @transform_1(%arg0: i32) -> (i32, i32, i32) {
    %c0_i32 = arith.constant 0 : i32
    %c0_i32_0 = arith.constant 0 : i32
    %c0_i32_1 = arith.constant 0 : i32
    %c0_i32_2 = arith.constant 0 : i32
    return %c0_i32, %c0_i32_0, %c0_i32_1 : i32, i32, i32
  }
  func.func @transform_2(%arg0: i32) -> (i32, i32, i32) {
    %c0_i32 = arith.constant 0 : i32
    %c0_i32_0 = arith.constant 0 : i32
    %c0_i32_1 = arith.constant 0 : i32
    return %arg0, %c0_i32, %c0_i32_0 : i32, i32, i32
  }
  func.func @transform_3(%arg0: i32) -> (i32, i32) {
    %c0_i32 = arith.constant 0 : i32
    %c0_i32_0 = arith.constant 0 : i32
    %c0_i32_1 = arith.constant 0 : i32
    return %c0_i32, %c0_i32_0 : i32, i32
  }
}

</mosaic_0001>

<bundles_post_ra>
// kernel: conv_block_forward.5
= control target key start
LH: loop header
LB: loop body
LE: loop exit
PB: predicated region body
PF: predicated region fallthrough
CT: control target
= control target key end

     0   :  { %s893_s0 = inlined_call_operand.vmem [shape: f32[512,128], index: 0, kind: input, shape index: {}]   ;;  %s894_s1 = inlined_call_operand.vmem [shape: f32[1,128], index: 1, kind: input, shape index: {}]   ;;  %s895_s2 = inlined_call_operand.vmem [shape: f32[1,128], index: 2, kind: input, shape index: {}]   ;;  %s896_s3 = inlined_call_operand.vmem [shape: f32[512,128], index: 3, kind: output, shape index: {}]  }
   0x1   :  { %v14_v0 = vld [vmem:[%s893_s0] sm:$0xff]  ;;  %v15_v3 = vld [vmem:[%s893_s0 + $0x8] sm:$0xff]  ;;  %v16_v6 = vld [vmem:[%s893_s0 + $0x10] sm:$0xff] }
   0x2   :  { %v374_v1 = vld [vmem:[%s894_s1] ss:$0 sm:$0xff]  ;;  %v17_v7 = vld [vmem:[%s893_s0 + $0x18] sm:$0xff]  ;;  %v19_v12 = vld [vmem:[%s893_s0 + $0x28] sm:$0xff] }
   0x3   :  { %v379_v2 = vld [vmem:[%s895_s2] ss:$0 sm:$0xff]  ;;  %v82_v4 = vmul.f32 %v374_v1, %v14_v0  ;;  %v83_v5 = vmul.f32 %v374_v1, %v15_v3  ;;  %v84_v9 = vmul.f32 %v374_v1, %v16_v6  ;;  %v85_v10 = vmul.f32 %v374_v1, %v17_v7  ;;  %v20_v13 = vld [vmem:[%s893_s0 + $0x30] sm:$0xff]  ;;  %v21_v14 = vld [vmem:[%s893_s0 + $0x38] sm:$0xff] }
   0x4   :  { %v18_v8 = vld [vmem:[%s893_s0 + $0x20] sm:$0xff]  ;;  %v87_v17 = vmul.f32 %v374_v1, %v19_v12  ;;  %v88_v18 = vmul.f32 %v374_v1, %v20_v13  ;;  %v89_v22 = vmul.f32 %v374_v1, %v21_v14  ;;  %v23_v24 = vld [vmem:[%s893_s0 + $0x48] sm:$0xff]  ;;  %v24_v29 = vld [vmem:[%s893_s0 + $0x50] sm:$0xff] }
   0x5   :  { %v86_v11 = vmul.f32 %v374_v1, %v18_v8  ;;  %v150_v15 = vadd.f32 %v379_v2, %v82_v4  ;;  %v151_v16 = vadd.f32 %v379_v2, %v83_v5  ;;  %v152_v19 = vadd.f32 %v379_v2, %v84_v9  ;;  %v22_v23 = vld [vmem:[%s893_s0 + $0x40] sm:$0xff]  ;;  %v25_v30 = vld [vmem:[%s893_s0 + $0x58] sm:$0xff]  ;;  %v27_v35 = vld [vmem:[%s893_s0 + $0x68] sm:$0xff] }
   0x6   :  { %v153_v20 = vadd.f32 %v379_v2, %v85_v10  ;;  %v155_v27 = vadd.f32 %v379_v2, %v87_v17  ;;  %v156_v28 = vadd.f32 %v379_v2, %v88_v18  ;;  %v26_v31 = vld [vmem:[%s893_s0 + $0x60] sm:$0xff]  ;;  %v157_v34 = vadd.f32 %v379_v2, %v89_v22  ;;  %v28_v36 = vld [vmem:[%s893_s0 + $0x70] sm:$0xff]  ;;  %v29_v41 = vld [vmem:[%s893_s0 + $0x78] sm:$0xff] }
   0x7   :  { %v154_v21 = vadd.f32 %v379_v2, %v86_v11  ;;  %v214_v25 = vmax.f32 %v150_v15, 0.0  ;;  %v215_v26 = vmax.f32 %v151_v16, 0.0  ;;  %v216_v32 = vmax.f32 %v152_v19, 0.0  ;;  %v30_v54 = vld [vmem:[%s893_s0 + $0x80] sm:$0xff]  ;;  %v31_v55 = vld [vmem:[%s893_s0 + $0x88] sm:$0xff]  ;;  %v32_v58 = vld [vmem:[%s893_s0 + $0x90] sm:$0xff] }
   0x8   :  { %v217_v33 = vmax.f32 %v153_v20, 0.0  ;;  %v219_v38 = vmax.f32 %v155_v27, 0.0  ;;  %v90_v39 = vmul.f32 %v374_v1, %v22_v23  ;;  %v91_v40 = vmul.f32 %v374_v1, %v23_v24  ;;  %v33_v59 = vld [vmem:[%s893_s0 + $0x98] sm:$0xff]  ;;  %v34_v62 = vld [vmem:[%s893_s0 + $0xa0] sm:$0xff]  ;;  %v35_v5 = vld [vmem:[%s893_s0 + $0xa8] sm:$0xff] }
   0x9   :  { %278 = vst [vmem:[%s896_s3] sm:$0xff] %v214_v25  ;;  %v218_v37 = vmax.f32 %v154_v21, 0.0  ;;  %v220_v42 = vmax.f32 %v156_v28, 0.0  ;;  %v92_v43 = vmul.f32 %v374_v1, %v24_v29  ;;  %v93_v44 = vmul.f32 %v374_v1, %v25_v30  ;;  %v36_v10 = vld [vmem:[%s893_s0 + $0xb0] sm:$0xff]  ;;  %v37_v14 = vld [vmem:[%s893_s0 + $0xb8] sm:$0xff]  ;;  %v38_v18 = vld [vmem:[%s893_s0 + $0xc0] sm:$0xff] }
   0xa   :  { %279 = vst [vmem:[%s896_s3 + $0x8] sm:$0xff] %v215_v26  ;;  %v94_v45 = vmul.f32 %v374_v1, %v26_v31  ;;  %v158_v46 = vadd.f32 %v379_v2, %v90_v39  ;;  %v159_v47 = vadd.f32 %v379_v2, %v91_v40  ;;  %v95_v48 = vmul.f32 %v374_v1, %v27_v35  ;;  %v39_v22 = vld [vmem:[%s893_s0 + $0xc8] sm:$0xff]  ;;  %v40_v26 = vld [vmem:[%s893_s0 + $0xd0] sm:$0xff]  ;;  %v41_v30 = vld [vmem:[%s893_s0 + $0xd8] sm:$0xff] }
   0xb   :  { %280 = vst [vmem:[%s896_s3 + $0x10] sm:$0xff] %v216_v32  ;;  %v96_v49 = vmul.f32 %v374_v1, %v28_v36  ;;  %v221_v50 = vmax.f32 %v157_v34, 0.0  ;;  %v160_v51 = vadd.f32 %v379_v2, %v92_v43  ;;  %v161_v52 = vadd.f32 %v379_v2, %v93_v44  ;;  %v42_v34 = vld [vmem:[%s893_s0 + $0xe0] sm:$0xff] }
   0xc   :  { %281 = vst [vmem:[%s896_s3 + $0x18] sm:$0xff] %v217_v33  ;;  %v97_v53 = vmul.f32 %v374_v1, %v29_v41  ;;  %v222_v56 = vmax.f32 %v158_v46, 0.0  ;;  %v162_v57 = vadd.f32 %v379_v2, %v94_v45  ;;  %v223_v60 = vmax.f32 %v159_v47, 0.0  ;;  %v45_v46 = vld [vmem:[%s893_s0 + $0xf8] sm:$0xff] }
   0xd   :  { %282 = vst [vmem:[%s896_s3 + $0x20] sm:$0xff] %v218_v37  ;;  %v163_v61 = vadd.f32 %v379_v2, %v95_v48  ;;  %v224_v63 = vmax.f32 %v160_v51, 0.0  ;;  %v164_v0 = vadd.f32 %v379_v2, %v96_v49  ;;  %v98_v3 = vmul.f32 %v374_v1, %v30_v54  ;;  %v47_v54 = vld [vmem:[%s893_s0 + $0x108] sm:$0xff] }
   0xe   :  { %283 = vst [vmem:[%s896_s3 + $0x28] sm:$0xff] %v219_v38  ;;  %v99_v4 = vmul.f32 %v374_v1, %v31_v55  ;;  %v225_v6 = vmax.f32 %v161_v52, 0.0  ;;  %v165_v7 = vadd.f32 %v379_v2, %v97_v53  ;;  %v100_v8 = vmul.f32 %v374_v1, %v32_v58  ;;  %v43_v38 = vld [vmem:[%s893_s0 + $0xe8] sm:$0xff]  ;;  %v48_v58 = vld [vmem:[%s893_s0 + $0x110] sm:$0xff] }
   0xf   :  { %284 = vst [vmem:[%s896_s3 + $0x30] sm:$0xff] %v220_v42  ;;  %v101_v9 = vmul.f32 %v374_v1, %v33_v59  ;;  %v226_v11 = vmax.f32 %v162_v57, 0.0  ;;  %v166_v12 = vadd.f32 %v379_v2, %v98_v3  ;;  %v102_v13 = vmul.f32 %v374_v1, %v34_v62  ;;  %v44_v42 = vld [vmem:[%s893_s0 + $0xf0] sm:$0xff]  ;;  %v49_v62 = vld [vmem:[%s893_s0 + $0x118] sm:$0xff] }
  0x10   :  { %285 = vst [vmem:[%s896_s3 + $0x38] sm:$0xff] %v221_v50  ;;  %v227_v15 = vmax.f32 %v163_v61, 0.0  ;;  %v167_v16 = vadd.f32 %v379_v2, %v99_v4  ;;  %v103_v17 = vmul.f32 %v374_v1, %v35_v5  ;;  %v228_v19 = vmax.f32 %v164_v0, 0.0  ;;  %v46_v50 = vld [vmem:[%s893_s0 + $0x100] sm:$0xff] }
  0x11   :  { %286 = vst [vmem:[%s896_s3 + $0x40] sm:$0xff] %v222_v56  ;;  %v168_v20 = vadd.f32 %v379_v2, %v100_v8  ;;  %v104_v21 = vmul.f32 %v374_v1, %v36_v10  ;;  %v229_v23 = vmax.f32 %v165_v7, 0.0  ;;  %v169_v24 = vadd.f32 %v379_v2, %v101_v9  ;;  %v50_v4 = vld [vmem:[%s893_s0 + $0x120] sm:$0xff]  ;;  %v51_v8 = vld [vmem:[%s893_s0 + $0x128] sm:$0xff] }
  0x12   :  { %287 = vst [vmem:[%s896_s3 + $0x48] sm:$0xff] %v223_v60  ;;  %v105_v25 = vmul.f32 %v374_v1, %v37_v14  ;;  %v230_v27 = vmax.f32 %v166_v12, 0.0  ;;  %v170_v28 = vadd.f32 %v379_v2, %v102_v13  ;;  %v106_v29 = vmul.f32 %v374_v1, %v38_v18  ;;  %v52_v12 = vld [vmem:[%s893_s0 + $0x130] sm:$0xff] }
  0x13   :  { %288 = vst [vmem:[%s896_s3 + $0x50] sm:$0xff] %v224_v63  ;;  %v231_v31 = vmax.f32 %v167_v16, 0.0  ;;  %v171_v32 = vadd.f32 %v379_v2, %v103_v17  ;;  %v107_v33 = vmul.f32 %v374_v1, %v39_v22  ;;  %v232_v35 = vmax.f32 %v168_v20, 0.0  ;;  %v53_v16 = vld [vmem:[%s893_s0 + $0x138] sm:$0xff]  ;;  %v54_v20 = vld [vmem:[%s893_s0 + $0x140] sm:$0xff] }
  0x14   :  { %289 = vst [vmem:[%s896_s3 + $0x58] sm:$0xff] %v225_v6  ;;  %v172_v36 = vadd.f32 %v379_v2, %v104_v21  ;;  %v108_v37 = vmul.f32 %v374_v1, %v40_v26  ;;  %v233_v39 = vmax.f32 %v169_v24, 0.0  ;;  %v173_v40 = vadd.f32 %v379_v2, %v105_v25  ;;  %v55_v24 = vld [vmem:[%s893_s0 + $0x148] sm:$0xff] }
  0x15   :  { %290 = vst [vmem:[%s896_s3 + $0x60] sm:$0xff] %v226_v11  ;;  %v109_v41 = vmul.f32 %v374_v1, %v41_v30  ;;  %v234_v43 = vmax.f32 %v170_v28, 0.0  ;;  %v174_v44 = vadd.f32 %v379_v2, %v106_v29  ;;  %v110_v45 = vmul.f32 %v374_v1, %v42_v34  ;;  %v56_v28 = vld [vmem:[%s893_s0 + $0x150] sm:$0xff] }
  0x16   :  { %291 = vst [vmem:[%s896_s3 + $0x68] sm:$0xff] %v227_v15  ;;  %v235_v47 = vmax.f32 %v171_v32, 0.0  ;;  %v175_v48 = vadd.f32 %v379_v2, %v107_v33  ;;  %v111_v49 = vmul.f32 %v374_v1, %v43_v38  ;;  %v236_v51 = vmax.f32 %v172_v36, 0.0  ;;  %v57_v32 = vld [vmem:[%s893_s0 + $0x158] sm:$0xff]  ;;  %v58_v36 = vld [vmem:[%s893_s0 + $0x160] sm:$0xff] }
  0x17   :  { %292 = vst [vmem:[%s896_s3 + $0x70] sm:$0xff] %v228_v19  ;;  %v176_v52 = vadd.f32 %v379_v2, %v108_v37  ;;  %v112_v53 = vmul.f32 %v374_v1, %v44_v42  ;;  %v237_v55 = vmax.f32 %v173_v40, 0.0  ;;  %v177_v56 = vadd.f32 %v379_v2, %v109_v41  ;;  %v59_v40 = vld [vmem:[%s893_s0 + $0x168] sm:$0xff] }
  0x18   :  { %293 = vst [vmem:[%s896_s3 + $0x78] sm:$0xff] %v229_v23  ;;  %v113_v57 = vmul.f32 %v374_v1, %v45_v46  ;;  %v238_v59 = vmax.f32 %v174_v44, 0.0  ;;  %v178_v60 = vadd.f32 %v379_v2, %v110_v45  ;;  %v114_v61 = vmul.f32 %v374_v1, %v46_v50  ;;  %v60_v44 = vld [vmem:[%s893_s0 + $0x170] sm:$0xff] }
  0x19   :  { %294 = vst [vmem:[%s896_s3 + $0x80] sm:$0xff] %v230_v27  ;;  %v239_v63 = vmax.f32 %v175_v48, 0.0  ;;  %v179_v0 = vadd.f32 %v379_v2, %v111_v49  ;;  %v115_v3 = vmul.f32 %v374_v1, %v47_v54  ;;  %v240_v5 = vmax.f32 %v176_v52, 0.0  ;;  %v61_v48 = vld [vmem:[%s893_s0 + $0x178] sm:$0xff]  ;;  %v62_v52 = vld [vmem:[%s893_s0 + $0x180] sm:$0xff] }
  0x1a   :  { %295 = vst [vmem:[%s896_s3 + $0x88] sm:$0xff] %v231_v31  ;;  %v180_v6 = vadd.f32 %v379_v2, %v112_v53  ;;  %v116_v7 = vmul.f32 %v374_v1, %v48_v58  ;;  %v241_v9 = vmax.f32 %v177_v56, 0.0  ;;  %v181_v10 = vadd.f32 %v379_v2, %v113_v57  ;;  %v63_v56 = vld [vmem:[%s893_s0 + $0x188] sm:$0xff] }
  0x1b   :  { %296 = vst [vmem:[%s896_s3 + $0x90] sm:$0xff] %v232_v35  ;;  %v117_v11 = vmul.f32 %v374_v1, %v49_v62  ;;  %v242_v13 = vmax.f32 %v178_v60, 0.0  ;;  %v182_v14 = vadd.f32 %v379_v2, %v114_v61  ;;  %v118_v15 = vmul.f32 %v374_v1, %v50_v4  ;;  %v64_v60 = vld [vmem:[%s893_s0 + $0x190] sm:$0xff] }
  0x1c   :  { %297 = vst [vmem:[%s896_s3 + $0x98] sm:$0xff] %v233_v39  ;;  %v243_v17 = vmax.f32 %v179_v0, 0.0  ;;  %v183_v18 = vadd.f32 %v379_v2, %v115_v3  ;;  %v119_v19 = vmul.f32 %v374_v1, %v51_v8  ;;  %v244_v21 = vmax.f32 %v180_v6, 0.0  ;;  %v65_v0 = vld [vmem:[%s893_s0 + $0x198] sm:$0xff] }
  0x1d   :  { %298 = vst [vmem:[%s896_s3 + $0xa0] sm:$0xff] %v234_v43  ;;  %v184_v22 = vadd.f32 %v379_v2, %v116_v7  ;;  %v120_v23 = vmul.f32 %v374_v1, %v52_v12  ;;  %v245_v25 = vmax.f32 %v181_v10, 0.0  ;;  %v185_v26 = vadd.f32 %v379_v2, %v117_v11  ;;  %v77_v3 = vld [vmem:[%s893_s0 + $0x1f8] sm:$0xff]  ;;  %v66_v7 = vld [vmem:[%s893_s0 + $0x1a0] sm:$0xff]  ;;  %v67_v11 = vld [vmem:[%s893_s0 + $0x1a8] sm:$0xff] }
  0x1e   :  { %299 = vst [vmem:[%s896_s3 + $0xa8] sm:$0xff] %v235_v47  ;;  %v121_v27 = vmul.f32 %v374_v1, %v53_v16  ;;  %v246_v29 = vmax.f32 %v182_v14, 0.0  ;;  %v186_v30 = vadd.f32 %v379_v2, %v118_v15  ;;  %v122_v31 = vmul.f32 %v374_v1, %v54_v20  ;;  %v68_v15 = vld [vmem:[%s893_s0 + $0x1b0] sm:$0xff]  ;;  %v69_v20 = vld [vmem:[%s893_s0 + $0x1b8] sm:$0xff] }
  0x1f   :  { %300 = vst [vmem:[%s896_s3 + $0xb0] sm:$0xff] %v236_v51  ;;  %v247_v33 = vmax.f32 %v183_v18, 0.0  ;;  %v187_v34 = vadd.f32 %v379_v2, %v119_v19  ;;  %v123_v35 = vmul.f32 %v374_v1, %v55_v24  ;;  %v248_v37 = vmax.f32 %v184_v22, 0.0  ;;  %v70_v24 = vld [vmem:[%s893_s0 + $0x1c0] sm:$0xff] }
  0x20   :  { %301 = vst [vmem:[%s896_s3 + $0xb8] sm:$0xff] %v237_v55  ;;  %v188_v38 = vadd.f32 %v379_v2, %v120_v23  ;;  %v124_v39 = vmul.f32 %v374_v1, %v56_v28  ;;  %v249_v41 = vmax.f32 %v185_v26, 0.0  ;;  %v189_v42 = vadd.f32 %v379_v2, %v121_v27 }
  0x21   :  { %302 = vst [vmem:[%s896_s3 + $0xc0] sm:$0xff] %v238_v59  ;;  %v125_v43 = vmul.f32 %v374_v1, %v57_v32  ;;  %v250_v45 = vmax.f32 %v186_v30, 0.0  ;;  %v190_v46 = vadd.f32 %v379_v2, %v122_v31  ;;  %v126_v47 = vmul.f32 %v374_v1, %v58_v36 }
  0x22   :  { %303 = vst [vmem:[%s896_s3 + $0xc8] sm:$0xff] %v239_v63  ;;  %v251_v49 = vmax.f32 %v187_v34, 0.0  ;;  %v191_v50 = vadd.f32 %v379_v2, %v123_v35  ;;  %v127_v51 = vmul.f32 %v374_v1, %v59_v40  ;;  %v252_v53 = vmax.f32 %v188_v38, 0.0 }
  0x23   :  { %304 = vst [vmem:[%s896_s3 + $0xd0] sm:$0xff] %v240_v5  ;;  %v192_v54 = vadd.f32 %v379_v2, %v124_v39  ;;  %v128_v55 = vmul.f32 %v374_v1, %v60_v44  ;;  %v253_v57 = vmax.f32 %v189_v42, 0.0  ;;  %v193_v58 = vadd.f32 %v379_v2, %v125_v43 }
  0x24   :  { %305 = vst [vmem:[%s896_s3 + $0xd8] sm:$0xff] %v241_v9  ;;  %v129_v59 = vmul.f32 %v374_v1, %v61_v48  ;;  %v254_v61 = vmax.f32 %v190_v46, 0.0  ;;  %v194_v62 = vadd.f32 %v379_v2, %v126_v47  ;;  %v130_v63 = vmul.f32 %v374_v1, %v62_v52 }
  0x25   :  { %306 = vst [vmem:[%s896_s3 + $0xe0] sm:$0xff] %v242_v13  ;;  %v255_v4 = vmax.f32 %v191_v50, 0.0  ;;  %v195_v5 = vadd.f32 %v379_v2, %v127_v51  ;;  %v131_v6 = vmul.f32 %v374_v1, %v63_v56  ;;  %v256_v8 = vmax.f32 %v192_v54, 0.0 }
  0x26   :  { %307 = vst [vmem:[%s896_s3 + $0xe8] sm:$0xff] %v243_v17  ;;  %v196_v9 = vadd.f32 %v379_v2, %v128_v55  ;;  %v132_v10 = vmul.f32 %v374_v1, %v64_v60  ;;  %v257_v12 = vmax.f32 %v193_v58, 0.0  ;;  %v197_v13 = vadd.f32 %v379_v2, %v129_v59 }
  0x27   :  { %308 = vst [vmem:[%s896_s3 + $0xf0] sm:$0xff] %v244_v21  ;;  %v133_v14 = vmul.f32 %v374_v1, %v65_v0  ;;  %v145_v16 = vmul.f32 %v374_v1, %v77_v3  ;;  %v258_v17 = vmax.f32 %v194_v62, 0.0  ;;  %v198_v18 = vadd.f32 %v379_v2, %v130_v63 }
  0x28   :  { %309 = vst [vmem:[%s896_s3 + $0xf8] sm:$0xff] %v245_v25  ;;  %v134_v19 = vmul.f32 %v374_v1, %v66_v7  ;;  %v259_v21 = vmax.f32 %v195_v5, 0.0  ;;  %v199_v22 = vadd.f32 %v379_v2, %v131_v6  ;;  %v135_v23 = vmul.f32 %v374_v1, %v67_v11 }
  0x29   :  { %310 = vst [vmem:[%s896_s3 + $0x100] sm:$0xff] %v246_v29  ;;  %v784_v25 = vadd.f32 %v379_v2, %v145_v16  ;;  %v260_v26 = vmax.f32 %v196_v9, 0.0  ;;  %v200_v27 = vadd.f32 %v379_v2, %v132_v10  ;;  %v136_v28 = vmul.f32 %v374_v1, %v68_v15  ;;  %v71_v29 = vld [vmem:[%s893_s0 + $0x1c8] sm:$0xff] }
  0x2a   :  { %311 = vst [vmem:[%s896_s3 + $0x108] sm:$0xff] %v247_v33  ;;  %v261_v30 = vmax.f32 %v197_v13, 0.0  ;;  %v201_v31 = vadd.f32 %v379_v2, %v133_v14  ;;  %v137_v32 = vmul.f32 %v374_v1, %v69_v20  ;;  %v72_v33 = vld [vmem:[%s893_s0 + $0x1d0] sm:$0xff]  ;;  %v262_v34 = vmax.f32 %v198_v18, 0.0 }
  0x2b   :  { %312 = vst [vmem:[%s896_s3 + $0x110] sm:$0xff] %v248_v37  ;;  %v202_v35 = vadd.f32 %v379_v2, %v134_v19  ;;  %v138_v36 = vmul.f32 %v374_v1, %v70_v24  ;;  %v73_v37 = vld [vmem:[%s893_s0 + $0x1d8] sm:$0xff]  ;;  %v263_v38 = vmax.f32 %v199_v22, 0.0  ;;  %v203_v39 = vadd.f32 %v379_v2, %v135_v23 }
  0x2c   :  { %313 = vst [vmem:[%s896_s3 + $0x118] sm:$0xff] %v249_v41  ;;  %v139_v40 = vmul.f32 %v374_v1, %v71_v29  ;;  %v74_v41 = vld [vmem:[%s893_s0 + $0x1e0] sm:$0xff]  ;;  %v264_v42 = vmax.f32 %v200_v27, 0.0  ;;  %v204_v43 = vadd.f32 %v379_v2, %v136_v28  ;;  %v140_v44 = vmul.f32 %v374_v1, %v72_v33 }
  0x2d   :  { %314 = vst [vmem:[%s896_s3 + $0x120] sm:$0xff] %v250_v45  ;;  %v75_v45 = vld [vmem:[%s893_s0 + $0x1e8] sm:$0xff]  ;;  %v265_v46 = vmax.f32 %v201_v31, 0.0  ;;  %v205_v47 = vadd.f32 %v379_v2, %v137_v32  ;;  %v141_v48 = vmul.f32 %v374_v1, %v73_v37  ;;  %v266_v50 = vmax.f32 %v202_v35, 0.0 }
  0x2e   :  { %315 = vst [vmem:[%s896_s3 + $0x128] sm:$0xff] %v251_v49  ;;  %v76_v49 = vld [vmem:[%s893_s0 + $0x1f0] sm:$0xff]  ;;  %v206_v51 = vadd.f32 %v379_v2, %v138_v36  ;;  %v142_v52 = vmul.f32 %v374_v1, %v74_v41  ;;  %v207_v54 = vadd.f32 %v379_v2, %v139_v40  ;;  %v143_v55 = vmul.f32 %v374_v1, %v75_v45 }
  0x2f   :  { %316 = vst [vmem:[%s896_s3 + $0x130] sm:$0xff] %v252_v53  ;;  %v267_v53 = vmax.f32 %v203_v39, 0.0  ;;  %v268_v56 = vmax.f32 %v204_v43, 0.0  ;;  %v144_v58 = vmul.f32 %v374_v1, %v76_v49  ;;  %v269_v59 = vmax.f32 %v205_v47, 0.0 }
  0x30   :  { %317 = vst [vmem:[%s896_s3 + $0x138] sm:$0xff] %v253_v57  ;;  %v208_v57 = vadd.f32 %v379_v2, %v140_v44  ;;  %v209_v60 = vadd.f32 %v379_v2, %v141_v48  ;;  %v210_v62 = vadd.f32 %v379_v2, %v142_v52  ;;  %v271_v63 = vmax.f32 %v207_v54, 0.0 }
  0x31   :  { %318 = vst [vmem:[%s896_s3 + $0x140] sm:$0xff] %v254_v61  ;;  %v270_v61 = vmax.f32 %v206_v51, 0.0  ;;  %v211_v1 = vadd.f32 %v379_v2, %v143_v55  ;;  %v212_v3 = vadd.f32 %v379_v2, %v144_v58  ;;  %v277_v7 = vmax.f32 %v784_v25, 0.0 }
  0x32   :  { %319 = vst [vmem:[%s896_s3 + $0x148] sm:$0xff] %v255_v4  ;;  %v272_v0 = vmax.f32 %v208_v57, 0.0  ;;  %v273_v4 = vmax.f32 %v209_v60, 0.0  ;;  %v274_v5 = vmax.f32 %v210_v62, 0.0 }
  0x33   :  { %320 = vst [vmem:[%s896_s3 + $0x150] sm:$0xff] %v256_v8  ;;  %v275_v6 = vmax.f32 %v211_v1, 0.0  ;;  %v276_v2 = vmax.f32 %v212_v3, 0.0 }
  0x34   :  { %321 = vst [vmem:[%s896_s3 + $0x158] sm:$0xff] %v257_v12 }
  0x35   :  { %322 = vst [vmem:[%s896_s3 + $0x160] sm:$0xff] %v258_v17 }
  0x36   :  { %323 = vst [vmem:[%s896_s3 + $0x168] sm:$0xff] %v259_v21 }
  0x37   :  { %324 = vst [vmem:[%s896_s3 + $0x170] sm:$0xff] %v260_v26 }
  0x38   :  { %325 = vst [vmem:[%s896_s3 + $0x178] sm:$0xff] %v261_v30 }
  0x39   :  { %326 = vst [vmem:[%s896_s3 + $0x180] sm:$0xff] %v262_v34 }
  0x3a   :  { %327 = vst [vmem:[%s896_s3 + $0x188] sm:$0xff] %v263_v38 }
  0x3b   :  { %328 = vst [vmem:[%s896_s3 + $0x190] sm:$0xff] %v264_v42 }
  0x3c   :  { %329 = vst [vmem:[%s896_s3 + $0x198] sm:$0xff] %v265_v46 }
  0x3d   :  { %330 = vst [vmem:[%s896_s3 + $0x1a0] sm:$0xff] %v266_v50 }
  0x3e   :  { %331 = vst [vmem:[%s896_s3 + $0x1a8] sm:$0xff] %v267_v53 }
  0x3f   :  { %332 = vst [vmem:[%s896_s3 + $0x1b0] sm:$0xff] %v268_v56 }
  0x40   :  { %333 = vst [vmem:[%s896_s3 + $0x1b8] sm:$0xff] %v269_v59 }
  0x41   :  { %334 = vst [vmem:[%s896_s3 + $0x1c0] sm:$0xff] %v270_v61 }
  0x42   :  { %335 = vst [vmem:[%s896_s3 + $0x1c8] sm:$0xff] %v271_v63 }
  0x43   :  { %336 = vst [vmem:[%s896_s3 + $0x1d0] sm:$0xff] %v272_v0 }
  0x44   :  { %337 = vst [vmem:[%s896_s3 + $0x1d8] sm:$0xff] %v273_v4 }
  0x45   :  { %338 = vst [vmem:[%s896_s3 + $0x1e0] sm:$0xff] %v274_v5 }
  0x46   :  { %339 = vst [vmem:[%s896_s3 + $0x1e8] sm:$0xff] %v275_v6 }
  0x47   :  { %340 = vst [vmem:[%s896_s3 + $0x1f0] sm:$0xff] %v276_v2 }
  0x48   :  { %341 = vst [vmem:[%s896_s3 + $0x1f8] sm:$0xff] %v277_v7 }

// kernel: conv_block_forward.4
= control target key start
LH: loop header
LB: loop body
LE: loop exit
PB: predicated region body
PF: predicated region fallthrough
CT: control target
= control target key end

     0   :  { %s2770_s12 = smov 0   ;;  %s3877_s0 = inlined_call_operand.vmem [shape: bf16[2,18,18,4], index: 0, kind: input, shape index: {}]   ;;  %s3878_s1 = inlined_call_operand.vmem [shape: bf16[9,4,128], index: 1, kind: input, shape index: {}]   ;;  %s3879_s2 = inlined_call_operand.vmem [shape: f32[2,256,128], index: 2, kind: output, shape index: {0}]   ;;  %s3880_s3 = inlined_call_operand.vmem [shape: f32[2,128], index: 3, kind: output, shape index: {1}]  }
   0x1 LB: > { %s2447_s13 = sadd.s32 4294967295, %s2747_s12   ;;  %p2451_p0 = scmp.ge.s32.totalorder %s2747_s12, 1  ;;  %s2747_s12 = sphi %s2770_s12, %s14_s12  }
   0x2   : > { %p135_p1 = scmp.lt.s32.totalorder %s2747_s12, 3 }
   0x4   : > { %p136_p2 = pnand %p2451_p0, %p135_p1 }
   0x6   : > { %139 = sbr.rel (%p136_p2) target bundleno = 778 (0x30a), region = 28 }
   0xb   : > { %p159_p3 = scmp.lt.s32.totalorder %s2447_s13, 1  ;;  %p2455_p4 = scmp.ne.s32.totalorder %s2447_s13, 0 }
   0xd   : > { %s160_s14 = scalar_select %p159_p3, %s2447_s13, 1 }
   0xe   : > { %173 = sbr.rel (%p2455_p4) target bundleno = 21 (0x15), region = 32 }
   0xf   : > { %s2722_s15 = smul.u32 216, %s160_s14  ;;  %s2700_s16 = sshll.u32 %s160_s14, 8 }
  0x10   : > { %s2781_s19 = scalar_lea.vmem %s3879_s2, %s2700_s16 }
  0x11   : > { %s2786_s22 = scalar_lea.vmem %s3877_s0, %s2722_s15 }
  0x13   : > { %v2749_v0 = vmov 0.0  }
  0x14   : > { %174 = vst [vmem:[%s3880_s3] sm:$0x3] %v2749_v0 }
  0x15 PF: > { %v2456_v1 = vld [vmem:[%s3878_s1 + $0x2] sm:$0x3]  ;;  %vm716_vm0 = vcmask 1041408   ;;  %v2795_v2 = vld [vmem:[%s2786_s22 + $0x30] sm:$0xf]  ;;  %vm667_vm3 = vcmask 31744  }
  0x16   : > { %v718_v3 = vsel %vm716_vm0, %v2456_v1, 0  ;;  %v2799_v4 = vld [vmem:[%s2786_s22 + $0x34] sm:$0xf]  ;;  %v2802_v5 = vld [vmem:[%s2786_s22 + $0x38] sm:$0x1]  ;;  %v330_v6 = vshrl.u32 %v2795_v2, 16 }
  0x17   : > { %2719 = vmatpush.bf16.msra.mxu1 %v718_v3  ;;  %2720 = vmatpush.bf16.msra.mxu2 %v718_v3  ;;  %vm230_vm1 = vsmask.f32 3328  ;;  %vm231_vm2 = vsmask.f32 7440  ;;  %v333_v7 = vshll.u32 %v2795_v2, 16  ;;  %v339_v8 = vshll.u32 %v2799_v4, 16 }
  0x18   : > { %2721 = vmatpush.bf16.msra.mxu3 %v718_v3  ;;  %727 = vmatpush.bf16.msra.mxu0 %v718_v3  ;;  %v332_v9 = vrot.slane %v330_v6, 4  ;;  %v343_v10 = vshrl.u32 %v2799_v4, 16  ;;  %v349_v11 = vshll.u32 %v2802_v5, 16  ;;  %v199_v12 = vld [vmem:[%s2786_s22 + $0x60] sm:$0xf]  ;;  %vm2815_vm4 = vmor %vm230_vm1, %vm231_vm2  ;;  %vm1045_vm5 = vcmask 1042432  }
  0x19   : > { %v335_v13 = vrot.slane %v333_v7, 5  ;;  %v341_v14 = vrot.slane %v339_v8, 5  ;;  %v200_v15 = vld [vmem:[%s2786_s22 + $0x64] sm:$0xf]  ;;  %v201_v16 = vld [vmem:[%s2786_s22 + $0x68] sm:$0x1] }
  0x1a   : > { %v345_v17 = vrot.slane %v343_v10, 4  ;;  %v426_v18 = vshrl.u32 %v199_v12, 16  ;;  %v429_v19 = vshll.u32 %v199_v12, 16  ;;  %v435_v21 = vshll.u32 %v200_v15, 16  ;;  %v211_v24 = vld [vmem:[%s2786_s22 + $0x90] sm:$0xf] }
  0x1b   : > { %v336_v20 = vor.u32 %v335_v13, %v332_v9  ;;  %v439_v22 = vshrl.u32 %v200_v15, 16  ;;  %v445_v23 = vshll.u32 %v201_v16, 16  ;;  %v351_v27 = vrot.slane %v349_v11, 5  ;;  %v212_v30 = vld [vmem:[%s2786_s22 + $0x94] sm:$0xf] }
  0x1c   : > { %v346_v26 = vor.u32 %v345_v17, %v341_v14  ;;  %v428_v28 = vrot.slane %v426_v18, 4  ;;  %v431_v29 = vrot.slane %v429_v19, 5  ;;  %v437_v32 = vrot.slane %v435_v21, 5  ;;  %v213_v41 = vld [vmem:[%s2786_s22 + $0x98] sm:$0x1] }
  0x1d   : > { %v337_v31 = vrot.slane %v336_v20, 4  ;;  %v441_v33 = vrot.slane %v439_v22, 4  ;;  %v447_v34 = vrot.slane %v445_v23, 5  ;;  %v522_v37 = vshrl.u32 %v211_v24, 16  ;;  %v2569_v52 = vld [vmem:[%s3878_s1 + $0x4] sm:$0x3] }
  0x1e   : > { %v347_v35 = vrot.slane %v346_v26, 4  ;;  %v432_v36 = vor.u32 %v431_v29, %v428_v28  ;;  %v525_v38 = vshll.u32 %v211_v24, 16  ;;  %v531_v42 = vshll.u32 %v212_v30, 16  ;;  %v2831_v56 = vld [vmem:[%s2786_s22] sm:$0xf] }
  0x1f   : > { %v342_v39 = vsel %vm2815_vm4, %v337_v31, %v341_v14  ;;  %v442_v40 = vor.u32 %v441_v33, %v437_v32  ;;  %v535_v43 = vshrl.u32 %v212_v30, 16  ;;  %v524_v47 = vrot.slane %v522_v37, 4  ;;  %v2834_v57 = vld [vmem:[%s2786_s22 + $0x4] sm:$0xf]  ;;  %v2841_v62 = vld [vmem:[%s2786_s22 + $0x8] sm:$0x1] }
  0x20   : > { %v352_v44 = vsel %vm2815_vm4, %v347_v35, %v351_v27  ;;  %v627_v45 = vunpack.c.l.b16 %v342_v39  ;;  %v433_v46 = vrot.slane %v432_v36, 4  ;;  %v527_v50 = vrot.slane %v525_v38, 5  ;;  %v2586_v6 = vld [vmem:[%s3878_s1 + $0x6] sm:$0x3]  ;;  %v229_v11 = vld [vmem:[%s3878_s1] sm:$0x3] }
  0x21   : > { %v628_v48 = vunpack.c.l.b16 %v352_v44  ;;  %v443_v49 = vrot.slane %v442_v40, 4  ;;  %v533_v51 = vrot.slane %v531_v42, 5  ;;  %v537_v54 = vrot.slane %v535_v43, 4  ;;  %v2607_v16 = vld [vmem:[%s3878_s1 + $0x8] sm:$0x3] }
  0x22   : > { %v438_v53 = vsel %vm2815_vm4, %v433_v46, %v437_v32  ;;  %v541_v55 = vshll.u32 %v213_v41, 16  ;;  %v528_v61 = vor.u32 %v527_v50, %v524_v47  ;;  %v1259_v3 = vsel %vm716_vm0, %v2569_v52, 0  ;;  %v2865_v21 = vld [vmem:[%s2786_s22 + $0x3c] sm:$0xf]  ;;  %v2872_v26 = vld [vmem:[%s2786_s22 + $0x40] sm:$0xf] }
  0x23   : > { %v2836_v58 = vpack.c.b16 %v628_v48, %v627_v45  ;;  %v448_v59 = vsel %vm2815_vm4, %v443_v49, %v447_v34  ;;  %v635_v60 = vunpack.c.l.b16 %v438_v53  ;;  %v538_v0 = vor.u32 %v537_v54, %v533_v51  ;;  %1268 = vmatpush.bf16.msrb.mxu2 %v1259_v3  ;;  %v2876_v31 = vld [vmem:[%s2786_s22 + $0x44] sm:$0x1]  ;;  %v2882_v36 = vld [vmem:[%s2786_s22 + $0x6c] sm:$0xf]  ;;  %v2891_v45 = vld [vmem:[%s2786_s22 + $0x70] sm:$0xf] }
  0x24   : > { %v636_v63 = vunpack.c.l.b16 %v448_v59  ;;  %v543_v1 = vrot.slane %v541_v55, 5  ;;  %v529_v7 = vrot.slane %v528_v61, 4  ;;  %v234_v8 = vshrl.u32 %v2831_v56, 16  ;;  %v2898_v49 = vld [vmem:[%s2786_s22 + $0x74] sm:$0x1] }
  0x25   : > { %2461 = vmatmul.msk.bf16.vlgmr.msra.gmra.mxu1 %vm667_vm3, %v2836_v58  ;;  %v237_v9 = vshll.u32 %v2831_v56, 16  ;;  %v243_v10 = vshll.u32 %v2834_v57, 16  ;;  %v539_v13 = vrot.slane %v538_v0, 4  ;;  %v247_v14 = vshrl.u32 %v2834_v57, 16 }
  0x26   : > { %v2855_v12 = vpack.c.b16 %v636_v63, %v635_v60  ;;  %v253_v15 = vshll.u32 %v2841_v62, 16  ;;  %v534_v17 = vsel %vm2815_vm4, %v529_v7, %v533_v51  ;;  %v236_v18 = vrot.slane %v234_v8, 4 }
  0x27   : > { %v239_v19 = vrot.slane %v237_v9, 5  ;;  %v245_v20 = vrot.slane %v243_v10, 5  ;;  %v544_v22 = vsel %vm2815_vm4, %v539_v13, %v543_v1  ;;  %v643_v23 = vunpack.c.l.b16 %v534_v17  ;;  %v215_v10 = vld [vmem:[%s2786_s22 + $0xa0] sm:$0xf] }
  0x28   : > { %3921 = vst [vmem:[#allocation2_spill] sm:$0xff] %v2855_v12  ;;  %2465 = vmatmul.msk.bf16.vlgmr.msra.gmra.mxu2 %vm667_vm3, %v2855_v12  ;;  %v249_v24 = vrot.slane %v247_v14, 4  ;;  %v644_v27 = vunpack.c.l.b16 %v544_v22  ;;  %v255_v29 = vrot.slane %v253_v15, 5  ;;  %v1393_v30 = vsel %vm716_vm0, %v2586_v6, 0  ;;  %v214_v6 = vld [vmem:[%s2786_s22 + $0x9c] sm:$0xf] }
  0x29   : > { %v240_v28 = vor.u32 %v239_v19, %v236_v18  ;;  %1402 = vmatpush.bf16.msrb.mxu3 %v1393_v30  ;;  %v938_v33 = vsel %vm716_vm0, %v229_v11, 0  ;;  %v1549_v34 = vsel %vm716_vm0, %v2607_v16, 0  ;;  %v354_v35 = vshrl.u32 %v2865_v21, 16  ;;  %v216_v18 = vld [vmem:[%s2786_s22 + $0xa4] sm:$0x1] }
  0x2a   : > { %v250_v32 = vor.u32 %v249_v24, %v245_v20  ;;  %v2884_v37 = vpack.c.b16 %v644_v27, %v643_v23  ;;  %947 = vmatpush.bf16.msrb.mxu1 %v938_v33  ;;  %1558 = vmatpush.bf16.msrb.mxu0 %v1549_v34  ;;  %v357_v39 = vshll.u32 %v2865_v21, 16  ;;  %v363_v40 = vshll.u32 %v2872_v26, 16 }
  0x2b   : > { %v241_v38 = vrot.slane %v240_v28, 4  ;;  %v356_v42 = vrot.slane %v354_v35, 4  ;;  %v367_v43 = vshrl.u32 %v2872_v26, 16  ;;  %v373_v44 = vshll.u32 %v2876_v31, 16 }
  0x2c   : > { %3922 = vst [vmem:[#allocation3_spill] sm:$0xff] %v2884_v37  ;;  %v251_v41 = vrot.slane %v250_v32, 4  ;;  %2469 = vmatmul.msk.bf16.vlgmr.msra.gmra.mxu3 %vm667_vm3, %v2884_v37  ;;  %v359_v47 = vrot.slane %v357_v39, 5  ;;  %v365_v48 = vrot.slane %v363_v40, 5  ;;  %v450_v50 = vshrl.u32 %v2882_v36, 16 }
  0x2d   : > { %v246_v46 = vsel %vm2815_vm4, %v241_v38, %v245_v20  ;;  %v369_v53 = vrot.slane %v367_v43, 4  ;;  %v375_v54 = vrot.slane %v373_v44, 5  ;;  %v453_v61 = vshll.u32 %v2882_v36, 16  ;;  %v2916_v39 = vld [vmem:[%s2786_s22 + $0xc] sm:$0xf] }
  0x2e   : > { %v256_v51 = vsel %vm2815_vm4, %v251_v41, %v255_v29  ;;  %v619_v52 = vunpack.c.l.b16 %v246_v46  ;;  %v360_v59 = vor.u32 %v359_v47, %v356_v42  ;;  %v452_v60 = vrot.slane %v450_v50, 4  ;;  %v2923_v43 = vld [vmem:[%s2786_s22 + $0x10] sm:$0xf]  ;;  %v2926_v44 = vld [vmem:[%s2786_s22 + $0x14] sm:$0x1] }
  0x2f   : > { %v620_v55 = vunpack.c.l.b16 %v256_v51  ;;  %v370_v63 = vor.u32 %v369_v53, %v365_v48  ;;  %v459_v0 = vshll.u32 %v2891_v45, 16  ;;  %v463_v1 = vshrl.u32 %v2891_v45, 16 }
  0x30   : > { %v469_v3 = vshll.u32 %v2898_v49, 16  ;;  %v361_v8 = vrot.slane %v360_v59, 4  ;;  %v455_v9 = vrot.slane %v453_v61, 5  ;;  %v546_v19 = vshrl.u32 %v214_v6, 16 }
  0x31   : > { %v651_v7 = vpack.c.b16 %v620_v55, %v619_v52  ;;  %v371_v11 = vrot.slane %v370_v63, 4  ;;  %v461_v13 = vrot.slane %v459_v0, 5  ;;  %v465_v14 = vrot.slane %v463_v1, 4  ;;  %v2938_v63 = vld [vmem:[%s2786_s22 + $0x48] sm:$0xf] }
  0x32   : > { %v471_v15 = vrot.slane %v469_v3, 5  ;;  %v366_v16 = vsel %vm2815_vm4, %v361_v8, %v365_v48  ;;  %v456_v17 = vor.u32 %v455_v9, %v452_v60  ;;  %v549_v20 = vshll.u32 %v214_v6, 16 }
  0x33   : > { %2457 = vmatmul.msk.bf16.vlgmr.msra.gmra.mxu0 %vm667_vm3, %v651_v7  ;;  %v376_v22 = vsel %vm2815_vm4, %v371_v11, %v375_v54  ;;  %v629_v23 = vunpack.c.l.b16 %v366_v16  ;;  %v466_v24 = vor.u32 %v465_v14, %v461_v13  ;;  %v555_v27 = vshll.u32 %v215_v10, 16  ;;  %v2945_v7 = vld [vmem:[%s2786_s22 + $0x4c] sm:$0xf] }
  0x34   : > { %v630_v28 = vunpack.c.l.b16 %v376_v22  ;;  %v457_v29 = vrot.slane %v456_v17, 4  ;;  %v548_v30 = vrot.slane %v546_v19, 4  ;;  %v551_v32 = vrot.slane %v549_v20, 5 }
  0x35   : > { %v467_v33 = vrot.slane %v466_v24, 4  ;;  %v557_v34 = vrot.slane %v555_v27, 5  ;;  %v559_v35 = vshrl.u32 %v215_v10, 16  ;;  %v565_v38 = vshll.u32 %v216_v18, 16 }
  0x36   : > { %v2918_v40 = vpack.c.b16 %v630_v28, %v629_v23  ;;  %v462_v41 = vsel %vm2815_vm4, %v457_v29, %v461_v13  ;;  %v552_v42 = vor.u32 %v551_v32, %v548_v30  ;;  %v258_v53 = vshrl.u32 %v2916_v39, 16  ;;  %v2959_v23 = vld [vmem:[%s2786_s22 + $0x78] sm:$0xf] }
  0x37   : > { %v472_v46 = vsel %vm2815_vm4, %v467_v33, %v471_v15  ;;  %v637_v47 = vunpack.c.l.b16 %v462_v41  ;;  %v561_v48 = vrot.slane %v559_v35, 4  ;;  %v567_v50 = vrot.slane %v565_v38, 5  ;;  %v2950_v15 = vld [vmem:[%s2786_s22 + $0x50] sm:$0x1] }
  0x38   : > { %2462 = vmatmul.msk.bf16.gmra.mxu1 %vm667_vm3, %v2918_v40  ;;  %v638_v51 = vunpack.c.l.b16 %v472_v46  ;;  %v553_v52 = vrot.slane %v552_v42, 4  ;;  %v261_v54 = vshll.u32 %v2916_v39, 16  ;;  %v267_v59 = vshll.u32 %v2923_v43, 16  ;;  %v2967_v42 = vld [vmem:[%s2786_s22 + $0x7c] sm:$0xf] }
  0x39   : > { %v562_v55 = vor.u32 %v561_v48, %v557_v34  ;;  %v271_v60 = vshrl.u32 %v2923_v43, 16  ;;  %v277_v61 = vshll.u32 %v2926_v44, 16  ;;  %v260_v3 = vrot.slane %v258_v53, 4  ;;  %v2970_v46 = vld [vmem:[%s2786_s22 + $0x80] sm:$0x1] }
  0x3a   : > { %v2940_v0 = vpack.c.b16 %v638_v51, %v637_v47  ;;  %v558_v1 = vsel %vm2815_vm4, %v553_v52, %v557_v34  ;;  %v263_v6 = vrot.slane %v261_v54, 5  ;;  %v269_v10 = vrot.slane %v267_v59, 5 }
  0x3b   : > { %v563_v8 = vrot.slane %v562_v55, 4  ;;  %v645_v9 = vunpack.c.l.b16 %v558_v1  ;;  %v273_v11 = vrot.slane %v271_v60, 4  ;;  %v279_v14 = vrot.slane %v277_v61, 5 }
  0x3c   : > { %2466 = vmatmul.msk.bf16.gmra.mxu2 %vm667_vm3, %v2940_v0  ;;  %v264_v13 = vor.u32 %v263_v6, %v260_v3  ;;  %v378_v16 = vshrl.u32 %v2938_v63, 16  ;;  %v381_v17 = vshll.u32 %v2938_v63, 16  ;;  %v387_v20 = vshll.u32 %v2945_v7, 16  ;;  %v2982_v6 = vld [vmem:[%s2786_s22 + $0xa8] sm:$0xf] }
  0x3d   : > { %v568_v18 = vsel %vm2815_vm4, %v563_v8, %v567_v50  ;;  %v274_v19 = vor.u32 %v273_v11, %v269_v10  ;;  %v391_v22 = vshrl.u32 %v2945_v7, 16  ;;  %v397_v34 = vshll.u32 %v2950_v15, 16  ;;  %3924 = vst [vmem:[#allocation5_spill] sm:$0xff] %v2982_v6  ;;  %v2989_v11 = vld [vmem:[%s2786_s22 + $0xac] sm:$0xf] }
  0x3e   : > { %v646_v24 = vunpack.c.l.b16 %v568_v18  ;;  %v265_v27 = vrot.slane %v264_v13, 4  ;;  %v380_v28 = vrot.slane %v378_v16, 4  ;;  %v383_v29 = vrot.slane %v381_v17, 5  ;;  %3925 = vst [vmem:[#allocation6_spill] sm:$0xff] %v2989_v11  ;;  %v2994_v18 = vld [vmem:[%s2786_s22 + $0xb0] sm:$0x1] }
  0x3f   : > { %v275_v30 = vrot.slane %v274_v19, 4  ;;  %v389_v32 = vrot.slane %v387_v20, 5  ;;  %v393_v33 = vrot.slane %v391_v22, 4  ;;  %v474_v47 = vshrl.u32 %v2959_v23, 16  ;;  %3926 = vst [vmem:[#allocation7_spill] sm:$0xff] %v2994_v18 }
  0x40   : > { %v2962_v35 = vpack.c.b16 %v646_v24, %v645_v9  ;;  %v270_v38 = vsel %vm2815_vm4, %v265_v27, %v269_v10  ;;  %v384_v41 = vor.u32 %v383_v29, %v380_v28  ;;  %v399_v52 = vrot.slane %v397_v34, 5 }
  0x41   : > { %v280_v48 = vsel %vm2815_vm4, %v275_v30, %v279_v14  ;;  %v621_v50 = vunpack.c.l.b16 %v270_v38  ;;  %v394_v51 = vor.u32 %v393_v33, %v389_v32  ;;  %v476_v55 = vrot.slane %v474_v47, 4 }
  0x42   : > { %3923 = vst [vmem:[#allocation4_spill] sm:$0xff] %v2962_v35  ;;  %2470 = vmatmul.msk.bf16.gmra.mxu3 %vm667_vm3, %v2962_v35  ;;  %v622_v53 = vunpack.c.l.b16 %v280_v48  ;;  %v385_v54 = vrot.slane %v384_v41, 4  ;;  %v477_v59 = vshll.u32 %v2959_v23, 16  ;;  %v483_v61 = vshll.u32 %v2967_v42, 16 }
  0x43   : > { %v395_v60 = vrot.slane %v394_v51, 4  ;;  %v487_v1 = vshrl.u32 %v2967_v42, 16  ;;  %v493_v3 = vshll.u32 %v2970_v46, 16  ;;  %v570_v24 = vshrl.u32 %v2982_v6, 16 }
  0x44   : > { %v2984_v8 = vpack.c.b16 %v622_v53, %v621_v50  ;;  %v390_v9 = vsel %vm2815_vm4, %v385_v54, %v389_v32  ;;  %v479_v10 = vrot.slane %v477_v59, 5  ;;  %v485_v16 = vrot.slane %v483_v61, 5  ;;  %v3003_v32 = vld [vmem:[%s2786_s22 + $0x18] sm:$0xf] }
  0x45   : > { %v400_v13 = vsel %vm2815_vm4, %v395_v60, %v399_v52  ;;  %v631_v14 = vunpack.c.l.b16 %v390_v9  ;;  %v489_v17 = vrot.slane %v487_v1, 4  ;;  %v495_v22 = vrot.slane %v493_v3, 5  ;;  %v3009_v52 = vld [vmem:[%s2786_s22 + $0x1c] sm:$0xf]  ;;  %v3022_v9 = vld [vmem:[%s2786_s22 + $0x54] sm:$0xf] }
  0x46   : > { %2458 = vmatmul.msk.bf16.gmra.mxu0 %vm667_vm3, %v2984_v8  ;;  %v632_v19 = vunpack.c.l.b16 %v400_v13  ;;  %v480_v20 = vor.u32 %v479_v10, %v476_v55  ;;  %v573_v28 = vshll.u32 %v2982_v6, 16  ;;  %v579_v29 = vshll.u32 %v2989_v11, 16  ;;  %v3016_v55 = vld [vmem:[%s2786_s22 + $0x20] sm:$0x1] }
  0x47   : > { %v490_v27 = vor.u32 %v489_v17, %v485_v16  ;;  %v583_v30 = vshrl.u32 %v2989_v11, 16  ;;  %v572_v38 = vrot.slane %v570_v24, 4  ;;  %v589_v41 = vshll.u32 %v2994_v18, 16  ;;  %v3102_v11 = vld [vmem:[%s2786_s22 + $0x2c] sm:$0x1] }
  0x48   : > { %v3005_v33 = vpack.c.b16 %v632_v19, %v631_v14  ;;  %v481_v34 = vrot.slane %v480_v20, 4  ;;  %v575_v48 = vrot.slane %v573_v28, 5  ;;  %v581_v50 = vrot.slane %v579_v29, 5  ;;  %v3031_v29 = vld [vmem:[%s2786_s22 + $0x58] sm:$0xf] }
  0x49   : > { %v491_v47 = vrot.slane %v490_v27, 4  ;;  %v585_v51 = vrot.slane %v583_v30, 4  ;;  %v591_v54 = vrot.slane %v589_v41, 5  ;;  %v282_v59 = vshrl.u32 %v3003_v32, 16 }
  0x4a   : > { %3927 = vst [vmem:[#allocation8_spill] sm:$0xff] %v3005_v33  ;;  %2463 = vmatmul.msk.bf16.gmra.mxu1 %vm667_vm3, %v3005_v33  ;;  %v486_v53 = vsel %vm2815_vm4, %v481_v34, %v485_v16  ;;  %v576_v1 = vor.u32 %v575_v48, %v572_v38  ;;  %v285_v14 = vshll.u32 %v3003_v32, 16  ;;  %v291_v16 = vshll.u32 %v3009_v52, 16  ;;  %v3039_v48 = vld [vmem:[%s2786_s22 + $0x5c] sm:$0x1] }
  0x4b   : > { %v496_v60 = vsel %vm2815_vm4, %v491_v47, %v495_v22  ;;  %v639_v61 = vunpack.c.l.b16 %v486_v53  ;;  %v586_v3 = vor.u32 %v585_v51, %v581_v50  ;;  %v284_v13 = vrot.slane %v282_v59, 4  ;;  %v3042_v51 = vld [vmem:[%s2786_s22 + $0x84] sm:$0xf] }
  0x4c   : > { %v640_v10 = vunpack.c.l.b16 %v496_v60  ;;  %v577_v17 = vrot.slane %v576_v1, 4  ;;  %v295_v20 = vshrl.u32 %v3009_v52, 16  ;;  %v301_v22 = vshll.u32 %v3016_v55, 16  ;;  %3928 = vst [vmem:[#allocation9_spill] sm:$0xff] %v3042_v51 }
  0x4d   : > { %v587_v19 = vrot.slane %v586_v3, 4  ;;  %v287_v27 = vrot.slane %v285_v14, 5  ;;  %v293_v28 = vrot.slane %v291_v16, 5  ;;  %v402_v30 = vshrl.u32 %v3022_v9, 16 }
  0x4e   : > { %v3028_v24 = vpack.c.b16 %v640_v10, %v639_v61  ;;  %v582_v34 = vsel %vm2815_vm4, %v577_v17, %v581_v50  ;;  %v297_v41 = vrot.slane %v295_v20, 4  ;;  %v303_v47 = vrot.slane %v301_v22, 5 }
  0x4f   : > { %v592_v38 = vsel %vm2815_vm4, %v587_v19, %v591_v54  ;;  %v647_v53 = vunpack.c.l.b16 %v582_v34  ;;  %v288_v60 = vor.u32 %v287_v27, %v284_v13  ;;  %v404_v61 = vrot.slane %v402_v30, 4  ;;  %v3054_v27 = vld [vmem:[%s2786_s22 + $0x88] sm:$0xf] }
  0x50   : > { %2467 = vmatmul.msk.bf16.gmra.mxu2 %vm667_vm3, %v3028_v24  ;;  %v648_v59 = vunpack.c.l.b16 %v592_v38  ;;  %v298_v1 = vor.u32 %v297_v41, %v293_v28  ;;  %v405_v50 = vshll.u32 %v3022_v9, 16  ;;  %v411_v54 = vshll.u32 %v3031_v29, 16  ;;  %v3061_v38 = vld [vmem:[%s2786_s22 + $0x8c] sm:$0x1] }
  0x51   : > { %v415_v3 = vshrl.u32 %v3031_v29, 16  ;;  %v289_v14 = vrot.slane %v288_v60, 4  ;;  %v421_v16 = vshll.u32 %v3039_v48, 16  ;;  %v498_v17 = vshrl.u32 %v3042_v51, 16 }
  0x52   : > { %v3049_v10 = vpack.c.b16 %v648_v59, %v647_v53  ;;  %v299_v19 = vrot.slane %v298_v1, 4  ;;  %v407_v20 = vrot.slane %v405_v50, 5  ;;  %v413_v22 = vrot.slane %v411_v54, 5 }
  0x53   : > { %v417_v13 = vrot.slane %v415_v3, 4  ;;  %v294_v30 = vsel %vm2815_vm4, %v289_v14, %v293_v28  ;;  %v423_v34 = vrot.slane %v421_v16, 5  ;;  %v500_v41 = vrot.slane %v498_v17, 4  ;;  %v3069_v14 = vld [vmem:[%s2786_s22 + $0xb4] sm:$0xf] }
  0x54   : > { %3929 = vst [vmem:[#allocation10_spill] sm:$0xff] %v3049_v10  ;;  %2471 = vmatmul.msk.bf16.gmra.mxu3 %vm667_vm3, %v3049_v10  ;;  %v501_v53 = vshll.u32 %v3042_v51, 16  ;;  %v304_v59 = vsel %vm2815_vm4, %v299_v19, %v303_v47  ;;  %v623_v60 = vunpack.c.l.b16 %v294_v30  ;;  %v408_v1 = vor.u32 %v407_v20, %v404_v61  ;;  %v3075_v61 = vld [vmem:[%s2786_s22 + $0xb8] sm:$0xf] }
  0x55   : > { %v418_v50 = vor.u32 %v417_v13, %v413_v22  ;;  %v624_v54 = vunpack.c.l.b16 %v304_v59  ;;  %v507_v10 = vshll.u32 %v3054_v27, 16  ;;  %v511_v28 = vshrl.u32 %v3054_v27, 16  ;;  %3930 = vst [vmem:[#allocation11_spill] sm:$0xff] %v3069_v14  ;;  %v3082_v59 = vld [vmem:[%s2786_s22 + $0xbc] sm:$0x1] }
  0x56   : > { %v503_v3 = vrot.slane %v501_v53, 5  ;;  %v409_v16 = vrot.slane %v408_v1, 4  ;;  %v517_v6 = vshll.u32 %v3061_v38, 16  ;;  %3931 = vst [vmem:[#allocation12_spill] sm:$0xff] %v3075_v61  ;;  %v594_v1 = vshrl.u32 %v3069_v14, 16 }
  0x57   : > { %v419_v17 = vrot.slane %v418_v50, 4  ;;  %v3072_v18 = vpack.c.b16 %v624_v54, %v623_v60  ;;  %v509_v19 = vrot.slane %v507_v10, 5  ;;  %v513_v30 = vrot.slane %v511_v28, 4  ;;  %3932 = vst [vmem:[#allocation13_spill] sm:$0xff] %v3082_v59 }
  0x58   : > { %v504_v47 = vor.u32 %v503_v3, %v500_v41  ;;  %v414_v20 = vsel %vm2815_vm4, %v409_v16, %v413_v22  ;;  %v519_v53 = vrot.slane %v517_v6, 5  ;;  %v596_v54 = vrot.slane %v594_v1, 4 }
  0x59   : > { %v424_v13 = vsel %vm2815_vm4, %v419_v17, %v423_v34  ;;  %2459 = vmatmul.msk.bf16.gmra.mxu0 %vm667_vm3, %v3072_v18  ;;  %v633_v10 = vunpack.c.l.b16 %v414_v20  ;;  %v514_v50 = vor.u32 %v513_v30, %v509_v19  ;;  %v597_v22 = vshll.u32 %v3069_v14, 16  ;;  %v3091_v34 = vld [vmem:[%s2786_s22 + $0x24] sm:$0xf] }
  0x5a   : > { %v634_v41 = vunpack.c.l.b16 %v424_v13  ;;  %v505_v60 = vrot.slane %v504_v47, 4  ;;  %v603_v3 = vshll.u32 %v3075_v61, 16  ;;  %v607_v6 = vshrl.u32 %v3075_v61, 16  ;;  %v3099_v47 = vld [vmem:[%s2786_s22 + $0x28] sm:$0xf] }
  0x5b   : > { %v515_v17 = vrot.slane %v514_v50, 4  ;;  %v613_v20 = vshll.u32 %v3082_v59, 16  ;;  %v599_v13 = vrot.slane %v597_v22, 5  ;;  %v1053_v61 = vrot.slane %v2841_v62, 5 }
  0x5c   : > { %v3093_v28 = vpack.c.b16 %v634_v41, %v633_v10  ;;  %v510_v16 = vsel %vm2815_vm4, %v505_v60, %v509_v19  ;;  %v605_v1 = vrot.slane %v603_v3, 5  ;;  %v609_v14 = vrot.slane %v607_v6, 4 }
  0x5d   : > { %v641_v30 = vunpack.c.l.b16 %v510_v16  ;;  %v520_v10 = vsel %vm2815_vm4, %v515_v17, %v519_v53  ;;  %v615_v19 = vrot.slane %v613_v20, 5  ;;  %v306_v41 = vshrl.u32 %v3091_v34, 16  ;;  %v2642_v17 = vld [vmem:[%s3878_s1 + $0xc] sm:$0x3] }
  0x5e   : > { %3933 = vst [vmem:[#allocation14_spill] sm:$0xff] %v3093_v28  ;;  %2464 = vmatmul.msk.bf16.gmra.mxu1 %vm667_vm3, %v3093_v28  ;;  %v642_v60 = vunpack.c.l.b16 %v520_v10  ;;  %v600_v50 = vor.u32 %v599_v13, %v596_v54  ;;  %v610_v59 = vor.u32 %v609_v14, %v605_v1  ;;  %v309_v22 = vshll.u32 %v3091_v34, 16  ;;  %v2663_v13 = vld [vmem:[%s3878_s1 + $0xe] sm:$0x3] }
  0x5f   : > { %v308_v3 = vrot.slane %v306_v41, 4  ;;  %v315_v6 = vshll.u32 %v3099_v47, 16  ;;  %v319_v16 = vshrl.u32 %v3099_v47, 16  ;;  %v325_v62 = vshll.u32 %v3102_v11, 16  ;;  %v2625_v41 = vld [vmem:[%s3878_s1 + $0xa] sm:$0x3] }
  0x60   : > { %v3114_v35 = vpack.c.b16 %v642_v60, %v641_v30  ;;  %v601_v37 = vrot.slane %v600_v50, 4  ;;  %v611_v51 = vrot.slane %v610_v59, 4  ;;  %v311_v53 = vrot.slane %v309_v22, 5  ;;  %v2681_v60 = vld [vmem:[%s3878_s1 + $0x10] sm:$0x3] }
  0x61   : > { %v317_v54 = vrot.slane %v315_v6, 5  ;;  %v321_v14 = vrot.slane %v319_v16, 4  ;;  %v327_v20 = vrot.slane %v325_v62, 5  ;;  %vm1046_vm6 = vcmask 1046532  }
  0x62   : > { %2468 = vmatmul.msk.bf16.gmra.mxu2 %vm667_vm3, %v3114_v35  ;;  %v606_v30 = vsel %vm2815_vm4, %v601_v37, %v605_v1  ;;  %v616_v59 = vsel %vm2815_vm4, %v611_v51, %v615_v19  ;;  %v312_v10 = vor.u32 %v311_v53, %v308_v3  ;;  %vm3134_vm7 = vmor %vm1045_vm5, %vm1046_vm6  ;;  %v2553_v37 = vrot.slane %v2831_v56, 9 }
  0x63   : > { %v649_v50 = vunpack.c.l.b16 %v606_v30  ;;  %v650_v22 = vunpack.c.l.b16 %v616_v59  ;;  %v322_v6 = vor.u32 %v321_v14, %v317_v54  ;;  %v1050_v1 = vrot.slane %v2834_v57, 5 }
  0x64   : > { %v313_v51 = vrot.slane %v312_v10, 4  ;;  %v1823_v19 = vsel %vm716_vm0, %v2642_v17, 0  ;;  %v1979_v3 = vsel %vm716_vm0, %v2663_v13, 0  ;;  %v1689_v14 = vsel %vm716_vm0, %v2625_v41, 0 }
  0x65   : > { %v3142_v62 = vpack.c.b16 %v650_v22, %v649_v50  ;;  %v323_v53 = vrot.slane %v322_v6, 4  ;;  %1832 = vmatpush.bf16.msra.mxu2 %v1823_v19  ;;  %1988 = vmatpush.bf16.msra.mxu3 %v1979_v3  ;;  %v2119_v30 = vsel %vm716_vm0, %v2681_v60, 0  ;;  %v1051_v57 = vsel %vm3134_vm7, %v2553_v37, %v1050_v1  ;;  %v2701_v6 = vld [vmem:[%s2786_s22] sm:$0xff]  ;;  %v2702_v3 = vld [vmem:[%s2786_s22 + $0xc] sm:$0xff] }
  0x66   : > { %v318_v56 = vsel %vm2815_vm4, %v313_v51, %v317_v54  ;;  %v1052_v59 = vrot.slane %v1050_v1, 4  ;;  %1698 = vmatpush.bf16.msra.mxu1 %v1689_v14  ;;  %2128 = vmatpush.bf16.msra.mxu0 %v2119_v30  ;;  %v2554_v17 = vrot.slane %v2916_v39, 9  ;;  %v1162_v41 = vunpack.c.l.b16 %v1051_v57  ;;  %v3181_v14 = vld [vmem:[%s2786_s22 + $0x18] sm:$0xff] }
  0x67   : > { %2472 = vmatmul.msk.bf16.gmra.mxu3 %vm667_vm3, %v3142_v62  ;;  %v328_v13 = vsel %vm2815_vm4, %v323_v53, %v327_v20  ;;  %v625_v10 = vunpack.c.l.b16 %v318_v56  ;;  %v1057_v60 = vrot.slane %v2923_v43, 5  ;;  %v1060_v22 = vrot.slane %v2926_v44, 5 }
  0x68   : > { %v626_v50 = vunpack.c.l.b16 %v328_v13  ;;  %v1054_v54 = vsel %vm3134_vm7, %v1052_v59, %v1053_v61  ;;  %v1064_v53 = vrot.slane %v3009_v52, 5  ;;  %v2555_v30 = vrot.slane %v3003_v32, 9  ;;  %v3201_v13 = vld [vmem:[%s2786_s22 + $0x24] sm:$0xff] }
  0x69   : > { %v1163_v37 = vunpack.c.l.b16 %v1054_v54  ;;  %v1058_v39 = vsel %vm3134_vm7, %v2554_v17, %v1057_v60  ;;  %v1059_v51 = vrot.slane %v1057_v60, 4  ;;  %v1067_v57 = vrot.slane %v3016_v55, 5 }
  0x6a   : > { %v3162_v1 = vpack.c.b16 %v626_v50, %v625_v10  ;;  %v1164_v20 = vunpack.c.l.b16 %v1058_v39  ;;  %v1066_v56 = vrot.slane %v1064_v53, 4  ;;  %v1071_v55 = vrot.slane %v3099_v47, 5 }
  0x6b   : > { %v1194_v19 = vpack.c.b16 %v1163_v37, %v1162_v41  ;;  %v1061_v43 = vsel %vm3134_vm7, %v1059_v51, %v1060_v22  ;;  %v2556_v10 = vrot.slane %v3091_v34, 9  ;;  %v1074_v60 = vrot.slane %v3102_v11, 5  ;;  %v3223_v37 = vld [vmem:[%s2786_s22 + $0x30] sm:$0xff] }
  0x6c   : > { %2460 = vmatmul.msk.bf16.gmra.mxu0 %vm667_vm3, %v3162_v1  ;;  %v1165_v61 = vunpack.c.l.b16 %v1061_v43  ;;  %v1068_v52 = vsel %vm3134_vm7, %v1066_v56, %v1067_v57  ;;  %v1073_v41 = vrot.slane %v1071_v55, 4  ;;  %v1078_v11 = vrot.slane %v2799_v4, 5  ;;  %v3251_v57 = vld [vmem:[%s2786_s22 + $0x3c] sm:$0xff] }
  0x6d   : > { %v1167_v17 = vunpack.c.l.b16 %v1068_v52  ;;  %v1072_v50 = vsel %vm3134_vm7, %v2556_v10, %v1071_v55  ;;  %v2557_v39 = vrot.slane %v2795_v2, 9 }
  0x6e   : > { %2537 = vmatmul.msk.bf16.vlgmr.msrb.gmra.mxu1 %vm667_vm3, %v2701_v6  ;;  %v3169_v44 = vpack.c.b16 %v1165_v61, %v1164_v20  ;;  %v1075_v47 = vsel %vm3134_vm7, %v1073_v41, %v1074_v60  ;;  %v1168_v54 = vunpack.c.l.b16 %v1072_v50  ;;  %v1080_v51 = vrot.slane %v1078_v11, 4 }
  0x6f   : > { %v1169_v22 = vunpack.c.l.b16 %v1075_v47  ;;  %v1081_v20 = vrot.slane %v2802_v5, 5 }
  0x71   : > { %v3215_v34 = vpack.c.b16 %v1169_v22, %v1168_v54  ;;  %v1082_v4 = vsel %vm3134_vm7, %v1080_v51, %v1081_v20  ;;  %v1092_v22 = vrot.slane %v2945_v7, 5  ;;  %v2559_v51 = vrot.slane %v2938_v63, 9 }
  0x72   : > { %2570 = vmatmul.msk.bf16.vlgmr.msrb.gmra.mxu2 %vm667_vm3, %v1194_v19  ;;  %v1079_v19 = vsel %vm3134_vm7, %v2557_v39, %v1078_v11  ;;  %v1171_v61 = vunpack.c.l.b16 %v1082_v4  ;;  %v3285_v39 = vld [vmem:[%s2786_s22 + $0x48] sm:$0xff] }
  0x73   : > { %v1170_v43 = vunpack.c.l.b16 %v1079_v19  ;;  %3938 = vst [vmem:[#allocation17_spill] sm:$0xff] %v3285_v39  ;;  %v1094_v20 = vrot.slane %v1092_v22, 4  ;;  %v1095_v19 = vrot.slane %v2950_v15, 5  ;;  %v1093_v7 = vsel %vm3134_vm7, %v2559_v51, %v1092_v22 }
  0x74   : > { %v1174_v63 = vunpack.c.l.b16 %v1093_v7  ;;  %v2560_v22 = vrot.slane %v3022_v9, 9 }
  0x75   : > { %v3243_v5 = vpack.c.b16 %v1171_v61, %v1170_v43  ;;  %v1096_v61 = vsel %vm3134_vm7, %v1094_v20, %v1095_v19  ;;  %v1102_v20 = vrot.slane %v3039_v48, 5 }
  0x77   : > { %2591 = vmatmul.msk.bf16.vlgmr.msrb.gmra.mxu3 %vm667_vm3, %v2702_v3 }
  0x7c   : > { %2608 = vmatmul.msk.bf16.vlgmr.msrb.gmra.mxu0 %vm667_vm3, %v2984_v8  ;;  %v1065_v8 = vsel %vm3134_vm7, %v2555_v30, %v1064_v53  ;;  %v1085_v30 = vrot.slane %v2872_v26, 5 }
  0x7d   : > { %v1166_v59 = vunpack.c.l.b16 %v1065_v8  ;;  %v2558_v8 = vrot.slane %v2865_v21, 9 }
  0x7e   : > { %2538 = vmatmul.msk.bf16.gmra.mxu1 %vm667_vm3, %v2702_v3  ;;  %v1087_v52 = vrot.slane %v1085_v30, 4 }
  0x7f   : > { %v3195_v32 = vpack.c.b16 %v1167_v17, %v1166_v59  ;;  %v1088_v59 = vrot.slane %v2876_v31, 5  ;;  %v1086_v26 = vsel %vm3134_vm7, %v2558_v8, %v1085_v30  ;;  %v1175_v8 = vunpack.c.l.b16 %v1096_v61 }
  0x80   : > { %v1172_v60 = vunpack.c.l.b16 %v1086_v26  ;;  %v1099_v26 = vrot.slane %v3031_v29, 5 }
  0x81   : > { %v1089_v10 = vsel %vm3134_vm7, %v1087_v52, %v1088_v59  ;;  %v3309_v59 = vpack.c.b16 %v1175_v8, %v1174_v63 }
  0x82   : > { %2571 = vmatmul.msk.bf16.gmra.mxu2 %vm667_vm3, %v3169_v44  ;;  %v1173_v31 = vunpack.c.l.b16 %v1089_v10  ;;  %v1101_v51 = vrot.slane %v1099_v26, 4  ;;  %v1100_v29 = vsel %vm3134_vm7, %v2560_v22, %v1099_v26  ;;  %v2732_v22 = vld [vmem:[%s2786_s22 + $0x64] sm:$0xf] }
  0x83   : > { %3941 = vst [vmem:[#allocation20_spill] sm:$0xff] %v3309_v59  ;;  %v1176_v63 = vunpack.c.l.b16 %v1100_v29 }
  0x84   : > { %v3275_v47 = vpack.c.b16 %v1173_v31, %v1172_v60  ;;  %v3319_v31 = vld [vmem:[%s2786_s22 + $0x54] sm:$0xff]  ;;  %v1103_v61 = vsel %vm3134_vm7, %v1101_v51, %v1102_v20  ;;  %v1106_v51 = vrot.slane %v2732_v22, 5 }
  0x85   : > { %3942 = vst [vmem:[#allocation21_spill] sm:$0xff] %v3319_v31  ;;  %v1177_v48 = vunpack.c.l.b16 %v1103_v61  ;;  %v2733_v61 = vld [vmem:[%s2786_s22 + $0x68] sm:$0x1] }
  0x87   : > { %2592 = vmatmul.msk.bf16.gmra.mxu3 %vm667_vm3, %v3181_v14 }
  0x8c   : > { %2609 = vmatmul.msk.bf16.gmra.mxu0 %vm667_vm3, %v3072_v18 }
  0x8e   : > { %2539 = vmatmul.msk.bf16.gmra.mxu1 %vm667_vm3, %v3181_v14 }
  0x92   : > { %2572 = vmatmul.msk.bf16.gmra.mxu2 %vm667_vm3, %v3195_v32 }
  0x97   : > { %2593 = vmatmul.msk.bf16.gmra.mxu3 %vm667_vm3, %v3201_v13 }
  0x9c   : > { %2610 = vmatmul.msk.bf16.gmra.mxu0 %vm667_vm3, %v3162_v1 }
  0x9e   : > { %2540 = vmatmul.msk.bf16.gmra.mxu1 %vm667_vm3, %v3201_v13 }
  0xa2   : > { %v3218_v6 = vpop.f32.mrf.mxu1  ;;  %2573 = vmatmul.msk.bf16.gmra.mxu2 %vm667_vm3, %v3215_v34 }
  0xa7   : > { %2594 = vmatmul.msk.bf16.gmra.mxu3 %vm667_vm3, %v3223_v37 }
  0xaa   : > { %v3235_v53 = vpop.f32.mrf.mxu1 }
  0xab   : > { %v3233_v3 = vpop.f32.mrf.mxu2 }
  0xac   : > { %2611 = vmatmul.msk.bf16.gmra.mxu0 %vm667_vm3, %v2836_v58 }
  0xae   : > { %2541 = vmatmul.msk.bf16.gmra.mxu1 %vm667_vm3, %v3223_v37 }
  0xaf   : > { %v3246_v56 = vpop.f32.mrf.mxu3 }
  0xb0   : > { %v3241_v2 = vpop.f32.mrf.mxu0  ;;  %3936 = vst [vmem:[#allocation15_spill] sm:$0xff] %v3246_v56 }
  0xb2   : > { %2574 = vmatmul.msk.bf16.gmra.mxu2 %vm667_vm3, %v3243_v5 }
  0xb3   : > { %v3255_v17 = vpop.f32.mrf.mxu2 }
  0xb5   : > { %v3257_v55 = vpop.f32.mrf.mxu1 }
  0xb7   : > { %2595 = vmatmul.msk.bf16.gmra.mxu3 %vm667_vm3, %v3251_v57  ;;  %v3267_v21 = vpop.f32.mrf.mxu3 }
  0xb8   : > { %v3265_v41 = vpop.f32.mrf.mxu0  ;;  %3937 = vst [vmem:[#allocation16_spill] sm:$0xff] %v3267_v21 }
  0xbc   : > { %2612 = vmatmul.msk.bf16.gmra.mxu0 %vm667_vm3, %v2918_v40 }
  0xbd   : > { %v3271_v50 = vpop.f32.mrf.mxu1 }
  0xbe   : > { %2542 = vmatmul.msk.bf16.gmra.mxu1 %vm667_vm3, %v3251_v57 }
  0xbf   : > { %v3277_v54 = vpop.f32.mrf.mxu2 }
  0xc2   : > { %2575 = vmatmul.msk.bf16.gmra.mxu2 %vm667_vm3, %v3275_v47 }
  0xc3   : > { %v3280_v11 = vpop.f32.mrf.mxu0 }
  0xc5   : > { %v3289_v4 = vpop.f32.mrf.mxu3 }
  0xc6   : > { %3939 = vst [vmem:[#allocation18_spill] sm:$0xff] %v3289_v4  ;;  %v3354_v4 = vld [vmem:[%s2786_s22 + $0x60] sm:$0xff] }
  0xc7   : > { %v3291_v43 = vpop.f32.mrf.mxu1  ;;  %2596 = vmatmul.msk.bf16.gmra.mxu3 %vm667_vm3, %v3285_v39  ;;  %v3299_v30 = vpop.f32.mrf.mxu2  ;;  %3946 = vst [vmem:[#allocation25_spill] sm:$0xff] %v3354_v4 }
  0xcb   : > { %v3303_v15 = vpop.f32.mrf.mxu0 }
  0xcc   : > { %2613 = vmatmul.msk.bf16.gmra.mxu0 %vm667_vm3, %v3005_v33 }
  0xcd   : > { %v3305_v52 = vpop.f32.mrf.mxu3 }
  0xce   : > { %3940 = vst [vmem:[#allocation19_spill] sm:$0xff] %v3305_v52  ;;  %2543 = vmatmul.msk.bf16.gmra.mxu1 %vm667_vm3, %v3285_v39  ;;  %v1109_v52 = vrot.slane %v2733_v61, 5 }
  0xcf   : > { %v3312_v10 = vpop.f32.mrf.mxu1 }
  0xd2   : > { %2576 = vmatmul.msk.bf16.gmra.mxu2 %vm667_vm3, %v3309_v59 }
  0xd3   : > { %v3316_v60 = vpop.f32.mrf.mxu2 }
  0xd6   : > { %v3323_v19 = vpop.f32.mrf.mxu0 }
  0xd7   : > { %v3325_v7 = vpop.f32.mrf.mxu3  ;;  %2597 = vmatmul.msk.bf16.gmra.mxu3 %vm667_vm3, %v3319_v31 }
  0xd8   : > { %3943 = vst [vmem:[#allocation22_spill] sm:$0xff] %v3325_v7  ;;  %v3341_v7 = vpack.c.b16 %v1177_v48, %v1176_v63 }
  0xda   : > { %3944 = vst [vmem:[#allocation23_spill] sm:$0xff] %v3341_v7 }
  0xdb   : > { %v3333_v9 = vpop.f32.mrf.mxu1  ;;  %v3335_v8 = vpop.f32.mrf.mxu2 }
  0xdc   : > { %2614 = vmatmul.msk.bf16.gmra.mxu0 %vm667_vm3, %v3093_v28  ;;  %v2734_v28 = vld [vmem:[%s2786_s22 + $0x60] sm:$0xf] }
  0xdd   : > { %v2561_v21 = vrot.slane %v2734_v28, 9 }
  0xde   : > { %2544 = vmatmul.msk.bf16.gmra.mxu1 %vm667_vm3, %v3319_v31  ;;  %v3343_v26 = vpop.f32.mrf.mxu0  ;;  %v1108_v31 = vrot.slane %v1106_v51, 4 }
  0xdf   : > { %v3346_v20 = vpop.f32.mrf.mxu3  ;;  %v1107_v48 = vsel %vm3134_vm7, %v2561_v21, %v1106_v51 }
  0xe0   : > { %3945 = vst [vmem:[#allocation24_spill] sm:$0xff] %v3346_v20  ;;  %v1110_v22 = vsel %vm3134_vm7, %v1108_v31, %v1109_v52  ;;  %v1178_v59 = vunpack.c.l.b16 %v1107_v48  ;;  %v1113_v52 = vrot.slane %v2891_v45, 5  ;;  %v3387_v48 = vld [vmem:[%s2786_s22 + $0x6c] sm:$0xff] }
  0xe1   : > { %v1179_v28 = vunpack.c.l.b16 %v1110_v22 }
  0xe2   : > { %2577 = vmatmul.msk.bf16.gmra.mxu2 %vm667_vm3, %v3341_v7 }
  0xe3   : > { %v3350_v29 = vpop.f32.mrf.mxu1  ;;  %v3376_v21 = vpack.c.b16 %v1179_v28, %v1178_v59  ;;  %v1115_v59 = vrot.slane %v1113_v52, 4 }
  0xe5   : > { %v3357_v63 = vpop.f32.mrf.mxu2  ;;  %3949 = vst [vmem:[#allocation28_spill] sm:$0xff] %v3376_v21 }
  0xe7   : > { %2598 = vmatmul.msk.bf16.gmra.mxu3 %vm667_vm3, %v3354_v4 }
  0xe9   : > { %v3365_v20 = vpop.f32.mrf.mxu0 }
  0xea   : > { %v3367_v61 = vpop.f32.mrf.mxu3 }
  0xeb   : > { %3947 = vst [vmem:[#allocation26_spill] sm:$0xff] %v3367_v61  ;;  %v949_v7 = vpop.f32.mrf.mxu1  ;;  %v2562_v61 = vrot.slane %v2882_v36, 9 }
  0xec   : > { %v950_v33 = vadd.f32 %v949_v7, %v3241_v2  ;;  %2615 = vmatmul.msk.bf16.gmra.mxu0 %vm667_vm3, %v2855_v12  ;;  %v1116_v7 = vrot.slane %v2898_v49, 5 }
  0xed   : > { %v3372_v56 = vpop.f32.mrf.mxu2  ;;  %v1114_v45 = vsel %vm3134_vm7, %v2562_v61, %v1113_v52 }
  0xee   : > { %3948 = vst [vmem:[#allocation27_spill] sm:$0xff] %v3372_v56  ;;  %2545 = vmatmul.msk.bf16.gmra.mxu1 %vm667_vm3, %v3354_v4  ;;  %v1180_v39 = vunpack.c.l.b16 %v1114_v45 }
  0xf1   : > { %v3379_v31 = vpop.f32.mrf.mxu0 }
  0xf2   : > { %v3381_v51 = vpop.f32.mrf.mxu3  ;;  %2578 = vmatmul.msk.bf16.gmra.mxu2 %vm667_vm3, %v3376_v21 }
  0xf3   : > { %3950 = vst [vmem:[#allocation29_spill] sm:$0xff] %v3381_v51  ;;  %v951_v2 = vpop.f32.mrf.mxu1  ;;  %v1117_v51 = vsel %vm3134_vm7, %v1115_v59, %v1116_v7  ;;  %v1120_v7 = vrot.slane %v2967_v42, 5 }
  0xf4   : > { %v952_v22 = vadd.f32 %v951_v2, %v3265_v41  ;;  %v1181_v56 = vunpack.c.l.b16 %v1117_v51  ;;  %v1123_v51 = vrot.slane %v2970_v46, 5 }
  0xf5   : > { %v1270_v28 = vpop.f32.mrf.mxu2 }
  0xf6   : > { %v1350_v12 = vadd.f32 %v1270_v28, %v950_v33  ;;  %v3404_v2 = vpack.c.b16 %v1181_v56, %v1180_v39  ;;  %v3411_v28 = vld [vmem:[%s2786_s22 + $0x78] sm:$0xff] }
  0xf7   : > { %2599 = vmatmul.msk.bf16.gmra.mxu3 %vm667_vm3, %v3387_v48 }
  0xf9   : > { %v1560_v21 = vpop.f32.mrf.mxu0 }
  0xfa   : > { %v1404_v49 = vpop.f32.mrf.mxu3 }
  0xfb   : > { %v954_v4 = vpop.f32.mrf.mxu1  ;;  %v1484_v41 = vadd.f32 %v1404_v49, %v1350_v12 }
  0xfc   : > { %v955_v36 = vadd.f32 %v954_v4, %v3280_v11  ;;  %2616 = vmatmul.msk.bf16.gmra.mxu0 %vm667_vm3, %v2940_v0 }
  0xfd   : > { %v1272_v33 = vpop.f32.mrf.mxu2  ;;  %v3402_v61 = vadd.f32 %v1560_v21, %v1484_v41  ;;  %v2563_v21 = vrot.slane %v2959_v23, 9 }
  0xfe   : > { %2546 = vmatmul.msk.bf16.gmra.mxu1 %vm667_vm3, %v3387_v48  ;;  %v1351_v52 = vadd.f32 %v1272_v33, %v952_v22  ;;  %v1122_v22 = vrot.slane %v1120_v7, 4 }
  0xff   : > { %v1121_v46 = vsel %vm3134_vm7, %v2563_v21, %v1120_v7 }
 0x100   : > { %v1124_v49 = vsel %vm3134_vm7, %v1122_v22, %v1123_v51  ;;  %v1130_v22 = vrot.slane %v3061_v38, 5 }
 0x101   : > { %v1562_v59 = vpop.f32.mrf.mxu0 }
 0x102   : > { %v1406_v12 = vpop.f32.mrf.mxu3  ;;  %2579 = vmatmul.msk.bf16.gmra.mxu2 %vm667_vm3, %v3404_v2 }
 0x103   : > { %v956_v11 = vpop.f32.mrf.mxu1  ;;  %v1485_v4 = vadd.f32 %v1406_v12, %v1351_v52  ;;  %v1183_v12 = vunpack.c.l.b16 %v1124_v49 }
 0x104   : > { %v957_v45 = vadd.f32 %v956_v11, %v3303_v15  ;;  %v1182_v15 = vunpack.c.l.b16 %v1121_v46  ;;  %v3437_v46 = vld [vmem:[%s2786_s22 + $0x84] sm:$0xff] }
 0x105   : > { %v1275_v56 = vpop.f32.mrf.mxu2  ;;  %v3415_v39 = vadd.f32 %v1562_v59, %v1485_v4  ;;  %v1127_v4 = vrot.slane %v3054_v27, 5 }
 0x106   : > { %v1352_v42 = vadd.f32 %v1275_v56, %v955_v36  ;;  %v3430_v51 = vpack.c.b16 %v1183_v12, %v1182_v15 }
 0x107   : > { %2600 = vmatmul.msk.bf16.gmra.mxu3 %vm667_vm3, %v3411_v28 }
 0x109   : > { %v1565_v41 = vpop.f32.mrf.mxu0 }
 0x10a   : > { %v1409_v33 = vpop.f32.mrf.mxu3 }
 0x10b   : > { %v959_v52 = vpop.f32.mrf.mxu1  ;;  %v1486_v23 = vadd.f32 %v1409_v33, %v1352_v42 }
 0x10c   : > { %v960_v59 = vadd.f32 %v959_v52, %v3323_v19  ;;  %2617 = vmatmul.msk.bf16.gmra.mxu0 %vm667_vm3, %v3028_v24 }
 0x10d   : > { %v1277_v36 = vpop.f32.mrf.mxu2  ;;  %v3428_v7 = vadd.f32 %v1565_v41, %v1486_v23  ;;  %v3951_v41 = vld [vmem:[#allocation9_spill] sm:$0xff] }
 0x10e   : > { %2547 = vmatmul.msk.bf16.gmra.mxu1 %vm667_vm3, %v3411_v28  ;;  %v1353_v11 = vadd.f32 %v1277_v36, %v957_v45  ;;  %v2564_v33 = vrot.slane %v3951_v41, 9  ;;  %v1129_v45 = vrot.slane %v1127_v4, 4  ;;  %v2735_v41 = vld [vmem:[%s2786_s22 + $0x94] sm:$0xf] }
 0x110   : > { %v1128_v38 = vsel %vm3134_vm7, %v2564_v33, %v1127_v4  ;;  %v1131_v12 = vsel %vm3134_vm7, %v1129_v45, %v1130_v22  ;;  %v1134_v33 = vrot.slane %v2735_v41, 5 }
 0x111   : > { %v1567_v21 = vpop.f32.mrf.mxu0 }
 0x112   : > { %v1411_v56 = vpop.f32.mrf.mxu3  ;;  %2580 = vmatmul.msk.bf16.gmra.mxu2 %vm667_vm3, %v3430_v51 }
 0x113   : > { %v961_v19 = vpop.f32.mrf.mxu1  ;;  %v1487_v42 = vadd.f32 %v1411_v56, %v1353_v11  ;;  %v1184_v11 = vunpack.c.l.b16 %v1128_v38  ;;  %v1185_v56 = vunpack.c.l.b16 %v1131_v12 }
 0x114   : > { %v962_v49 = vadd.f32 %v961_v19, %v3343_v26 }
 0x115   : > { %v1280_v52 = vpop.f32.mrf.mxu2  ;;  %v3441_v15 = vadd.f32 %v1567_v21, %v1487_v42  ;;  %v3456_v42 = vpack.c.b16 %v1185_v56, %v1184_v11 }
 0x116   : > { %v1354_v27 = vadd.f32 %v1280_v52, %v960_v59  ;;  %v2736_v52 = vld [vmem:[%s2786_s22 + $0x98] sm:$0x1] }
 0x117   : > { %3952 = vst [vmem:[#allocation9_spill] sm:$0xff] %v3441_v15  ;;  %2601 = vmatmul.msk.bf16.gmra.mxu3 %vm667_vm3, %v3437_v46  ;;  %v2740_v15 = vld [vmem:[%s2786_s22 + $0x9c] sm:$0xf] }
 0x118   : > { %3954 = vst [vmem:[#allocation31_spill] sm:$0xff] %v3456_v42 }
 0x119   : > { %v1570_v23 = vpop.f32.mrf.mxu0 }
 0x11a   : > { %v1414_v26 = vpop.f32.mrf.mxu3 }
 0x11b   : > { %v964_v36 = vpop.f32.mrf.mxu1  ;;  %v1488_v19 = vadd.f32 %v1414_v26, %v1354_v27  ;;  %v1137_v27 = vrot.slane %v2736_v52, 5  ;;  %v3463_v26 = vld [vmem:[%s2786_s22 + $0x90] sm:$0xff] }
 0x11c   : > { %v965_v21 = vadd.f32 %v964_v36, %v3365_v20  ;;  %2618 = vmatmul.msk.bf16.gmra.mxu0 %vm667_vm3, %v3114_v35  ;;  %3955 = vst [vmem:[#allocation32_spill] sm:$0xff] %v3463_v26 }
 0x11d   : > { %v1282_v59 = vpop.f32.mrf.mxu2  ;;  %v3454_v4 = vadd.f32 %v1570_v23, %v1488_v19  ;;  %v2737_v23 = vld [vmem:[%s2786_s22 + $0x90] sm:$0xf] }
 0x11e   : > { %2548 = vmatmul.msk.bf16.gmra.mxu1 %vm667_vm3, %v3437_v46  ;;  %v1355_v22 = vadd.f32 %v1282_v59, %v962_v49  ;;  %v2565_v19 = vrot.slane %v2737_v23, 9  ;;  %v1136_v49 = vrot.slane %v1134_v33, 4 }
 0x11f   : > { %3953 = vst [vmem:[#allocation30_spill] sm:$0xff] %v3454_v4 }
 0x120   : > { %v1135_v41 = vsel %vm3134_vm7, %v2565_v19, %v1134_v33  ;;  %v2738_v19 = vld [vmem:[%s2786_s22 + $0xa0] sm:$0xf] }
 0x121   : > { %v1572_v45 = vpop.f32.mrf.mxu0 }
 0x122   : > { %v1416_v20 = vpop.f32.mrf.mxu3  ;;  %2581 = vmatmul.msk.bf16.gmra.mxu2 %vm667_vm3, %v3456_v42 }
 0x123   : > { %v966_v38 = vpop.f32.mrf.mxu1  ;;  %v1489_v12 = vadd.f32 %v1416_v20, %v1355_v22  ;;  %v1138_v22 = vsel %vm3134_vm7, %v1136_v49, %v1137_v27  ;;  %v1141_v49 = vrot.slane %v2738_v19, 5 }
 0x124   : > { %v967_v36 = vadd.f32 %v966_v38, %v3379_v31  ;;  %v1186_v38 = vunpack.c.l.b16 %v1135_v41  ;;  %v1187_v23 = vunpack.c.l.b16 %v1138_v22  ;;  %v2739_v22 = vld [vmem:[%s2786_s22 + $0xa4] sm:$0x1] }
 0x125   : > { %v1285_v11 = vpop.f32.mrf.mxu2  ;;  %v3467_v56 = vadd.f32 %v1572_v45, %v1489_v12  ;;  %v3957_v45 = vld [vmem:[#allocation3_spill] sm:$0xff] }
 0x126   : > { %v1356_v59 = vadd.f32 %v1285_v11, %v965_v21  ;;  %v3481_v27 = vpack.c.b16 %v1187_v23, %v1186_v38 }
 0x127   : > { %3956 = vst [vmem:[#allocation33_spill] sm:$0xff] %v3467_v56  ;;  %2602 = vmatmul.msk.bf16.gmra.mxu3 %vm667_vm3, %v3463_v26 }
 0x128   : > { %3959 = vst [vmem:[#allocation35_spill] sm:$0xff] %v3481_v27 }
 0x129   : > { %v1575_v52 = vpop.f32.mrf.mxu0 }
 0x12a   : > { %v1419_v20 = vpop.f32.mrf.mxu3 }
 0x12b   : > { %v969_v31 = vpop.f32.mrf.mxu1  ;;  %v1490_v4 = vadd.f32 %v1419_v20, %v1356_v59  ;;  %v1144_v20 = vrot.slane %v2739_v22, 5 }
 0x12c   : > { %2619 = vmatmul.msk.bf16.gmra.mxu0 %vm667_vm3, %v3957_v45  ;;  %v3488_v45 = vld [vmem:[%s2786_s22 + $0x9c] sm:$0xff] }
 0x12d   : > { %v1287_v21 = vpop.f32.mrf.mxu2  ;;  %v3479_v33 = vadd.f32 %v1575_v52, %v1490_v4  ;;  %3960 = vst [vmem:[#allocation36_spill] sm:$0xff] %v3488_v45  ;;  %v1143_v4 = vrot.slane %v1141_v49, 4 }
 0x12e   : > { %2549 = vmatmul.msk.bf16.gmra.mxu1 %vm667_vm3, %v3463_v26  ;;  %v1357_v12 = vadd.f32 %v1287_v21, %v967_v36  ;;  %v2566_v26 = vrot.slane %v2740_v15, 9  ;;  %v970_v36 = vadd.f32 %v969_v31, %v3218_v6  ;;  %v3962_v31 = vld [vmem:[#allocation4_spill] sm:$0xff] }
 0x12f   : > { %3958 = vst [vmem:[#allocation34_spill] sm:$0xff] %v3479_v33 }
 0x130   : > { %v1142_v21 = vsel %vm3134_vm7, %v2566_v26, %v1141_v49 }
 0x131   : > { %v1577_v11 = vpop.f32.mrf.mxu0  ;;  %v1188_v15 = vunpack.c.l.b16 %v1142_v21 }
 0x132   : > { %v1421_v41 = vpop.f32.mrf.mxu3  ;;  %2582 = vmatmul.msk.bf16.gmra.mxu2 %vm667_vm3, %v3481_v27 }
 0x133   : > { %v971_v59 = vpop.f32.mrf.mxu1  ;;  %v1491_v56 = vadd.f32 %v1421_v41, %v1357_v12  ;;  %v1145_v12 = vsel %vm3134_vm7, %v1143_v4, %v1144_v20  ;;  %v3965_v4 = vld [vmem:[#allocation6_spill] sm:$0xff] }
 0x134   : > { %v1189_v33 = vunpack.c.l.b16 %v1145_v12  ;;  %v3966_v12 = vld [vmem:[#allocation7_spill] sm:$0xff] }
 0x135   : > { %v1290_v52 = vpop.f32.mrf.mxu2  ;;  %v3492_v38 = vadd.f32 %v1577_v11, %v1491_v56  ;;  %v972_v56 = vadd.f32 %v971_v59, %v3235_v53  ;;  %v3514_v59 = vld [vmem:[%s2786_s22 + $0xa8] sm:$0xff] }
 0x136   : > { %v1358_v23 = vadd.f32 %v1290_v52, %v970_v36  ;;  %v3507_v20 = vpack.c.b16 %v1189_v33, %v1188_v15  ;;  %v1148_v36 = vrot.slane %v3965_v4, 5  ;;  %3967 = vst [vmem:[#allocation6_spill] sm:$0xff] %v3514_v59 }
 0x137   : > { %3961 = vst [vmem:[#allocation37_spill] sm:$0xff] %v3492_v38  ;;  %2603 = vmatmul.msk.bf16.gmra.mxu3 %vm667_vm3, %v3488_v45  ;;  %v3968_v38 = vld [vmem:[#allocation5_spill] sm:$0xff] }
 0x138   : > { %3964 = vst [vmem:[#allocation39_spill] sm:$0xff] %v3507_v20 }
 0x139   : > { %v1580_v19 = vpop.f32.mrf.mxu0 }
 0x13a   : > { %v1424_v41 = vpop.f32.mrf.mxu3 }
 0x13b   : > { %v974_v22 = vpop.f32.mrf.mxu1  ;;  %v1492_v6 = vadd.f32 %v1424_v41, %v1358_v23  ;;  %v1151_v41 = vrot.slane %v3966_v12, 5 }
 0x13c   : > { %2620 = vmatmul.msk.bf16.gmra.mxu0 %vm667_vm3, %v3962_v31  ;;  %v2567_v31 = vrot.slane %v3968_v38, 9 }
 0x13d   : > { %v1292_v11 = vpop.f32.mrf.mxu2  ;;  %v3505_v26 = vadd.f32 %v1580_v19, %v1492_v6  ;;  %v1150_v19 = vrot.slane %v1148_v36, 4  ;;  %v975_v6 = vadd.f32 %v974_v22, %v3257_v55 }
 0x13e   : > { %2550 = vmatmul.msk.bf16.gmra.mxu1 %vm667_vm3, %v3488_v45  ;;  %v1359_v49 = vadd.f32 %v1292_v11, %v972_v56  ;;  %v1149_v11 = vsel %vm3134_vm7, %v2567_v31, %v1148_v36  ;;  %v3532_v31 = vld [vmem:[%s2786_s22 + $0xc0] sm:$0xf] }
 0x13f   : > { %3963 = vst [vmem:[#allocation38_spill] sm:$0xff] %v3505_v26  ;;  %v1190_v12 = vunpack.c.l.b16 %v1149_v11  ;;  %v3970_v26 = vld [vmem:[#allocation10_spill] sm:$0xff]  ;;  %v1517_v11 = vshrl.u32 %v3532_v31, 16 }
 0x140   : > { %3971 = vst [vmem:[#allocation5_spill] sm:$0xff] %v3532_v31 }
 0x141   : > { %v1582_v52 = vpop.f32.mrf.mxu0 }
 0x142   : > { %v1426_v21 = vpop.f32.mrf.mxu3  ;;  %2583 = vmatmul.msk.bf16.gmra.mxu2 %vm667_vm3, %v3507_v20 }
 0x143   : > { %v976_v23 = vpop.f32.mrf.mxu1  ;;  %v1493_v53 = vadd.f32 %v1426_v21, %v1359_v49  ;;  %v1152_v49 = vsel %vm3134_vm7, %v1150_v19, %v1151_v41 }
 0x144   : > { %v1191_v55 = vunpack.c.l.b16 %v1152_v49 }
 0x145   : > { %v1295_v33 = vpop.f32.mrf.mxu2  ;;  %v3518_v15 = vadd.f32 %v1582_v52, %v1493_v53  ;;  %v977_v52 = vadd.f32 %v976_v23, %v3271_v50  ;;  %v1520_v50 = vshll.u32 %v3532_v31, 16 }
 0x146   : > { %v1360_v56 = vadd.f32 %v1295_v33, %v975_v6  ;;  %v3536_v19 = vpack.c.b16 %v1191_v55, %v1190_v12  ;;  %v3539_v6 = vld [vmem:[%s2786_s22 + $0xc4] sm:$0xf]  ;;  %v3975_v33 = vld [vmem:[#allocation12_spill] sm:$0xff]  ;;  %v3976_v12 = vld [vmem:[#allocation13_spill] sm:$0xff] }
 0x147   : > { %3969 = vst [vmem:[#allocation7_spill] sm:$0xff] %v3518_v15  ;;  %2604 = vmatmul.msk.bf16.gmra.mxu3 %vm667_vm3, %v3514_v59  ;;  %v1526_v23 = vshll.u32 %v3539_v6, 16  ;;  %v1158_v55 = vrot.slane %v3976_v12, 5  ;;  %v1522_v20 = vrot.slane %v1520_v50, 5 }
 0x148   : > { %3973 = vst [vmem:[#allocation41_spill] sm:$0xff] %v3536_v19 }
 0x149   : > { %v1585_v4 = vpop.f32.mrf.mxu0  ;;  %3974 = vst [vmem:[#allocation42_spill] sm:$0xff] %v3539_v6 }
 0x14a   : > { %v1429_v38 = vpop.f32.mrf.mxu3 }
 0x14b   : > { %v979_v21 = vpop.f32.mrf.mxu1  ;;  %v1494_v22 = vadd.f32 %v1429_v38, %v1360_v56  ;;  %v1155_v56 = vrot.slane %v3975_v33, 5  ;;  %v1530_v38 = vshrl.u32 %v3539_v6, 16  ;;  %v1528_v6 = vrot.slane %v1526_v23, 5 }
 0x14c   : > { %2621 = vmatmul.msk.bf16.gmra.mxu0 %vm667_vm3, %v3970_v26  ;;  %v980_v31 = vadd.f32 %v979_v21, %v3291_v43  ;;  %v1519_v26 = vrot.slane %v1517_v11, 4 }
 0x14d   : > { %v1297_v53 = vpop.f32.mrf.mxu2  ;;  %v3534_v36 = vadd.f32 %v1585_v4, %v1494_v22  ;;  %v1532_v45 = vrot.slane %v1530_v38, 4 }
 0x14e   : > { %2551 = vmatmul.msk.bf16.gmra.mxu1 %vm667_vm3, %v3514_v59  ;;  %v1361_v41 = vadd.f32 %v1297_v53, %v977_v52  ;;  %v3550_v52 = vld [vmem:[%s2786_s22 + $0xb4] sm:$0xff]  ;;  %v3977_v53 = vld [vmem:[#allocation11_spill] sm:$0xff]  ;;  %v1523_v21 = vor.u32 %v1522_v20, %v1519_v26 }
 0x14f   : > { %3972 = vst [vmem:[#allocation40_spill] sm:$0xff] %v3534_v36  ;;  %v2568_v33 = vrot.slane %v3977_v53, 9  ;;  %v1157_v36 = vrot.slane %v1155_v56, 4  ;;  %v1533_v11 = vor.u32 %v1532_v45, %v1528_v6 }
 0x151   : > { %v1587_v49 = vpop.f32.mrf.mxu0  ;;  %v1534_v26 = vrot.slane %v1533_v11, 4 }
 0x152   : > { %v1431_v15 = vpop.f32.mrf.mxu3  ;;  %2584 = vmatmul.msk.bf16.gmra.mxu2 %vm667_vm3, %v3536_v19  ;;  %v3557_v19 = vld [vmem:[%s2786_s22 + $0xc8] sm:$0x1] }
 0x153   : > { %v981_v4 = vpop.f32.mrf.mxu1  ;;  %v1495_v22 = vadd.f32 %v1431_v15, %v1361_v41  ;;  %v1156_v15 = vsel %vm3134_vm7, %v2568_v33, %v1155_v56  ;;  %v1159_v41 = vsel %vm3134_vm7, %v1157_v36, %v1158_v55  ;;  %v1536_v50 = vshll.u32 %v3557_v19, 16 }
 0x154   : > { %v1192_v38 = vunpack.c.l.b16 %v1156_v15  ;;  %v982_v12 = vadd.f32 %v981_v4, %v3312_v10  ;;  %v1524_v36 = vrot.slane %v1523_v21, 4 }
 0x155   : > { %v1300_v59 = vpop.f32.mrf.mxu2  ;;  %v3554_v27 = vadd.f32 %v1587_v49, %v1495_v22  ;;  %v1538_v45 = vrot.slane %v1536_v50, 5 }
 0x156   : > { %v1362_v42 = vadd.f32 %v1300_v59, %v980_v31  ;;  %v1193_v59 = vunpack.c.l.b16 %v1159_v41  ;;  %v3582_v41 = vld [vmem:[%s2786_s22 + $0xc0] sm:$0xff] }
 0x157   : > { %2605 = vmatmul.msk.bf16.gmra.mxu3 %vm667_vm3, %v3550_v52  ;;  %v1539_v10 = vsel %vm2815_vm4, %v1534_v26, %v1538_v45 }
 0x158   : > { %v3573_v22 = vpack.c.b16 %v1193_v59, %v1192_v38  ;;  %v1543_v11 = vunpack.c.l.b16 %v1539_v10 }
 0x159   : > { %v1590_v43 = vpop.f32.mrf.mxu0 }
 0x15a   : > { %v1434_v23 = vpop.f32.mrf.mxu3 }
 0x15b   : > { %v984_v49 = vpop.f32.mrf.mxu1  ;;  %v1496_v31 = vadd.f32 %v1434_v23, %v1362_v42  ;;  %v1529_v42 = vsel %vm2815_vm4, %v1524_v36, %v1528_v6 }
 0x15c   : > { %2622 = vmatmul.msk.bf16.gmra.mxu0 %vm667_vm3, %v3142_v62  ;;  %v1542_v21 = vunpack.c.l.b16 %v1529_v42 }
 0x15d   : > { %v1302_v56 = vpop.f32.mrf.mxu2  ;;  %v3571_v20 = vadd.f32 %v1590_v43, %v1496_v31  ;;  %v985_v43 = vadd.f32 %v984_v49, %v3333_v9 }
 0x15e   : > { %2552 = vmatmul.msk.bf16.gmra.mxu1 %vm667_vm3, %v3550_v52  ;;  %v1363_v55 = vadd.f32 %v1302_v56, %v982_v12  ;;  %v3589_v6 = vpack.c.b16 %v1543_v11, %v1542_v21 }
 0x161   : > { %v1592_v53 = vpop.f32.mrf.mxu0 }
 0x162   : > { %v1436_v4 = vpop.f32.mrf.mxu3  ;;  %2585 = vmatmul.msk.bf16.gmra.mxu2 %vm667_vm3, %v3573_v22 }
 0x163   : > { %v986_v33 = vpop.f32.mrf.mxu1  ;;  %v1497_v15 = vadd.f32 %v1436_v4, %v1363_v55 }
 0x164   : > { %v987_v9 = vadd.f32 %v986_v33, %v3350_v29 }
 0x165   : > { %v1305_v50 = vpop.f32.mrf.mxu2  ;;  %v3585_v23 = vadd.f32 %v1592_v53, %v1497_v15 }
 0x166   : > { %v1364_v38 = vadd.f32 %v1305_v50, %v985_v43 }
 0x167   : > { %2606 = vmatmul.msk.bf16.gmra.mxu3 %vm667_vm3, %v3582_v41 }
 0x169   : > { %v1595_v59 = vpop.f32.mrf.mxu0 }
 0x16a   : > { %v1439_v31 = vpop.f32.mrf.mxu3 }
 0x16b   : > { %v989_v12 = vpop.f32.mrf.mxu1  ;;  %v1498_v56 = vadd.f32 %v1439_v31, %v1364_v38 }
 0x16c   : > { %2623 = vmatmul.msk.bf16.gmra.mxu0 %vm667_vm3, %v3589_v6  ;;  %v990_v10 = vadd.f32 %v989_v12, %v3233_v3 }
 0x16d   : > { %v1307_v49 = vpop.f32.mrf.mxu2  ;;  %v3596_v36 = vadd.f32 %v1595_v59, %v1498_v56 }
 0x16e   : > { %2626 = vmatmul.msk.bf16.vlgmr.msra.gmra.mxu1 %vm667_vm3, %v3169_v44  ;;  %v1365_v26 = vadd.f32 %v1307_v49, %v987_v9 }
 0x171   : > { %v1597_v45 = vpop.f32.mrf.mxu0 }
 0x172   : > { %v1441_v55 = vpop.f32.mrf.mxu3  ;;  %2647 = vmatmul.msk.bf16.vlgmr.msra.gmra.mxu2 %vm667_vm3, %v3181_v14 }
 0x173   : > { %v991_v53 = vpop.f32.mrf.mxu1  ;;  %v1499_v42 = vadd.f32 %v1441_v55, %v1365_v26 }
 0x174   : > { %v992_v14 = vadd.f32 %v991_v53, %v3255_v17 }
 0x175   : > { %v1310_v4 = vpop.f32.mrf.mxu2  ;;  %v3601_v15 = vadd.f32 %v1597_v45, %v1499_v42 }
 0x176   : > { %v1366_v29 = vadd.f32 %v1310_v4, %v990_v10 }
 0x177   : > { %2664 = vmatmul.msk.bf16.vlgmr.msra.gmra.mxu3 %vm667_vm3, %v3072_v18 }
 0x179   : > { %v1600_v44 = vpop.f32.mrf.mxu0 }
 0x17a   : > { %v1444_v33 = vpop.f32.mrf.mxu3 }
 0x17b   : > { %v994_v43 = vpop.f32.mrf.mxu1  ;;  %v1500_v21 = vadd.f32 %v1444_v33, %v1366_v29 }
 0x17c   : > { %2682 = vmatmul.msk.bf16.vlgmr.msra.gmra.mxu0 %vm667_vm3, %v3195_v32  ;;  %v995_v12 = vadd.f32 %v994_v43, %v3277_v54 }
 0x17d   : > { %v1312_v11 = vpop.f32.mrf.mxu2  ;;  %v3610_v3 = vadd.f32 %v1600_v44, %v1500_v21 }
 0x17e   : > { %2627 = vmatmul.msk.bf16.gmra.mxu1 %vm667_vm3, %v3195_v32  ;;  %v1367_v50 = vadd.f32 %v1312_v11, %v992_v14 }
 0x181   : > { %v1602_v38 = vpop.f32.mrf.mxu0 }
 0x182   : > { %v1446_v59 = vpop.f32.mrf.mxu3  ;;  %2648 = vmatmul.msk.bf16.gmra.mxu2 %vm667_vm3, %v3201_v13 }
 0x183   : > { %v996_v18 = vpop.f32.mrf.mxu1  ;;  %v1501_v31 = vadd.f32 %v1446_v59, %v1367_v50 }
 0x184   : > { %v997_v13 = vadd.f32 %v996_v18, %v3299_v30 }
 0x185   : > { %v1315_v56 = vpop.f32.mrf.mxu2  ;;  %v3615_v9 = vadd.f32 %v1602_v38, %v1501_v31 }
 0x186   : > { %v1368_v17 = vadd.f32 %v1315_v56, %v995_v12 }
 0x187   : > { %2665 = vmatmul.msk.bf16.gmra.mxu3 %vm667_vm3, %v3162_v1 }
 0x189   : > { %v1605_v32 = vpop.f32.mrf.mxu0 }
 0x18a   : > { %v1449_v49 = vpop.f32.mrf.mxu3 }
 0x18b   : > { %v999_v26 = vpop.f32.mrf.mxu1  ;;  %v1502_v45 = vadd.f32 %v1449_v49, %v1368_v17 }
 0x18c   : > { %2683 = vmatmul.msk.bf16.gmra.mxu0 %vm667_vm3, %v3215_v34  ;;  %v1000_v29 = vadd.f32 %v999_v26, %v3316_v60  ;;  %v3978_v26 = vld [vmem:[#allocation27_spill] sm:$0xff] }
 0x18d   : > { %v1317_v55 = vpop.f32.mrf.mxu2  ;;  %v3624_v54 = vadd.f32 %v1605_v32, %v1502_v45 }
 0x18e   : > { %2628 = vmatmul.msk.bf16.gmra.mxu1 %vm667_vm3, %v3215_v34  ;;  %v1369_v53 = vadd.f32 %v1317_v55, %v997_v13 }
 0x191   : > { %v1607_v42 = vpop.f32.mrf.mxu0 }
 0x192   : > { %v1451_v10 = vpop.f32.mrf.mxu3  ;;  %2649 = vmatmul.msk.bf16.gmra.mxu2 %vm667_vm3, %v3223_v37 }
 0x193   : > { %v1001_v1 = vpop.f32.mrf.mxu1  ;;  %v1503_v4 = vadd.f32 %v1451_v10, %v1369_v53 }
 0x194   : > { %v1002_v37 = vadd.f32 %v1001_v1, %v3335_v8  ;;  %v3980_v1 = vld [vmem:[#allocation15_spill] sm:$0xff] }
 0x195   : > { %v1320_v44 = vpop.f32.mrf.mxu2  ;;  %v3629_v33 = vadd.f32 %v1607_v42, %v1503_v4  ;;  %v3979_v42 = vld [vmem:[#allocation17_spill] sm:$0xff] }
 0x196   : > { %v1370_v30 = vadd.f32 %v1320_v44, %v1000_v29 }
 0x197   : > { %2666 = vmatmul.msk.bf16.gmra.mxu3 %vm667_vm3, %v2836_v58 }
 0x199   : > { %v1610_v34 = vpop.f32.mrf.mxu0 }
 0x19a   : > { %v1454_v43 = vpop.f32.mrf.mxu3 }
 0x19b   : > { %v1004_v21 = vpop.f32.mrf.mxu1  ;;  %v1504_v14 = vadd.f32 %v1454_v43, %v1370_v30 }
 0x19c   : > { %2684 = vmatmul.msk.bf16.gmra.mxu0 %vm667_vm3, %v3243_v5  ;;  %v1005_v31 = vadd.f32 %v1004_v21, %v3357_v63 }
 0x19d   : > { %v1322_v11 = vpop.f32.mrf.mxu2  ;;  %v3638_v60 = vadd.f32 %v1610_v34, %v1504_v14  ;;  %v3981_v34 = vld [vmem:[#allocation8_spill] sm:$0xff] }
 0x19e   : > { %2629 = vmatmul.msk.bf16.gmra.mxu1 %vm667_vm3, %v3243_v5  ;;  %v1371_v50 = vadd.f32 %v1322_v11, %v1002_v37  ;;  %v3982_v37 = vld [vmem:[#allocation20_spill] sm:$0xff] }
 0x19f   : > { %v3983_v11 = vld [vmem:[#allocation16_spill] sm:$0xff] }
 0x1a1   : > { %v1612_v38 = vpop.f32.mrf.mxu0 }
 0x1a2   : > { %v1456_v59 = vpop.f32.mrf.mxu3  ;;  %2650 = vmatmul.msk.bf16.gmra.mxu2 %vm667_vm3, %v3251_v57 }
 0x1a3   : > { %v1006_v58 = vpop.f32.mrf.mxu1  ;;  %v1505_v18 = vadd.f32 %v1456_v59, %v1371_v50 }
 0x1a4   : > { %v1007_v57 = vadd.f32 %v1006_v58, %v3978_v26 }
 0x1a5   : > { %v1325_v12 = vpop.f32.mrf.mxu2  ;;  %v3643_v56 = vadd.f32 %v1612_v38, %v1505_v18 }
 0x1a6   : > { %v1372_v8 = vadd.f32 %v1325_v12, %v1005_v31  ;;  %v3984_v12 = vld [vmem:[#allocation21_spill] sm:$0xff] }
 0x1a7   : > { %2667 = vmatmul.msk.bf16.gmra.mxu3 %vm667_vm3, %v2918_v40 }
 0x1a9   : > { %v1615_v5 = vpop.f32.mrf.mxu0 }
 0x1aa   : > { %v1459_v17 = vpop.f32.mrf.mxu3 }
 0x1ab   : > { %v1009_v32 = vpop.f32.mrf.mxu1  ;;  %v1506_v49 = vadd.f32 %v1459_v17, %v1372_v8  ;;  %v3985_v17 = vld [vmem:[#allocation18_spill] sm:$0xff] }
 0x1ac   : > { %2685 = vmatmul.msk.bf16.gmra.mxu0 %vm667_vm3, %v3275_v47  ;;  %v1010_v4 = vadd.f32 %v1009_v32, %v3980_v1 }
 0x1ad   : > { %v1327_v45 = vpop.f32.mrf.mxu2  ;;  %v3652_v63 = vadd.f32 %v1615_v5, %v1506_v49 }
 0x1ae   : > { %2630 = vmatmul.msk.bf16.gmra.mxu1 %vm667_vm3, %v3275_v47  ;;  %v1373_v13 = vadd.f32 %v1327_v45, %v1007_v57  ;;  %v3986_v45 = vld [vmem:[#allocation14_spill] sm:$0xff] }
 0x1b1   : > { %v1617_v55 = vpop.f32.mrf.mxu0 }
 0x1b2   : > { %v1461_v53 = vpop.f32.mrf.mxu3  ;;  %2651 = vmatmul.msk.bf16.gmra.mxu2 %vm667_vm3, %v3979_v42 }
 0x1b3   : > { %v1011_v40 = vpop.f32.mrf.mxu1  ;;  %v1507_v10 = vadd.f32 %v1461_v53, %v1373_v13 }
 0x1b4   : > { %v1012_v50 = vadd.f32 %v1011_v40, %v3983_v11  ;;  %v3987_v40 = vld [vmem:[#allocation23_spill] sm:$0xff] }
 0x1b5   : > { %v1330_v29 = vpop.f32.mrf.mxu2  ;;  %v3657_v44 = vadd.f32 %v1617_v55, %v1507_v10  ;;  %v3988_v10 = vld [vmem:[#allocation19_spill] sm:$0xff] }
 0x1b6   : > { %v1374_v30 = vadd.f32 %v1330_v29, %v1010_v4 }
 0x1b7   : > { %2668 = vmatmul.msk.bf16.gmra.mxu3 %vm667_vm3, %v3981_v34 }
 0x1b9   : > { %v1620_v47 = vpop.f32.mrf.mxu0 }
 0x1ba   : > { %v1464_v43 = vpop.f32.mrf.mxu3 }
 0x1bb   : > { %v1014_v21 = vpop.f32.mrf.mxu1  ;;  %v1508_v14 = vadd.f32 %v1464_v43, %v1374_v30  ;;  %v3989_v43 = vld [vmem:[#allocation25_spill] sm:$0xff] }
 0x1bc   : > { %2686 = vmatmul.msk.bf16.gmra.mxu0 %vm667_vm3, %v3982_v37  ;;  %v1015_v32 = vadd.f32 %v1014_v21, %v3985_v17  ;;  %v3992_v17 = vld [vmem:[#allocation28_spill] sm:$0xff] }
 0x1bd   : > { %v1332_v38 = vpop.f32.mrf.mxu2  ;;  %v3666_v59 = vadd.f32 %v1620_v47, %v1508_v14 }
 0x1be   : > { %2631 = vmatmul.msk.bf16.gmra.mxu1 %vm667_vm3, %v3982_v37  ;;  %v1375_v58 = vadd.f32 %v1332_v38, %v1012_v50  ;;  %v3990_v37 = vld [vmem:[#allocation22_spill] sm:$0xff] }
 0x1c1   : > { %v1622_v18 = vpop.f32.mrf.mxu0 }
 0x1c2   : > { %v1466_v31 = vpop.f32.mrf.mxu3  ;;  %2652 = vmatmul.msk.bf16.gmra.mxu2 %vm667_vm3, %v3984_v12 }
 0x1c3   : > { %v1016_v8 = vpop.f32.mrf.mxu1  ;;  %v1509_v5 = vadd.f32 %v1466_v31, %v1375_v58 }
 0x1c4   : > { %v1017_v1 = vadd.f32 %v1016_v8, %v3988_v10  ;;  %v3994_v10 = vld [vmem:[#allocation26_spill] sm:$0xff] }
 0x1c5   : > { %v1335_v49 = vpop.f32.mrf.mxu2  ;;  %v3671_v26 = vadd.f32 %v1622_v18, %v1509_v5  ;;  %v3991_v18 = vld [vmem:[#allocation2_spill] sm:$0xff] }
 0x1c6   : > { %v1376_v57 = vadd.f32 %v1335_v49, %v1015_v32  ;;  %v3993_v32 = vld [vmem:[#allocation24_spill] sm:$0xff] }
 0x1c7   : > { %2669 = vmatmul.msk.bf16.gmra.mxu3 %vm667_vm3, %v3986_v45 }
 0x1c9   : > { %v1625_v13 = vpop.f32.mrf.mxu0 }
 0x1ca   : > { %v1469_v55 = vpop.f32.mrf.mxu3 }
 0x1cb   : > { %v1019_v53 = vpop.f32.mrf.mxu1  ;;  %v1510_v42 = vadd.f32 %v1469_v55, %v1376_v57 }
 0x1cc   : > { %2687 = vmatmul.msk.bf16.gmra.mxu0 %vm667_vm3, %v3987_v40  ;;  %v1020_v11 = vadd.f32 %v1019_v53, %v3990_v37  ;;  %v3995_v37 = vld [vmem:[#allocation29_spill] sm:$0xff] }
 0x1cd   : > { %v1337_v4 = vpop.f32.mrf.mxu2  ;;  %v3680_v29 = vadd.f32 %v1625_v13, %v1510_v42 }
 0x1ce   : > { %2632 = vmatmul.msk.bf16.gmra.mxu1 %vm667_vm3, %v3987_v40  ;;  %v1377_v30 = vadd.f32 %v1337_v4, %v1017_v1 }
 0x1d1   : > { %v1627_v34 = vpop.f32.mrf.mxu0 }
 0x1d2   : > { %v1471_v47 = vpop.f32.mrf.mxu3  ;;  %2653 = vmatmul.msk.bf16.gmra.mxu2 %vm667_vm3, %v3989_v43 }
 0x1d3   : > { %v1021_v21 = vpop.f32.mrf.mxu1  ;;  %v1511_v14 = vadd.f32 %v1471_v47, %v1377_v30 }
 0x1d4   : > { %v1022_v49 = vadd.f32 %v1021_v21, %v3993_v32 }
 0x1d5   : > { %v1340_v50 = vpop.f32.mrf.mxu2  ;;  %v3685_v38 = vadd.f32 %v1627_v34, %v1511_v14 }
 0x1d6   : > { %v1378_v58 = vadd.f32 %v1340_v50, %v1020_v11 }
 0x1d7   : > { %2670 = vmatmul.msk.bf16.gmra.mxu3 %vm667_vm3, %v3991_v18 }
 0x1d9   : > { %v1630_v31 = vpop.f32.mrf.mxu0 }
 0x1da   : > { %v1474_v12 = vpop.f32.mrf.mxu3 }
 0x1db   : > { %v1024_v8 = vpop.f32.mrf.mxu1  ;;  %v1512_v5 = vadd.f32 %v1474_v12, %v1378_v58 }
 0x1dc   : > { %2688 = vmatmul.msk.bf16.gmra.mxu0 %vm667_vm3, %v3992_v17  ;;  %v1025_v1 = vadd.f32 %v1024_v8, %v3994_v10 }
 0x1dd   : > { %v1342_v57 = vpop.f32.mrf.mxu2  ;;  %v3694_v45 = vadd.f32 %v1630_v31, %v1512_v5 }
 0x1de   : > { %2633 = vmatmul.msk.bf16.gmra.mxu1 %vm667_vm3, %v3992_v17  ;;  %v1379_v13 = vadd.f32 %v1342_v57, %v1022_v49 }
 0x1e1   : > { %v1632_v55 = vpop.f32.mrf.mxu0 }
 0x1e2   : > { %v1476_v53 = vpop.f32.mrf.mxu3  ;;  %2654 = vmatmul.msk.bf16.gmra.mxu2 %vm667_vm3, %v3387_v48 }
 0x1e3   : > { %v1026_v42 = vpop.f32.mrf.mxu1  ;;  %v1513_v40 = vadd.f32 %v1476_v53, %v1379_v13 }
 0x1e4   : > { %v1027_v48 = vadd.f32 %v1026_v42, %v3995_v37 }
 0x1e5   : > { %v1345_v4 = vpop.f32.mrf.mxu2  ;;  %v3699_v30 = vadd.f32 %v1632_v55, %v1513_v40 }
 0x1e6   : > { %v1380_v34 = vadd.f32 %v1345_v4, %v1025_v1 }
 0x1e7   : > { %2671 = vmatmul.msk.bf16.gmra.mxu3 %vm667_vm3, %v2940_v0 }
 0x1e9   : > { %v1635_v47 = vpop.f32.mrf.mxu0 }
 0x1ea   : > { %v1479_v43 = vpop.f32.mrf.mxu3 }
 0x1eb   : > { %v1700_v21 = vpop.f32.mrf.mxu1  ;;  %v1514_v14 = vadd.f32 %v1479_v43, %v1380_v34 }
 0x1ec   : > { %2689 = vmatmul.msk.bf16.gmra.mxu0 %vm667_vm3, %v3404_v2  ;;  %v1780_v8 = vadd.f32 %v1700_v21, %v3402_v61 }
 0x1ed   : > { %v1347_v11 = vpop.f32.mrf.mxu2  ;;  %v3708_v50 = vadd.f32 %v1635_v47, %v1514_v14 }
 0x1ee   : > { %2634 = vmatmul.msk.bf16.gmra.mxu1 %vm667_vm3, %v3404_v2  ;;  %v1381_v58 = vadd.f32 %v1347_v11, %v1027_v48  ;;  %v3996_v11 = vld [vmem:[#allocation31_spill] sm:$0xff] }
 0x1f1   : > { %v1637_v18 = vpop.f32.mrf.mxu0 }
 0x1f2   : > { %v1481_v31 = vpop.f32.mrf.mxu3  ;;  %2655 = vmatmul.msk.bf16.gmra.mxu2 %vm667_vm3, %v3411_v28 }
 0x1f3   : > { %v1702_v0 = vpop.f32.mrf.mxu1  ;;  %v1515_v12 = vadd.f32 %v1481_v31, %v1381_v58 }
 0x1f4   : > { %v1781_v55 = vadd.f32 %v1702_v0, %v3415_v39 }
 0x1f5   : > { %v1834_v5 = vpop.f32.mrf.mxu2  ;;  %v3713_v17 = vadd.f32 %v1637_v18, %v1515_v12 }
 0x1f6   : > { %v1914_v2 = vadd.f32 %v1834_v5, %v1780_v8 }
 0x1f7   : > { %2672 = vmatmul.msk.bf16.gmra.mxu3 %vm667_vm3, %v3028_v24 }
 0x1f9   : > { %v2130_v32 = vpop.f32.mrf.mxu0 }
 0x1fa   : > { %v1990_v49 = vpop.f32.mrf.mxu3 }
 0x1fb   : > { %v1705_v57 = vpop.f32.mrf.mxu1  ;;  %v2070_v13 = vadd.f32 %v1990_v49, %v1914_v2 }
 0x1fc   : > { %2690 = vmatmul.msk.bf16.gmra.mxu0 %vm667_vm3, %v3430_v51  ;;  %v1782_v4 = vadd.f32 %v1705_v57, %v3428_v7  ;;  %v3997_v7 = vld [vmem:[#allocation9_spill] sm:$0xff] }
 0x1fd   : > { %v2210_v28 = vadd.f32 %v2130_v32, %v2070_v13  ;;  %v1836_v53 = vpop.f32.mrf.mxu2  ;;  %v3998_v32 = vld [vmem:[#allocation32_spill] sm:$0xff] }
 0x1fe   : > { %2635 = vmatmul.msk.bf16.gmra.mxu1 %vm667_vm3, %v3430_v51  ;;  %v1915_v61 = vadd.f32 %v1836_v53, %v1781_v55 }
 0x1ff   : > { %2242 = vst [vmem:[%s2781_s19] sm:$0xff] %v2210_v28  ;;  %v2315_v47 = vmul.f32 %v2210_v28, %v2210_v28 }
 0x201   : > { %v2132_v42 = vpop.f32.mrf.mxu0 }
 0x202   : > { %v1992_v24 = vpop.f32.mrf.mxu3  ;;  %2656 = vmatmul.msk.bf16.gmra.mxu2 %vm667_vm3, %v3437_v46 }
 0x203   : > { %v1707_v40 = vpop.f32.mrf.mxu1  ;;  %v2071_v10 = vadd.f32 %v1992_v24, %v1915_v61  ;;  %v4000_v24 = vld [vmem:[#allocation3_spill] sm:$0xff] }
 0x204   : > { %v1783_v18 = vadd.f32 %v1707_v40, %v3997_v7 }
 0x205   : > { %v2211_v1 = vadd.f32 %v2132_v42, %v2071_v10  ;;  %v1839_v34 = vpop.f32.mrf.mxu2 }
 0x206   : > { %v1916_v51 = vadd.f32 %v1839_v34, %v1782_v4 }
 0x207   : > { %2243 = vst [vmem:[%s2781_s19 + $0x8] sm:$0xff] %v2211_v1  ;;  %v2275_v39 = vadd.f32 %v2211_v1, %v2210_v28  ;;  %v2316_v43 = vmul.f32 %v2211_v1, %v2211_v1  ;;  %2673 = vmatmul.msk.bf16.gmra.mxu3 %vm667_vm3, %v3114_v35  ;;  %v3999_v28 = vld [vmem:[#allocation30_spill] sm:$0xff] }
 0x209   : > { %v2347_v21 = vadd.f32 %v2316_v43, %v2315_v47  ;;  %v2135_v14 = vpop.f32.mrf.mxu0 }
 0x20a   : > { %v1995_v37 = vpop.f32.mrf.mxu3 }
 0x20b   : > { %v1710_v48 = vpop.f32.mrf.mxu1  ;;  %v2072_v46 = vadd.f32 %v1995_v37, %v1916_v51  ;;  %v4002_v51 = vld [vmem:[#allocation33_spill] sm:$0xff] }
 0x20c   : > { %2691 = vmatmul.msk.bf16.gmra.mxu0 %vm667_vm3, %v3996_v11  ;;  %v1784_v55 = vadd.f32 %v1710_v48, %v3999_v28 }
 0x20d   : > { %v2212_v58 = vadd.f32 %v2135_v14, %v2072_v46  ;;  %v1841_v31 = vpop.f32.mrf.mxu2 }
 0x20e   : > { %2636 = vmatmul.msk.bf16.gmra.mxu1 %vm667_vm3, %v3996_v11  ;;  %v1917_v12 = vadd.f32 %v1841_v31, %v1783_v18  ;;  %v4003_v18 = vld [vmem:[#allocation36_spill] sm:$0xff] }
 0x20f   : > { %2244 = vst [vmem:[%s2781_s19 + $0x10] sm:$0xff] %v2212_v58  ;;  %v2276_v0 = vadd.f32 %v2275_v39, %v2212_v58  ;;  %v2317_v35 = vmul.f32 %v2212_v58, %v2212_v58  ;;  %v4001_v39 = vld [vmem:[#allocation35_spill] sm:$0xff] }
 0x211   : > { %v2348_v8 = vadd.f32 %v2347_v21, %v2317_v35  ;;  %v2137_v5 = vpop.f32.mrf.mxu0 }
 0x212   : > { %v1997_v2 = vpop.f32.mrf.mxu3  ;;  %2657 = vmatmul.msk.bf16.gmra.mxu2 %vm667_vm3, %v3998_v32 }
 0x213   : > { %v1712_v49 = vpop.f32.mrf.mxu1  ;;  %v2073_v57 = vadd.f32 %v1997_v2, %v1917_v12  ;;  %v4004_v12 = vld [vmem:[#allocation34_spill] sm:$0xff] }
 0x214   : > { %v1785_v21 = vadd.f32 %v1712_v49, %v4002_v51  ;;  %v4005_v49 = vld [vmem:[#allocation4_spill] sm:$0xff] }
 0x215   : > { %v2213_v13 = vadd.f32 %v2137_v5, %v2073_v57  ;;  %v1844_v53 = vpop.f32.mrf.mxu2 }
 0x216   : > { %v1918_v40 = vadd.f32 %v1844_v53, %v1784_v55 }
 0x217   : > { %2245 = vst [vmem:[%s2781_s19 + $0x18] sm:$0xff] %v2213_v13  ;;  %v2277_v61 = vadd.f32 %v2276_v0, %v2213_v13  ;;  %v2318_v42 = vmul.f32 %v2213_v13, %v2213_v13  ;;  %2674 = vmatmul.msk.bf16.gmra.mxu3 %vm667_vm3, %v4000_v24 }
 0x219   : > { %v2349_v10 = vadd.f32 %v2348_v8, %v2318_v42  ;;  %v2140_v1 = vpop.f32.mrf.mxu0  ;;  %v4006_v42 = vld [vmem:[#allocation39_spill] sm:$0xff] }
 0x21a   : > { %v2000_v4 = vpop.f32.mrf.mxu3 }
 0x21b   : > { %v1715_v34 = vpop.f32.mrf.mxu1  ;;  %v2074_v47 = vadd.f32 %v2000_v4, %v1918_v40  ;;  %v4007_v40 = vld [vmem:[#allocation37_spill] sm:$0xff] }
 0x21c   : > { %2692 = vmatmul.msk.bf16.gmra.mxu0 %vm667_vm3, %v4001_v39  ;;  %v1786_v8 = vadd.f32 %v1715_v34, %v4004_v12 }
 0x21d   : > { %v2214_v43 = vadd.f32 %v2140_v1, %v2074_v47  ;;  %v1846_v14 = vpop.f32.mrf.mxu2 }
 0x21e   : > { %2637 = vmatmul.msk.bf16.gmra.mxu1 %vm667_vm3, %v4001_v39  ;;  %v1919_v46 = vadd.f32 %v1846_v14, %v1785_v21  ;;  %v4008_v21 = vld [vmem:[#allocation6_spill] sm:$0xff] }
 0x21f   : > { %2246 = vst [vmem:[%s2781_s19 + $0x20] sm:$0xff] %v2214_v43  ;;  %v2278_v37 = vadd.f32 %v2277_v61, %v2214_v43  ;;  %v2319_v48 = vmul.f32 %v2214_v43, %v2214_v43 }
 0x221   : > { %v2350_v11 = vadd.f32 %v2349_v10, %v2319_v48  ;;  %v2142_v58 = vpop.f32.mrf.mxu0 }
 0x222   : > { %v2002_v7 = vpop.f32.mrf.mxu3  ;;  %2658 = vmatmul.msk.bf16.gmra.mxu2 %vm667_vm3, %v4003_v18 }
 0x223   : > { %v1717_v31 = vpop.f32.mrf.mxu1  ;;  %v2075_v0 = vadd.f32 %v2002_v7, %v1919_v46  ;;  %v4009_v46 = vld [vmem:[#allocation38_spill] sm:$0xff] }
 0x224   : > { %v1787_v10 = vadd.f32 %v1717_v31, %v4007_v40  ;;  %v4010_v31 = vld [vmem:[#allocation10_spill] sm:$0xff] }
 0x225   : > { %v2215_v35 = vadd.f32 %v2142_v58, %v2075_v0  ;;  %v1849_v5 = vpop.f32.mrf.mxu2 }
 0x226   : > { %v1920_v57 = vadd.f32 %v1849_v5, %v1786_v8 }
 0x227   : > { %2247 = vst [vmem:[%s2781_s19 + $0x28] sm:$0xff] %v2215_v35  ;;  %v2279_v2 = vadd.f32 %v2278_v37, %v2215_v35  ;;  %v2320_v32 = vmul.f32 %v2215_v35, %v2215_v35  ;;  %2675 = vmatmul.msk.bf16.gmra.mxu3 %vm667_vm3, %v4005_v49 }
 0x229   : > { %v2351_v13 = vadd.f32 %v2350_v11, %v2320_v32  ;;  %v2145_v28 = vpop.f32.mrf.mxu0  ;;  %v4011_v32 = vld [vmem:[#allocation41_spill] sm:$0xff] }
 0x22a   : > { %v2005_v55 = vpop.f32.mrf.mxu3 }
 0x22b   : > { %v1720_v53 = vpop.f32.mrf.mxu1  ;;  %v2076_v61 = vadd.f32 %v2005_v55, %v1920_v57  ;;  %v4012_v57 = vld [vmem:[#allocation7_spill] sm:$0xff] }
 0x22c   : > { %2693 = vmatmul.msk.bf16.gmra.mxu0 %vm667_vm3, %v4006_v42  ;;  %v1788_v11 = vadd.f32 %v1720_v53, %v4009_v46  ;;  %v4014_v46 = vld [vmem:[#allocation42_spill] sm:$0xff] }
 0x22d   : > { %v2216_v24 = vadd.f32 %v2145_v28, %v2076_v61  ;;  %v1851_v1 = vpop.f32.mrf.mxu2 }
 0x22e   : > { %2638 = vmatmul.msk.bf16.gmra.mxu1 %vm667_vm3, %v4006_v42  ;;  %v1921_v47 = vadd.f32 %v1851_v1, %v1787_v10 }
 0x22f   : > { %2248 = vst [vmem:[%s2781_s19 + $0x30] sm:$0xff] %v2216_v24  ;;  %v2280_v4 = vadd.f32 %v2279_v2, %v2216_v24  ;;  %v2321_v34 = vmul.f32 %v2216_v24, %v2216_v24 }
 0x231   : > { %v2352_v39 = vadd.f32 %v2351_v13, %v2321_v34  ;;  %v2147_v43 = vpop.f32.mrf.mxu0  ;;  %v4013_v34 = vld [vmem:[#allocation40_spill] sm:$0xff] }
 0x232   : > { %v2007_v51 = vpop.f32.mrf.mxu3  ;;  %2659 = vmatmul.msk.bf16.gmra.mxu2 %vm667_vm3, %v4008_v21 }
 0x233   : > { %v1722_v14 = vpop.f32.mrf.mxu1  ;;  %v2077_v37 = vadd.f32 %v2007_v51, %v1921_v47 }
 0x234   : > { %v1789_v13 = vadd.f32 %v1722_v14, %v4012_v57  ;;  %v3778_v14 = vld [vmem:[%s2786_s22 + $0xcc] sm:$0xf]  ;;  %v1678_v57 = vrot.slane %v3557_v19, 5 }
 0x235   : > { %v2217_v48 = vadd.f32 %v2147_v43, %v2077_v37  ;;  %v1854_v58 = vpop.f32.mrf.mxu2 }
 0x236   : > { %v1922_v0 = vadd.f32 %v1854_v58, %v1788_v11  ;;  %v1675_v11 = vrot.slane %v4014_v46, 5 }
 0x237   : > { %2249 = vst [vmem:[%s2781_s19 + $0x38] sm:$0xff] %v2217_v48  ;;  %v2281_v7 = vadd.f32 %v2280_v4, %v2217_v48  ;;  %v2322_v18 = vmul.f32 %v2217_v48, %v2217_v48  ;;  %2676 = vmatmul.msk.bf16.gmra.mxu3 %vm667_vm3, %v4010_v31 }
 0x239   : > { %v2353_v35 = vadd.f32 %v2352_v39, %v2322_v18  ;;  %v2150_v12 = vpop.f32.mrf.mxu0  ;;  %v1947_v18 = vshrl.u32 %v3778_v14, 16 }
 0x23a   : > { %v2010_v8 = vpop.f32.mrf.mxu3 }
 0x23b   : > { %v1725_v5 = vpop.f32.mrf.mxu1  ;;  %v2078_v2 = vadd.f32 %v2010_v8, %v1922_v0  ;;  %v1950_v0 = vshll.u32 %v3778_v14, 16 }
 0x23c   : > { %2694 = vmatmul.msk.bf16.gmra.mxu0 %vm667_vm3, %v4011_v32  ;;  %v1790_v47 = vadd.f32 %v1725_v5, %v4013_v34 }
 0x23d   : > { %v2218_v49 = vadd.f32 %v2150_v12, %v2078_v2  ;;  %v1856_v28 = vpop.f32.mrf.mxu2 }
 0x23e   : > { %2639 = vmatmul.msk.bf16.gmra.mxu1 %vm667_vm3, %v4011_v32  ;;  %v1923_v61 = vadd.f32 %v1856_v28, %v1789_v13  ;;  %v1949_v13 = vrot.slane %v1947_v18, 4 }
 0x23f   : > { %2250 = vst [vmem:[%s2781_s19 + $0x40] sm:$0xff] %v2218_v49  ;;  %v2282_v55 = vadd.f32 %v2281_v7, %v2218_v49  ;;  %v2323_v53 = vmul.f32 %v2218_v49, %v2218_v49  ;;  %v1677_v49 = vrot.slane %v1675_v11, 4 }
 0x241   : > { %v2354_v42 = vadd.f32 %v2353_v35, %v2323_v53  ;;  %v2152_v24 = vpop.f32.mrf.mxu0 }
 0x242   : > { %v2012_v40 = vpop.f32.mrf.mxu3  ;;  %2660 = vmatmul.msk.bf16.gmra.mxu2 %vm667_vm3, %v3550_v52  ;;  %v3782_v52 = vld [vmem:[%s2786_s22 + $0xd0] sm:$0xf] }
 0x243   : > { %v1727_v10 = vpop.f32.mrf.mxu1  ;;  %v2079_v1 = vadd.f32 %v2012_v40, %v1923_v61  ;;  %v1956_v12 = vshll.u32 %v3782_v52, 16  ;;  %v1960_v8 = vshrl.u32 %v3782_v52, 16  ;;  %v1952_v61 = vrot.slane %v1950_v0, 5 }
 0x244   : > { %v1791_v2 = vadd.f32 %v1727_v10, %v3554_v27  ;;  %v228_v10 = vld [vmem:[%s2786_s22 + $0xd4] sm:$0x1] }
 0x245   : > { %v2219_v4 = vadd.f32 %v2152_v24, %v2079_v1  ;;  %v1859_v39 = vpop.f32.mrf.mxu2  ;;  %v1962_v24 = vrot.slane %v1960_v8, 4  ;;  %v2105_v8 = vrot.slane %v3782_v52, 5 }
 0x246   : > { %v1924_v21 = vadd.f32 %v1859_v39, %v1790_v47  ;;  %v1953_v47 = vor.u32 %v1952_v61, %v1949_v13 }
 0x247   : > { %2251 = vst [vmem:[%s2781_s19 + $0x48] sm:$0xff] %v2219_v4  ;;  %v2283_v43 = vadd.f32 %v2282_v55, %v2219_v4  ;;  %v2324_v51 = vmul.f32 %v2219_v4, %v2219_v4  ;;  %2677 = vmatmul.msk.bf16.gmra.mxu3 %vm667_vm3, %v3142_v62  ;;  %v4015_v62 = vld [vmem:[#allocation5_spill] sm:$0xff]  ;;  %v2107_v52 = vrot.slane %v2105_v8, 4 }
 0x248   : > { %v2624_v35 = vrot.slane %v4015_v62, 9 }
 0x249   : > { %v2355_v37 = vadd.f32 %v2354_v42, %v2324_v51  ;;  %v2155_v48 = vpop.f32.mrf.mxu0  ;;  %v1958_v42 = vrot.slane %v1956_v12, 5 }
 0x24a   : > { %v2015_v58 = vpop.f32.mrf.mxu3  ;;  %v1676_v27 = vsel %vm3134_vm7, %v2624_v35, %v1675_v11 }
 0x24b   : > { %v1730_v7 = vpop.f32.mrf.mxu1  ;;  %v2080_v31 = vadd.f32 %v2015_v58, %v1924_v21  ;;  %v1682_v39 = vunpack.c.l.b16 %v1676_v27  ;;  %v1963_v51 = vor.u32 %v1962_v24, %v1958_v42  ;;  %v1966_v21 = vshll.u32 %v228_v10, 16 }
 0x24c   : > { %2695 = vmatmul.msk.bf16.gmra.mxu0 %vm667_vm3, %v3573_v22 }
 0x24d   : > { %v2220_v5 = vadd.f32 %v2155_v48, %v2080_v31  ;;  %v1861_v32 = vpop.f32.mrf.mxu2  ;;  %v1792_v48 = vadd.f32 %v1730_v7, %v3571_v20  ;;  %v1954_v31 = vrot.slane %v1953_v47, 4  ;;  %v1964_v0 = vrot.slane %v1963_v51, 4 }
 0x24e   : > { %2640 = vmatmul.msk.bf16.gmra.mxu1 %vm667_vm3, %v3573_v22  ;;  %v1925_v53 = vadd.f32 %v1861_v32, %v1791_v2  ;;  %v1679_v22 = vsel %vm3134_vm7, %v1677_v49, %v1678_v57  ;;  %v1968_v62 = vrot.slane %v1966_v21, 5  ;;  %v2680_v32 = vrot.slane %v3778_v14, 9 }
 0x24f   : > { %2252 = vst [vmem:[%s2781_s19 + $0x50] sm:$0xff] %v2220_v5  ;;  %v2284_v28 = vadd.f32 %v2283_v43, %v2220_v5  ;;  %v2325_v55 = vmul.f32 %v2220_v5, %v2220_v5  ;;  %v1683_v43 = vunpack.c.l.b16 %v1679_v22  ;;  %v1959_v2 = vsel %vm2815_vm4, %v1954_v31, %v1958_v42 }
 0x250   : > { %v2106_v14 = vsel %vm3134_vm7, %v2680_v32, %v2105_v8 }
 0x251   : > { %v2356_v40 = vadd.f32 %v2355_v37, %v2325_v55  ;;  %v2157_v1 = vpop.f32.mrf.mxu0  ;;  %v2718_v55 = vld [vmem:[%s2786_s22 + $0xcc] sm:$0xff] }
 0x252   : > { %v2017_v4 = vpop.f32.mrf.mxu3  ;;  %2661 = vmatmul.msk.bf16.gmra.mxu2 %vm667_vm3, %v3582_v41  ;;  %v1684_v41 = vpack.c.b16 %v1683_v43, %v1682_v39 }
 0x253   : > { %v1732_v19 = vpop.f32.mrf.mxu1  ;;  %v2081_v34 = vadd.f32 %v2017_v4, %v1925_v53  ;;  %v1972_v53 = vunpack.c.l.b16 %v1959_v2 }
 0x254   : > { %v1793_v57 = vadd.f32 %v1732_v19, %v3585_v23  ;;  %v2112_v19 = vunpack.c.l.b16 %v2106_v14 }
 0x255   : > { %v2221_v37 = vadd.f32 %v2157_v1, %v2081_v34  ;;  %v1864_v46 = vpop.f32.mrf.mxu2 }
 0x256   : > { %v1926_v18 = vadd.f32 %v1864_v46, %v1792_v48 }
 0x257   : > { %2253 = vst [vmem:[%s2781_s19 + $0x58] sm:$0xff] %v2221_v37  ;;  %v2285_v11 = vadd.f32 %v2284_v28, %v2221_v37  ;;  %v2326_v58 = vmul.f32 %v2221_v37, %v2221_v37  ;;  %2678 = vmatmul.msk.bf16.gmra.mxu3 %vm667_vm3, %v3589_v6  ;;  %v1969_v6 = vsel %vm2815_vm4, %v1964_v0, %v1968_v62  ;;  %v2108_v28 = vrot.slane %v228_v10, 5 }
 0x259   : > { %v2357_v35 = vadd.f32 %v2356_v40, %v2326_v58  ;;  %v2160_v12 = vpop.f32.mrf.mxu0  ;;  %v1973_v40 = vunpack.c.l.b16 %v1969_v6  ;;  %v2109_v23 = vsel %vm3134_vm7, %v2107_v52, %v2108_v28 }
 0x25a   : > { %v2020_v5 = vpop.f32.mrf.mxu3  ;;  %v2113_v34 = vunpack.c.l.b16 %v2109_v23 }
 0x25b   : > { %v1735_v20 = vpop.f32.mrf.mxu1  ;;  %v2082_v7 = vadd.f32 %v2020_v5, %v1926_v18  ;;  %v1974_v4 = vpack.c.b16 %v1973_v40, %v1972_v53 }
 0x25c   : > { %2696 = vmatmul.msk.bf16.gmra.mxu0 %vm667_vm3, %v1684_v41  ;;  %v1794_v39 = vadd.f32 %v1735_v20, %v3596_v36  ;;  %v2114_v37 = vpack.c.b16 %v2113_v34, %v2112_v19 }
 0x25d   : > { %v2222_v49 = vadd.f32 %v2160_v12, %v2082_v7  ;;  %v1866_v13 = vpop.f32.mrf.mxu2 }
 0x25e   : > { %2641 = vmatmul.msk.bf16.gmra.mxu1 %vm667_vm3, %v1684_v41  ;;  %v1927_v24 = vadd.f32 %v1866_v13, %v1793_v57 }
 0x25f   : > { %2254 = vst [vmem:[%s2781_s19 + $0x60] sm:$0xff] %v2222_v49  ;;  %v2286_v61 = vadd.f32 %v2285_v11, %v2222_v49  ;;  %v2327_v42 = vmul.f32 %v2222_v49, %v2222_v49 }
 0x261   : > { %v2358_v25 = vadd.f32 %v2357_v35, %v2327_v42  ;;  %v2162_v1 = vpop.f32.mrf.mxu0 }
 0x262   : > { %v2022_v27 = vpop.f32.mrf.mxu3  ;;  %2662 = vmatmul.msk.bf16.gmra.mxu2 %vm667_vm3, %v2718_v55 }
 0x263   : > { %v1737_v22 = vpop.f32.mrf.mxu1  ;;  %v2083_v10 = vadd.f32 %v2022_v27, %v1927_v24 }
 0x264   : > { %v1795_v36 = vadd.f32 %v1737_v22, %v3601_v15 }
 0x265   : > { %v2223_v47 = vadd.f32 %v2162_v1, %v2083_v10  ;;  %v1869_v43 = vpop.f32.mrf.mxu2 }
 0x266   : > { %v1928_v16 = vadd.f32 %v1869_v43, %v1794_v39 }
 0x267   : > { %2255 = vst [vmem:[%s2781_s19 + $0x68] sm:$0xff] %v2223_v47  ;;  %v2287_v51 = vadd.f32 %v2286_v61, %v2223_v47  ;;  %v2328_v21 = vmul.f32 %v2223_v47, %v2223_v47  ;;  %2679 = vmatmul.msk.bf16.gmra.mxu3 %vm667_vm3, %v1974_v4 }
 0x269   : > { %v2359_v48 = vadd.f32 %v2358_v25, %v2328_v21  ;;  %v2165_v46 = vpop.f32.mrf.mxu0 }
 0x26a   : > { %v2025_v11 = vpop.f32.mrf.mxu3 }
 0x26b   : > { %v1740_v58 = vpop.f32.mrf.mxu1  ;;  %v2084_v18 = vadd.f32 %v2025_v11, %v1928_v16 }
 0x26c   : > { %2697 = vmatmul.msk.bf16.gmra.mxu0 %vm667_vm3, %v2114_v37  ;;  %v1796_v6 = vadd.f32 %v1740_v58, %v3610_v3 }
 0x26d   : > { %v2224_v31 = vadd.f32 %v2165_v46, %v2084_v18  ;;  %v1871_v41 = vpop.f32.mrf.mxu2 }
 0x26e   : > { %v1929_v35 = vadd.f32 %v1871_v41, %v1795_v36 }
 0x26f   : > { %2256 = vst [vmem:[%s2781_s19 + $0x70] sm:$0xff] %v2224_v31  ;;  %v2288_v0 = vadd.f32 %v2287_v51, %v2224_v31  ;;  %v2329_v62 = vmul.f32 %v2224_v31, %v2224_v31 }
 0x271   : > { %v2360_v12 = vadd.f32 %v2359_v48, %v2329_v62  ;;  %v2167_v8 = vpop.f32.mrf.mxu0 }
 0x272   : > { %v2027_v5 = vpop.f32.mrf.mxu3 }
 0x273   : > { %v1742_v20 = vpop.f32.mrf.mxu1  ;;  %v2085_v7 = vadd.f32 %v2027_v5, %v1929_v35 }
 0x274   : > { %v1797_v42 = vadd.f32 %v1742_v20, %v3615_v9 }
 0x275   : > { %v2225_v2 = vadd.f32 %v2167_v8, %v2085_v7  ;;  %v1874_v32 = vpop.f32.mrf.mxu2 }
 0x276   : > { %v1930_v13 = vadd.f32 %v1874_v32, %v1796_v6 }
 0x277   : > { %2257 = vst [vmem:[%s2781_s19 + $0x78] sm:$0xff] %v2225_v2  ;;  %v2289_v49 = vadd.f32 %v2288_v0, %v2225_v2  ;;  %v2330_v57 = vmul.f32 %v2225_v2, %v2225_v2 }
 0x279   : > { %v2361_v15 = vadd.f32 %v2360_v12, %v2330_v57  ;;  %v2170_v52 = vpop.f32.mrf.mxu0 }
 0x27a   : > { %v2030_v28 = vpop.f32.mrf.mxu3 }
 0x27b   : > { %v1745_v55 = vpop.f32.mrf.mxu1  ;;  %v2086_v53 = vadd.f32 %v2030_v28, %v1930_v13 }
 0x27c   : > { %v1798_v4 = vadd.f32 %v1745_v55, %v3624_v54 }
 0x27d   : > { %v2226_v61 = vadd.f32 %v2170_v52, %v2086_v53  ;;  %v1876_v24 = vpop.f32.mrf.mxu2 }
 0x27e   : > { %v1931_v1 = vadd.f32 %v1876_v24, %v1797_v42 }
 0x27f   : > { %2258 = vst [vmem:[%s2781_s19 + $0x80] sm:$0xff] %v2226_v61  ;;  %v2290_v40 = vadd.f32 %v2289_v49, %v2226_v61  ;;  %v2331_v25 = vmul.f32 %v2226_v61, %v2226_v61 }
 0x281   : > { %v2362_v3 = vadd.f32 %v2361_v15, %v2331_v25  ;;  %v2172_v14 = vpop.f32.mrf.mxu0 }
 0x282   : > { %v2032_v23 = vpop.f32.mrf.mxu3 }
 0x283   : > { %v1747_v27 = vpop.f32.mrf.mxu1  ;;  %v2087_v22 = vadd.f32 %v2032_v23, %v1931_v1 }
 0x284   : > { %v1799_v48 = vadd.f32 %v1747_v27, %v3629_v33 }
 0x285   : > { %v2227_v10 = vadd.f32 %v2172_v14, %v2087_v22  ;;  %v1879_v19 = vpop.f32.mrf.mxu2 }
 0x286   : > { %v1932_v39 = vadd.f32 %v1879_v19, %v1798_v4 }
 0x287   : > { %2259 = vst [vmem:[%s2781_s19 + $0x88] sm:$0xff] %v2227_v10  ;;  %v2291_v34 = vadd.f32 %v2290_v40, %v2227_v10  ;;  %v2332_v47 = vmul.f32 %v2227_v10, %v2227_v10 }
 0x289   : > { %v2363_v9 = vadd.f32 %v2362_v3, %v2332_v47  ;;  %v2175_v43 = vpop.f32.mrf.mxu0 }
 0x28a   : > { %v2035_v51 = vpop.f32.mrf.mxu3 }
 0x28b   : > { %v1750_v21 = vpop.f32.mrf.mxu1  ;;  %v2088_v16 = vadd.f32 %v2035_v51, %v1932_v39 }
 0x28c   : > { %v1800_v35 = vadd.f32 %v1750_v21, %v3638_v60 }
 0x28d   : > { %v2228_v37 = vadd.f32 %v2175_v43, %v2088_v16  ;;  %v1881_v46 = vpop.f32.mrf.mxu2 }
 0x28e   : > { %v1933_v18 = vadd.f32 %v1881_v46, %v1799_v48 }
 0x28f   : > { %2260 = vst [vmem:[%s2781_s19 + $0x90] sm:$0xff] %v2228_v37  ;;  %v2292_v11 = vadd.f32 %v2291_v34, %v2228_v37  ;;  %v2333_v58 = vmul.f32 %v2228_v37, %v2228_v37 }
 0x291   : > { %v2364_v54 = vadd.f32 %v2363_v9, %v2333_v58  ;;  %v2177_v31 = vpop.f32.mrf.mxu0 }
 0x292   : > { %v2037_v36 = vpop.f32.mrf.mxu3 }
 0x293   : > { %v1752_v41 = vpop.f32.mrf.mxu1  ;;  %v2089_v0 = vadd.f32 %v2037_v36, %v1933_v18 }
 0x294   : > { %v1801_v57 = vadd.f32 %v1752_v41, %v3643_v56 }
 0x295   : > { %v2229_v62 = vadd.f32 %v2177_v31, %v2089_v0  ;;  %v1884_v12 = vpop.f32.mrf.mxu2 }
 0x296   : > { %v1934_v20 = vadd.f32 %v1884_v12, %v1800_v35 }
 0x297   : > { %2261 = vst [vmem:[%s2781_s19 + $0x98] sm:$0xff] %v2229_v62  ;;  %v2293_v8 = vadd.f32 %v2292_v11, %v2229_v62  ;;  %v2334_v5 = vmul.f32 %v2229_v62, %v2229_v62 }
 0x299   : > { %v2365_v33 = vadd.f32 %v2364_v54, %v2334_v5  ;;  %v2180_v7 = vpop.f32.mrf.mxu0 }
 0x29a   : > { %v2040_v2 = vpop.f32.mrf.mxu3 }
 0x29b   : > { %v1755_v6 = vpop.f32.mrf.mxu1  ;;  %v2090_v32 = vadd.f32 %v2040_v2, %v1934_v20 }
 0x29c   : > { %v1802_v40 = vadd.f32 %v1755_v6, %v3652_v63 }
 0x29d   : > { %v2230_v49 = vadd.f32 %v2180_v7, %v2090_v32  ;;  %v1886_v13 = vpop.f32.mrf.mxu2 }
 0x29e   : > { %v1935_v28 = vadd.f32 %v1886_v13, %v1801_v57 }
 0x29f   : > { %2262 = vst [vmem:[%s2781_s19 + $0xa0] sm:$0xff] %v2230_v49  ;;  %v2294_v15 = vadd.f32 %v2293_v8, %v2230_v49  ;;  %v2335_v52 = vmul.f32 %v2230_v49, %v2230_v49 }
 0x2a1   : > { %v2366_v60 = vadd.f32 %v2365_v33, %v2335_v52  ;;  %v2182_v55 = vpop.f32.mrf.mxu0 }
 0x2a2   : > { %v2042_v53 = vpop.f32.mrf.mxu3 }
 0x2a3   : > { %v1757_v61 = vpop.f32.mrf.mxu1  ;;  %v2091_v42 = vadd.f32 %v2042_v53, %v1935_v28 }
 0x2a4   : > { %v1803_v19 = vadd.f32 %v1757_v61, %v3657_v44 }
 0x2a5   : > { %v2231_v24 = vadd.f32 %v2182_v55, %v2091_v42  ;;  %v1889_v25 = vpop.f32.mrf.mxu2 }
 0x2a6   : > { %v1936_v14 = vadd.f32 %v1889_v25, %v1802_v40 }
 0x2a7   : > { %2263 = vst [vmem:[%s2781_s19 + $0xa8] sm:$0xff] %v2231_v24  ;;  %v2295_v1 = vadd.f32 %v2294_v15, %v2231_v24  ;;  %v2336_v3 = vmul.f32 %v2231_v24, %v2231_v24 }
 0x2a9   : > { %v2367_v56 = vadd.f32 %v2366_v60, %v2336_v3  ;;  %v2185_v23 = vpop.f32.mrf.mxu0 }
 0x2aa   : > { %v2045_v27 = vpop.f32.mrf.mxu3 }
 0x2ab   : > { %v1760_v22 = vpop.f32.mrf.mxu1  ;;  %v2092_v10 = vadd.f32 %v2045_v27, %v1936_v14 }
 0x2ac   : > { %v1804_v48 = vadd.f32 %v1760_v22, %v3666_v59 }
 0x2ad   : > { %v2232_v4 = vadd.f32 %v2185_v23, %v2092_v10  ;;  %v1891_v34 = vpop.f32.mrf.mxu2 }
 0x2ae   : > { %v1937_v9 = vadd.f32 %v1891_v34, %v1803_v19 }
 0x2af   : > { %2264 = vst [vmem:[%s2781_s19 + $0xb0] sm:$0xff] %v2232_v4  ;;  %v2296_v47 = vadd.f32 %v2295_v1, %v2232_v4  ;;  %v2337_v39 = vmul.f32 %v2232_v4, %v2232_v4 }
 0x2b1   : > { %v2368_v63 = vadd.f32 %v2367_v56, %v2337_v39  ;;  %v2187_v43 = vpop.f32.mrf.mxu0 }
 0x2b2   : > { %v2047_v51 = vpop.f32.mrf.mxu3 }
 0x2b3   : > { %v1762_v21 = vpop.f32.mrf.mxu1  ;;  %v2093_v16 = vadd.f32 %v2047_v51, %v1937_v9 }
 0x2b4   : > { %v1805_v62 = vadd.f32 %v1762_v21, %v3671_v26 }
 0x2b5   : > { %v2233_v37 = vadd.f32 %v2187_v43, %v2093_v16  ;;  %v1894_v46 = vpop.f32.mrf.mxu2 }
 0x2b6   : > { %v1938_v18 = vadd.f32 %v1894_v46, %v1804_v48 }
 0x2b7   : > { %2265 = vst [vmem:[%s2781_s19 + $0xb8] sm:$0xff] %v2233_v37  ;;  %v2297_v11 = vadd.f32 %v2296_v47, %v2233_v37  ;;  %v2338_v58 = vmul.f32 %v2233_v37, %v2233_v37 }
 0x2b9   : > { %v2369_v44 = vadd.f32 %v2368_v63, %v2338_v58  ;;  %v2190_v54 = vpop.f32.mrf.mxu0 }
 0x2ba   : > { %v2050_v31 = vpop.f32.mrf.mxu3 }
 0x2bb   : > { %v1765_v36 = vpop.f32.mrf.mxu1  ;;  %v2094_v41 = vadd.f32 %v2050_v31, %v1938_v18 }
 0x2bc   : > { %v1806_v32 = vadd.f32 %v1765_v36, %v3680_v29 }
 0x2bd   : > { %v2234_v0 = vadd.f32 %v2190_v54, %v2094_v41  ;;  %v1896_v35 = vpop.f32.mrf.mxu2 }
 0x2be   : > { %v1939_v5 = vadd.f32 %v1896_v35, %v1805_v62 }
 0x2bf   : > { %2266 = vst [vmem:[%s2781_s19 + $0xc0] sm:$0xff] %v2234_v0  ;;  %v2298_v12 = vadd.f32 %v2297_v11, %v2234_v0  ;;  %v2339_v8 = vmul.f32 %v2234_v0, %v2234_v0 }
 0x2c1   : > { %v2370_v59 = vadd.f32 %v2369_v44, %v2339_v8  ;;  %v2192_v20 = vpop.f32.mrf.mxu0 }
 0x2c2   : > { %v2052_v33 = vpop.f32.mrf.mxu3 }
 0x2c3   : > { %v1767_v7 = vpop.f32.mrf.mxu1  ;;  %v2095_v2 = vadd.f32 %v2052_v33, %v1939_v5 }
 0x2c4   : > { %v1807_v61 = vadd.f32 %v1767_v7, %v3685_v38 }
 0x2c5   : > { %v2235_v6 = vadd.f32 %v2192_v20, %v2095_v2  ;;  %v1899_v49 = vpop.f32.mrf.mxu2 }
 0x2c6   : > { %v1940_v15 = vadd.f32 %v1899_v49, %v1806_v32 }
 0x2c7   : > { %2267 = vst [vmem:[%s2781_s19 + $0xc8] sm:$0xff] %v2235_v6  ;;  %v2299_v57 = vadd.f32 %v2298_v12, %v2235_v6  ;;  %v2340_v13 = vmul.f32 %v2235_v6, %v2235_v6 }
 0x2c9   : > { %v2371_v26 = vadd.f32 %v2370_v59, %v2340_v13  ;;  %v2195_v52 = vpop.f32.mrf.mxu0 }
 0x2ca   : > { %v2055_v28 = vpop.f32.mrf.mxu3 }
 0x2cb   : > { %v2096_v60 = vadd.f32 %v2055_v28, %v1940_v15  ;;  %v1770_v55 = vpop.f32.mrf.mxu1 }
 0x2cc   : > { %v1808_v23 = vadd.f32 %v1770_v55, %v3694_v45 }
 0x2cd   : > { %v2236_v53 = vadd.f32 %v2195_v52, %v2096_v60  ;;  %v1901_v42 = vpop.f32.mrf.mxu2 }
 0x2ce   : > { %v1941_v25 = vadd.f32 %v1901_v42, %v1807_v61  ;;  %v2274_v42 = vld [vmem:[%s3880_s3] sm:$0x1] }
 0x2cf   : > { %2268 = vst [vmem:[%s2781_s19 + $0xd0] sm:$0xff] %v2236_v53  ;;  %v2300_v24 = vadd.f32 %v2299_v57, %v2236_v53  ;;  %v2341_v40 = vmul.f32 %v2236_v53, %v2236_v53 }
 0x2d1   : > { %v2372_v29 = vadd.f32 %v2371_v26, %v2341_v40  ;;  %v2197_v1 = vpop.f32.mrf.mxu0 }
 0x2d2   : > { %v2057_v3 = vpop.f32.mrf.mxu3 }
 0x2d3   : > { %v2097_v14 = vadd.f32 %v2057_v3, %v1941_v25  ;;  %v1772_v22 = vpop.f32.mrf.mxu1  ;;  %v2314_v25 = vld [vmem:[%s3880_s3 + $0x1] sm:$0x1] }
 0x2d4   : > { %v1809_v63 = vadd.f32 %v1772_v22, %v3699_v30 }
 0x2d5   : > { %v2237_v56 = vadd.f32 %v2197_v1, %v2097_v14  ;;  %v1904_v27 = vpop.f32.mrf.mxu2 }
 0x2d6   : > { %v1942_v19 = vadd.f32 %v1904_v27, %v1808_v23 }
 0x2d7   : > { %2269 = vst [vmem:[%s2781_s19 + $0xd8] sm:$0xff] %v2237_v56  ;;  %v2301_v10 = vadd.f32 %v2300_v24, %v2237_v56  ;;  %v2342_v4 = vmul.f32 %v2237_v56, %v2237_v56 }
 0x2d9   : > { %v2373_v38 = vadd.f32 %v2372_v29, %v2342_v4  ;;  %v2200_v34 = vpop.f32.mrf.mxu0 }
 0x2da   : > { %v2060_v47 = vpop.f32.mrf.mxu3 }
 0x2db   : > { %v2098_v39 = vadd.f32 %v2060_v47, %v1942_v19  ;;  %v1775_v45 = vpop.f32.mrf.mxu1 }
 0x2dc   : > { %v1810_v18 = vadd.f32 %v1775_v45, %v3708_v50 }
 0x2dd   : > { %v2238_v9 = vadd.f32 %v2200_v34, %v2098_v39  ;;  %v1906_v43 = vpop.f32.mrf.mxu2 }
 0x2de   : > { %v1943_v16 = vadd.f32 %v1906_v43, %v1809_v63 }
 0x2df   : > { %2270 = vst [vmem:[%s2781_s19 + $0xe0] sm:$0xff] %v2238_v9  ;;  %v2302_v51 = vadd.f32 %v2301_v10, %v2238_v9  ;;  %v2343_v21 = vmul.f32 %v2238_v9, %v2238_v9 }
 0x2e1   : > { %v2374_v37 = vadd.f32 %v2373_v38, %v2343_v21  ;;  %v2202_v48 = vpop.f32.mrf.mxu0 }
 0x2e2   : > { %v2062_v46 = vpop.f32.mrf.mxu3 }
 0x2e3   : > { %v2099_v11 = vadd.f32 %v2062_v46, %v1943_v16  ;;  %v1777_v41 = vpop.f32.mrf.mxu1 }
 0x2e4   : > { %v1811_v8 = vadd.f32 %v1777_v41, %v3713_v17 }
 0x2e5   : > { %v2239_v58 = vadd.f32 %v2202_v48, %v2099_v11  ;;  %v1909_v44 = vpop.f32.mrf.mxu2 }
 0x2e6   : > { %v1944_v36 = vadd.f32 %v1909_v44, %v1810_v18 }
 0x2e7   : > { %2271 = vst [vmem:[%s2781_s19 + $0xe8] sm:$0xff] %v2239_v58  ;;  %v2303_v54 = vadd.f32 %v2302_v51, %v2239_v58  ;;  %v2344_v31 = vmul.f32 %v2239_v58, %v2239_v58 }
 0x2e9   : > { %v2375_v30 = vadd.f32 %v2374_v37, %v2344_v31  ;;  %v2205_v0 = vpop.f32.mrf.mxu0 }
 0x2ea   : > { %v2065_v62 = vpop.f32.mrf.mxu3 }
 0x2eb   : > { %v2100_v35 = vadd.f32 %v2065_v62, %v1944_v36 }
 0x2ed   : > { %v2240_v12 = vadd.f32 %v2205_v0, %v2100_v35  ;;  %v1911_v5 = vpop.f32.mrf.mxu2 }
 0x2ee   : > { %v1945_v33 = vadd.f32 %v1911_v5, %v1811_v8 }
 0x2ef   : > { %2272 = vst [vmem:[%s2781_s19 + $0xf0] sm:$0xff] %v2240_v12  ;;  %v2304_v59 = vadd.f32 %v2303_v54, %v2240_v12  ;;  %v2345_v20 = vmul.f32 %v2240_v12, %v2240_v12 }
 0x2f1   : > { %v2376_v50 = vadd.f32 %v2375_v30, %v2345_v20  ;;  %v2207_v6 = vpop.f32.mrf.mxu0 }
 0x2f2   : > { %v2067_v7 = vpop.f32.mrf.mxu3 }
 0x2f3   : > { %v2101_v2 = vadd.f32 %v2067_v7, %v1945_v33 }
 0x2f5   : > { %v2241_v32 = vadd.f32 %v2207_v6, %v2101_v2 }
 0x2f7   : > { %2273 = vst [vmem:[%s2781_s19 + $0xf8] sm:$0xff] %v2241_v32  ;;  %v2305_v49 = vadd.f32 %v2304_v59, %v2241_v32  ;;  %v2346_v57 = vmul.f32 %v2241_v32, %v2241_v32 }
 0x2f9   : > { %v2306_v13 = vrot.slane %v2305_v49, 4  ;;  %v2377_v15 = vadd.f32 %v2376_v50, %v2346_v57 }
 0x2fb   : > { %v2307_v26 = vadd.f32 %v2306_v13, %v2305_v49  ;;  %v2378_v52 = vrot.slane %v2377_v15, 4 }
 0x2fd   : > { %v2308_v28 = vrot.slane %v2307_v26, 2  ;;  %v2379_v60 = vadd.f32 %v2378_v52, %v2377_v15 }
 0x2ff   : > { %v2309_v17 = vadd.f32 %v2308_v28, %v2307_v26  ;;  %v2380_v55 = vrot.slane %v2379_v60, 2 }
 0x301   : > { %v2310_v53 = vrot.slane %v2309_v17, 1  ;;  %v2381_v61 = vadd.f32 %v2380_v55, %v2379_v60 }
 0x303   : > { %v2311_v24 = vadd.f32 %v2310_v53, %v2309_v17  ;;  %v2382_v40 = vrot.slane %v2381_v61, 1 }
 0x305   : > { %v2312_v29 = vadd.f32 %v2311_v24, %v2274_v42  ;;  %v2383_v1 = vadd.f32 %v2382_v40, %v2381_v61 }
 0x307   : > { %2313 = vst [vmem:[%s3880_s3] sm:$0x1] %v2312_v29  ;;  %v2384_v3 = vadd.f32 %v2383_v1, %v2314_v25 }
 0x309   : > { %2385 = vst [vmem:[%s3880_s3 + $0x1] sm:$0x1] %v2384_v3 }
 0x30a PF: > { %s14_s12 = sadd.s32 1, %s2747_s12  }
 0x30b   : > { %p11_p5 = scmp.ge.s32.totalorder %s14_s12, 4  }
 0x30d   :  { %13 = sbr.rel (!%p11_p5) target bundleno = 1 (0x1), region = 78 }

// kernel: conv_block_forward.6
= control target key start
LH: loop header
LB: loop body
LE: loop exit
PB: predicated region body
PF: predicated region fallthrough
CT: control target
= control target key end

     0   :  { %s2770_s12 = smov 0   ;;  %s3877_s0 = inlined_call_operand.vmem [shape: bf16[2,18,18,8], index: 0, kind: input, shape index: {}]   ;;  %s3878_s1 = inlined_call_operand.vmem [shape: bf16[9,8,128], index: 1, kind: input, shape index: {}]   ;;  %s3879_s2 = inlined_call_operand.vmem [shape: f32[2,256,128], index: 2, kind: output, shape index: {0}]   ;;  %s3880_s3 = inlined_call_operand.vmem [shape: f32[2,128], index: 3, kind: output, shape index: {1}]  }
   0x1 LB: > { %s2447_s13 = sadd.s32 4294967295, %s2747_s12   ;;  %p2451_p0 = scmp.ge.s32.totalorder %s2747_s12, 1  ;;  %s2747_s12 = sphi %s2770_s12, %s14_s12  }
   0x2   : > { %p135_p1 = scmp.lt.s32.totalorder %s2747_s12, 3 }
   0x4   : > { %p136_p2 = pnand %p2451_p0, %p135_p1 }
   0x6   : > { %139 = sbr.rel (%p136_p2) target bundleno = 778 (0x30a), region = 28 }
   0xb   : > { %p159_p3 = scmp.lt.s32.totalorder %s2447_s13, 1  ;;  %p2455_p4 = scmp.ne.s32.totalorder %s2447_s13, 0 }
   0xd   : > { %s160_s14 = scalar_select %p159_p3, %s2447_s13, 1 }
   0xe   : > { %173 = sbr.rel (%p2455_p4) target bundleno = 21 (0x15), region = 32 }
   0xf   : > { %s2722_s15 = smul.u32 216, %s160_s14  ;;  %s2700_s16 = sshll.u32 %s160_s14, 8 }
  0x10   : > { %s2781_s19 = scalar_lea.vmem %s3879_s2, %s2700_s16 }
  0x11   : > { %s2786_s22 = scalar_lea.vmem %s3877_s0, %s2722_s15 }
  0x13   : > { %v2749_v0 = vmov 0.0  }
  0x14   : > { %174 = vst [vmem:[%s3880_s3] sm:$0x3] %v2749_v0 }
  0x15 PF: > { %v2456_v1 = vld [vmem:[%s3878_s1 + $0x4] sm:$0xf]  ;;  %vm716_vm0 = vcmask 1043456   ;;  %v2795_v2 = vld [vmem:[%s2786_s22 + $0x30] sm:$0xf]  ;;  %vm667_vm3 = vcmask 64512  }
  0x16   : > { %v718_v3 = vsel %vm716_vm0, %v2456_v1, 0  ;;  %v2799_v4 = vld [vmem:[%s2786_s22 + $0x34] sm:$0xf]  ;;  %v2802_v5 = vld [vmem:[%s2786_s22 + $0x38] sm:$0x1]  ;;  %v330_v6 = vshrl.u32 %v2795_v2, 16 }
  0x17   : > { %2719 = vmatpush.bf16.msra.mxu1 %v718_v3  ;;  %2720 = vmatpush.bf16.msra.mxu2 %v718_v3  ;;  %vm230_vm1 = vsmask.f32 3328  ;;  %vm231_vm2 = vsmask.f32 7440  ;;  %v333_v7 = vshll.u32 %v2795_v2, 16  ;;  %v339_v8 = vshll.u32 %v2799_v4, 16 }
  0x18   : > { %2721 = vmatpush.bf16.msra.mxu3 %v718_v3  ;;  %727 = vmatpush.bf16.msra.mxu0 %v718_v3  ;;  %v332_v9 = vrot.slane %v330_v6, 4  ;;  %v343_v10 = vshrl.u32 %v2799_v4, 16  ;;  %v349_v11 = vshll.u32 %v2802_v5, 16  ;;  %v199_v12 = vld [vmem:[%s2786_s22 + $0x60] sm:$0xf]  ;;  %vm2815_vm4 = vmor %vm230_vm1, %vm231_vm2  ;;  %vm1045_vm5 = vcmask 1042432  }
  0x19   : > { %v335_v13 = vrot.slane %v333_v7, 5  ;;  %v341_v14 = vrot.slane %v339_v8, 5  ;;  %v200_v15 = vld [vmem:[%s2786_s22 + $0x64] sm:$0xf]  ;;  %v201_v16 = vld [vmem:[%s2786_s22 + $0x68] sm:$0x1] }
  0x1a   : > { %v345_v17 = vrot.slane %v343_v10, 4  ;;  %v426_v18 = vshrl.u32 %v199_v12, 16  ;;  %v429_v19 = vshll.u32 %v199_v12, 16  ;;  %v435_v21 = vshll.u32 %v200_v15, 16  ;;  %v211_v24 = vld [vmem:[%s2786_s22 + $0x90] sm:$0xf] }
  0x1b   : > { %v336_v20 = vor.u32 %v335_v13, %v332_v9  ;;  %v439_v22 = vshrl.u32 %v200_v15, 16  ;;  %v445_v23 = vshll.u32 %v201_v16, 16  ;;  %v351_v27 = vrot.slane %v349_v11, 5  ;;  %v212_v30 = vld [vmem:[%s2786_s22 + $0x94] sm:$0xf] }
  0x1c   : > { %v346_v26 = vor.u32 %v345_v17, %v341_v14  ;;  %v428_v28 = vrot.slane %v426_v18, 4  ;;  %v431_v29 = vrot.slane %v429_v19, 5  ;;  %v437_v32 = vrot.slane %v435_v21, 5  ;;  %v213_v41 = vld [vmem:[%s2786_s22 + $0x98] sm:$0x1] }
  0x1d   : > { %v337_v31 = vrot.slane %v336_v20, 4  ;;  %v441_v33 = vrot.slane %v439_v22, 4  ;;  %v447_v34 = vrot.slane %v445_v23, 5  ;;  %v522_v37 = vshrl.u32 %v211_v24, 16  ;;  %v2569_v52 = vld [vmem:[%s3878_s1 + $0x8] sm:$0xf] }
  0x1e   : > { %v347_v35 = vrot.slane %v346_v26, 4  ;;  %v432_v36 = vor.u32 %v431_v29, %v428_v28  ;;  %v525_v38 = vshll.u32 %v211_v24, 16  ;;  %v531_v42 = vshll.u32 %v212_v30, 16  ;;  %v2831_v56 = vld [vmem:[%s2786_s22] sm:$0xf] }
  0x1f   : > { %v342_v39 = vsel %vm2815_vm4, %v337_v31, %v341_v14  ;;  %v442_v40 = vor.u32 %v441_v33, %v437_v32  ;;  %v535_v43 = vshrl.u32 %v212_v30, 16  ;;  %v524_v47 = vrot.slane %v522_v37, 4  ;;  %v2834_v57 = vld [vmem:[%s2786_s22 + $0x4] sm:$0xf]  ;;  %v2841_v62 = vld [vmem:[%s2786_s22 + $0x8] sm:$0x1] }
  0x20   : > { %v352_v44 = vsel %vm2815_vm4, %v347_v35, %v351_v27  ;;  %v627_v45 = vunpack.c.l.b16 %v342_v39  ;;  %v433_v46 = vrot.slane %v432_v36, 4  ;;  %v527_v50 = vrot.slane %v525_v38, 5  ;;  %v2586_v6 = vld [vmem:[%s3878_s1 + $0xc] sm:$0xf]  ;;  %v229_v11 = vld [vmem:[%s3878_s1] sm:$0xf] }
  0x21   : > { %v628_v48 = vunpack.c.l.b16 %v352_v44  ;;  %v443_v49 = vrot.slane %v442_v40, 4  ;;  %v533_v51 = vrot.slane %v531_v42, 5  ;;  %v537_v54 = vrot.slane %v535_v43, 4  ;;  %v2607_v16 = vld [vmem:[%s3878_s1 + $0x10] sm:$0xf] }
  0x22   : > { %v438_v53 = vsel %vm2815_vm4, %v433_v46, %v437_v32  ;;  %v541_v55 = vshll.u32 %v213_v41, 16  ;;  %v528_v61 = vor.u32 %v527_v50, %v524_v47  ;;  %v1259_v3 = vsel %vm716_vm0, %v2569_v52, 0  ;;  %v2865_v21 = vld [vmem:[%s2786_s22 + $0x3c] sm:$0xf]  ;;  %v2872_v26 = vld [vmem:[%s2786_s22 + $0x40] sm:$0xf] }
  0x23   : > { %v2836_v58 = vpack.c.b16 %v628_v48, %v627_v45  ;;  %v448_v59 = vsel %vm2815_vm4, %v443_v49, %v447_v34  ;;  %v635_v60 = vunpack.c.l.b16 %v438_v53  ;;  %v538_v0 = vor.u32 %v537_v54, %v533_v51  ;;  %1268 = vmatpush.bf16.msrb.mxu2 %v1259_v3  ;;  %v2876_v31 = vld [vmem:[%s2786_s22 + $0x44] sm:$0x1]  ;;  %v2882_v36 = vld [vmem:[%s2786_s22 + $0x6c] sm:$0xf]  ;;  %v2891_v45 = vld [vmem:[%s2786_s22 + $0x70] sm:$0xf] }
  0x24   : > { %v636_v63 = vunpack.c.l.b16 %v448_v59  ;;  %v543_v1 = vrot.slane %v541_v55, 5  ;;  %v529_v7 = vrot.slane %v528_v61, 4  ;;  %v234_v8 = vshrl.u32 %v2831_v56, 16  ;;  %v2898_v49 = vld [vmem:[%s2786_s22 + $0x74] sm:$0x1] }
  0x25   : > { %2461 = vmatmul.msk.bf16.vlgmr.msra.gmra.mxu1 %vm667_vm3, %v2836_v58  ;;  %v237_v9 = vshll.u32 %v2831_v56, 16  ;;  %v243_v10 = vshll.u32 %v2834_v57, 16  ;;  %v539_v13 = vrot.slane %v538_v0, 4  ;;  %v247_v14 = vshrl.u32 %v2834_v57, 16 }
  0x26   : > { %v2855_v12 = vpack.c.b16 %v636_v63, %v635_v60  ;;  %v253_v15 = vshll.u32 %v2841_v62, 16  ;;  %v534_v17 = vsel %vm2815_vm4, %v529_v7, %v533_v51  ;;  %v236_v18 = vrot.slane %v234_v8, 4 }
  0x27   : > { %v239_v19 = vrot.slane %v237_v9, 5  ;;  %v245_v20 = vrot.slane %v243_v10, 5  ;;  %v544_v22 = vsel %vm2815_vm4, %v539_v13, %v543_v1  ;;  %v643_v23 = vunpack.c.l.b16 %v534_v17  ;;  %v215_v10 = vld [vmem:[%s2786_s22 + $0xa0] sm:$0xf] }
  0x28   : > { %3921 = vst [vmem:[#allocation2_spill] sm:$0xff] %v2855_v12  ;;  %2465 = vmatmul.msk.bf16.vlgmr.msra.gmra.mxu2 %vm667_vm3, %v2855_v12  ;;  %v249_v24 = vrot.slane %v247_v14, 4  ;;  %v644_v27 = vunpack.c.l.b16 %v544_v22  ;;  %v255_v29 = vrot.slane %v253_v15, 5  ;;  %v1393_v30 = vsel %vm716_vm0, %v2586_v6, 0  ;;  %v214_v6 = vld [vmem:[%s2786_s22 + $0x9c] sm:$0xf] }
  0x29   : > { %v240_v28 = vor.u32 %v239_v19, %v236_v18  ;;  %1402 = vmatpush.bf16.msrb.mxu3 %v1393_v30  ;;  %v938_v33 = vsel %vm716_vm0, %v229_v11, 0  ;;  %v1549_v34 = vsel %vm716_vm0, %v2607_v16, 0  ;;  %v354_v35 = vshrl.u32 %v2865_v21, 16  ;;  %v216_v18 = vld [vmem:[%s2786_s22 + $0xa4] sm:$0x1] }
  0x2a   : > { %v250_v32 = vor.u32 %v249_v24, %v245_v20  ;;  %v2884_v37 = vpack.c.b16 %v644_v27, %v643_v23  ;;  %947 = vmatpush.bf16.msrb.mxu1 %v938_v33  ;;  %1558 = vmatpush.bf16.msrb.mxu0 %v1549_v34  ;;  %v357_v39 = vshll.u32 %v2865_v21, 16  ;;  %v363_v40 = vshll.u32 %v2872_v26, 16 }
  0x2b   : > { %v241_v38 = vrot.slane %v240_v28, 4  ;;  %v356_v42 = vrot.slane %v354_v35, 4  ;;  %v367_v43 = vshrl.u32 %v2872_v26, 16  ;;  %v373_v44 = vshll.u32 %v2876_v31, 16 }
  0x2c   : > { %3922 = vst [vmem:[#allocation3_spill] sm:$0xff] %v2884_v37  ;;  %v251_v41 = vrot.slane %v250_v32, 4  ;;  %2469 = vmatmul.msk.bf16.vlgmr.msra.gmra.mxu3 %vm667_vm3, %v2884_v37  ;;  %v359_v47 = vrot.slane %v357_v39, 5  ;;  %v365_v48 = vrot.slane %v363_v40, 5  ;;  %v450_v50 = vshrl.u32 %v2882_v36, 16 }
  0x2d   : > { %v246_v46 = vsel %vm2815_vm4, %v241_v38, %v245_v20  ;;  %v369_v53 = vrot.slane %v367_v43, 4  ;;  %v375_v54 = vrot.slane %v373_v44, 5  ;;  %v453_v61 = vshll.u32 %v2882_v36, 16  ;;  %v2916_v39 = vld [vmem:[%s2786_s22 + $0xc] sm:$0xf] }
  0x2e   : > { %v256_v51 = vsel %vm2815_vm4, %v251_v41, %v255_v29  ;;  %v619_v52 = vunpack.c.l.b16 %v246_v46  ;;  %v360_v59 = vor.u32 %v359_v47, %v356_v42  ;;  %v452_v60 = vrot.slane %v450_v50, 4  ;;  %v2923_v43 = vld [vmem:[%s2786_s22 + $0x10] sm:$0xf]  ;;  %v2926_v44 = vld [vmem:[%s2786_s22 + $0x14] sm:$0x1] }
  0x2f   : > { %v620_v55 = vunpack.c.l.b16 %v256_v51  ;;  %v370_v63 = vor.u32 %v369_v53, %v365_v48  ;;  %v459_v0 = vshll.u32 %v2891_v45, 16  ;;  %v463_v1 = vshrl.u32 %v2891_v45, 16 }
  0x30   : > { %v469_v3 = vshll.u32 %v2898_v49, 16  ;;  %v361_v8 = vrot.slane %v360_v59, 4  ;;  %v455_v9 = vrot.slane %v453_v61, 5  ;;  %v546_v19 = vshrl.u32 %v214_v6, 16 }
  0x31   : > { %v651_v7 = vpack.c.b16 %v620_v55, %v619_v52  ;;  %v371_v11 = vrot.slane %v370_v63, 4  ;;  %v461_v13 = vrot.slane %v459_v0, 5  ;;  %v465_v14 = vrot.slane %v463_v1, 4  ;;  %v2938_v63 = vld [vmem:[%s2786_s22 + $0x48] sm:$0xf] }
  0x32   : > { %v471_v15 = vrot.slane %v469_v3, 5  ;;  %v366_v16 = vsel %vm2815_vm4, %v361_v8, %v365_v48  ;;  %v456_v17 = vor.u32 %v455_v9, %v452_v60  ;;  %v549_v20 = vshll.u32 %v214_v6, 16 }
  0x33   : > { %2457 = vmatmul.msk.bf16.vlgmr.msra.gmra.mxu0 %vm667_vm3, %v651_v7  ;;  %v376_v22 = vsel %vm2815_vm4, %v371_v11, %v375_v54  ;;  %v629_v23 = vunpack.c.l.b16 %v366_v16  ;;  %v466_v24 = vor.u32 %v465_v14, %v461_v13  ;;  %v555_v27 = vshll.u32 %v215_v10, 16  ;;  %v2945_v7 = vld [vmem:[%s2786_s22 + $0x4c] sm:$0xf] }
  0x34   : > { %v630_v28 = vunpack.c.l.b16 %v376_v22  ;;  %v457_v29 = vrot.slane %v456_v17, 4  ;;  %v548_v30 = vrot.slane %v546_v19, 4  ;;  %v551_v32 = vrot.slane %v549_v20, 5 }
  0x35   : > { %v467_v33 = vrot.slane %v466_v24, 4  ;;  %v557_v34 = vrot.slane %v555_v27, 5  ;;  %v559_v35 = vshrl.u32 %v215_v10, 16  ;;  %v565_v38 = vshll.u32 %v216_v18, 16 }
  0x36   : > { %v2918_v40 = vpack.c.b16 %v630_v28, %v629_v23  ;;  %v462_v41 = vsel %vm2815_vm4, %v457_v29, %v461_v13  ;;  %v552_v42 = vor.u32 %v551_v32, %v548_v30  ;;  %v258_v53 = vshrl.u32 %v2916_v39, 16  ;;  %v2959_v23 = vld [vmem:[%s2786_s22 + $0x78] sm:$0xf] }
  0x37   : > { %v472_v46 = vsel %vm2815_vm4, %v467_v33, %v471_v15  ;;  %v637_v47 = vunpack.c.l.b16 %v462_v41  ;;  %v561_v48 = vrot.slane %v559_v35, 4  ;;  %v567_v50 = vrot.slane %v565_v38, 5  ;;  %v2950_v15 = vld [vmem:[%s2786_s22 + $0x50] sm:$0x1] }
  0x38   : > { %2462 = vmatmul.msk.bf16.gmra.mxu1 %vm667_vm3, %v2918_v40  ;;  %v638_v51 = vunpack.c.l.b16 %v472_v46  ;;  %v553_v52 = vrot.slane %v552_v42, 4  ;;  %v261_v54 = vshll.u32 %v2916_v39, 16  ;;  %v267_v59 = vshll.u32 %v2923_v43, 16  ;;  %v2967_v42 = vld [vmem:[%s2786_s22 + $0x7c] sm:$0xf] }
  0x39   : > { %v562_v55 = vor.u32 %v561_v48, %v557_v34  ;;  %v271_v60 = vshrl.u32 %v2923_v43, 16  ;;  %v277_v61 = vshll.u32 %v2926_v44, 16  ;;  %v260_v3 = vrot.slane %v258_v53, 4  ;;  %v2970_v46 = vld [vmem:[%s2786_s22 + $0x80] sm:$0x1] }
  0x3a   : > { %v2940_v0 = vpack.c.b16 %v638_v51, %v637_v47  ;;  %v558_v1 = vsel %vm2815_vm4, %v553_v52, %v557_v34  ;;  %v263_v6 = vrot.slane %v261_v54, 5  ;;  %v269_v10 = vrot.slane %v267_v59, 5 }
  0x3b   : > { %v563_v8 = vrot.slane %v562_v55, 4  ;;  %v645_v9 = vunpack.c.l.b16 %v558_v1  ;;  %v273_v11 = vrot.slane %v271_v60, 4  ;;  %v279_v14 = vrot.slane %v277_v61, 5 }
  0x3c   : > { %2466 = vmatmul.msk.bf16.gmra.mxu2 %vm667_vm3, %v2940_v0  ;;  %v264_v13 = vor.u32 %v263_v6, %v260_v3  ;;  %v378_v16 = vshrl.u32 %v2938_v63, 16  ;;  %v381_v17 = vshll.u32 %v2938_v63, 16  ;;  %v387_v20 = vshll.u32 %v2945_v7, 16  ;;  %v2982_v6 = vld [vmem:[%s2786_s22 + $0xa8] sm:$0xf] }
  0x3d   : > { %v568_v18 = vsel %vm2815_vm4, %v563_v8, %v567_v50  ;;  %v274_v19 = vor.u32 %v273_v11, %v269_v10  ;;  %v391_v22 = vshrl.u32 %v2945_v7, 16  ;;  %v397_v34 = vshll.u32 %v2950_v15, 16  ;;  %3924 = vst [vmem:[#allocation5_spill] sm:$0xff] %v2982_v6  ;;  %v2989_v11 = vld [vmem:[%s2786_s22 + $0xac] sm:$0xf] }
  0x3e   : > { %v646_v24 = vunpack.c.l.b16 %v568_v18  ;;  %v265_v27 = vrot.slane %v264_v13, 4  ;;  %v380_v28 = vrot.slane %v378_v16, 4  ;;  %v383_v29 = vrot.slane %v381_v17, 5  ;;  %3925 = vst [vmem:[#allocation6_spill] sm:$0xff] %v2989_v11  ;;  %v2994_v18 = vld [vmem:[%s2786_s22 + $0xb0] sm:$0x1] }
  0x3f   : > { %v275_v30 = vrot.slane %v274_v19, 4  ;;  %v389_v32 = vrot.slane %v387_v20, 5  ;;  %v393_v33 = vrot.slane %v391_v22, 4  ;;  %v474_v47 = vshrl.u32 %v2959_v23, 16  ;;  %3926 = vst [vmem:[#allocation7_spill] sm:$0xff] %v2994_v18 }
  0x40   : > { %v2962_v35 = vpack.c.b16 %v646_v24, %v645_v9  ;;  %v270_v38 = vsel %vm2815_vm4, %v265_v27, %v269_v10  ;;  %v384_v41 = vor.u32 %v383_v29, %v380_v28  ;;  %v399_v52 = vrot.slane %v397_v34, 5 }
  0x41   : > { %v280_v48 = vsel %vm2815_vm4, %v275_v30, %v279_v14  ;;  %v621_v50 = vunpack.c.l.b16 %v270_v38  ;;  %v394_v51 = vor.u32 %v393_v33, %v389_v32  ;;  %v476_v55 = vrot.slane %v474_v47, 4 }
  0x42   : > { %3923 = vst [vmem:[#allocation4_spill] sm:$0xff] %v2962_v35  ;;  %2470 = vmatmul.msk.bf16.gmra.mxu3 %vm667_vm3, %v2962_v35  ;;  %v622_v53 = vunpack.c.l.b16 %v280_v48  ;;  %v385_v54 = vrot.slane %v384_v41, 4  ;;  %v477_v59 = vshll.u32 %v2959_v23, 16  ;;  %v483_v61 = vshll.u32 %v2967_v42, 16 }
  0x43   : > { %v395_v60 = vrot.slane %v394_v51, 4  ;;  %v487_v1 = vshrl.u32 %v2967_v42, 16  ;;  %v493_v3 = vshll.u32 %v2970_v46, 16  ;;  %v570_v24 = vshrl.u32 %v2982_v6, 16 }
  0x44   : > { %v2984_v8 = vpack.c.b16 %v622_v53, %v621_v50  ;;  %v390_v9 = vsel %vm2815_vm4, %v385_v54, %v389_v32  ;;  %v479_v10 = vrot.slane %v477_v59, 5  ;;  %v485_v16 = vrot.slane %v483_v61, 5  ;;  %v3003_v32 = vld [vmem:[%s2786_s22 + $0x18] sm:$0xf] }
  0x45   : > { %v400_v13 = vsel %vm2815_vm4, %v395_v60, %v399_v52  ;;  %v631_v14 = vunpack.c.l.b16 %v390_v9  ;;  %v489_v17 = vrot.slane %v487_v1, 4  ;;  %v495_v22 = vrot.slane %v493_v3, 5  ;;  %v3009_v52 = vld [vmem:[%s2786_s22 + $0x1c] sm:$0xf]  ;;  %v3022_v9 = vld [vmem:[%s2786_s22 + $0x54] sm:$0xf] }
  0x46   : > { %2458 = vmatmul.msk.bf16.gmra.mxu0 %vm667_vm3, %v2984_v8  ;;  %v632_v19 = vunpack.c.l.b16 %v400_v13  ;;  %v480_v20 = vor.u32 %v479_v10, %v476_v55  ;;  %v573_v28 = vshll.u32 %v2982_v6, 16  ;;  %v579_v29 = vshll.u32 %v2989_v11, 16  ;;  %v3016_v55 = vld [vmem:[%s2786_s22 + $0x20] sm:$0x1] }
  0x47   : > { %v490_v27 = vor.u32 %v489_v17, %v485_v16  ;;  %v583_v30 = vshrl.u32 %v2989_v11, 16  ;;  %v572_v38 = vrot.slane %v570_v24, 4  ;;  %v589_v41 = vshll.u32 %v2994_v18, 16  ;;  %v3102_v11 = vld [vmem:[%s2786_s22 + $0x2c] sm:$0x1] }
  0x48   : > { %v3005_v33 = vpack.c.b16 %v632_v19, %v631_v14  ;;  %v481_v34 = vrot.slane %v480_v20, 4  ;;  %v575_v48 = vrot.slane %v573_v28, 5  ;;  %v581_v50 = vrot.slane %v579_v29, 5  ;;  %v3031_v29 = vld [vmem:[%s2786_s22 + $0x58] sm:$0xf] }
  0x49   : > { %v491_v47 = vrot.slane %v490_v27, 4  ;;  %v585_v51 = vrot.slane %v583_v30, 4  ;;  %v591_v54 = vrot.slane %v589_v41, 5  ;;  %v282_v59 = vshrl.u32 %v3003_v32, 16 }
  0x4a   : > { %3927 = vst [vmem:[#allocation8_spill] sm:$0xff] %v3005_v33  ;;  %2463 = vmatmul.msk.bf16.gmra.mxu1 %vm667_vm3, %v3005_v33  ;;  %v486_v53 = vsel %vm2815_vm4, %v481_v34, %v485_v16  ;;  %v576_v1 = vor.u32 %v575_v48, %v572_v38  ;;  %v285_v14 = vshll.u32 %v3003_v32, 16  ;;  %v291_v16 = vshll.u32 %v3009_v52, 16  ;;  %v3039_v48 = vld [vmem:[%s2786_s22 + $0x5c] sm:$0x1] }
  0x4b   : > { %v496_v60 = vsel %vm2815_vm4, %v491_v47, %v495_v22  ;;  %v639_v61 = vunpack.c.l.b16 %v486_v53  ;;  %v586_v3 = vor.u32 %v585_v51, %v581_v50  ;;  %v284_v13 = vrot.slane %v282_v59, 4  ;;  %v3042_v51 = vld [vmem:[%s2786_s22 + $0x84] sm:$0xf] }
  0x4c   : > { %v640_v10 = vunpack.c.l.b16 %v496_v60  ;;  %v577_v17 = vrot.slane %v576_v1, 4  ;;  %v295_v20 = vshrl.u32 %v3009_v52, 16  ;;  %v301_v22 = vshll.u32 %v3016_v55, 16  ;;  %3928 = vst [vmem:[#allocation9_spill] sm:$0xff] %v3042_v51 }
  0x4d   : > { %v587_v19 = vrot.slane %v586_v3, 4  ;;  %v287_v27 = vrot.slane %v285_v14, 5  ;;  %v293_v28 = vrot.slane %v291_v16, 5  ;;  %v402_v30 = vshrl.u32 %v3022_v9, 16 }
  0x4e   : > { %v3028_v24 = vpack.c.b16 %v640_v10, %v639_v61  ;;  %v582_v34 = vsel %vm2815_vm4, %v577_v17, %v581_v50  ;;  %v297_v41 = vrot.slane %v295_v20, 4  ;;  %v303_v47 = vrot.slane %v301_v22, 5 }
  0x4f   : > { %v592_v38 = vsel %vm2815_vm4, %v587_v19, %v591_v54  ;;  %v647_v53 = vunpack.c.l.b16 %v582_v34  ;;  %v288_v60 = vor.u32 %v287_v27, %v284_v13  ;;  %v404_v61 = vrot.slane %v402_v30, 4  ;;  %v3054_v27 = vld [vmem:[%s2786_s22 + $0x88] sm:$0xf] }
  0x50   : > { %2467 = vmatmul.msk.bf16.gmra.mxu2 %vm667_vm3, %v3028_v24  ;;  %v648_v59 = vunpack.c.l.b16 %v592_v38  ;;  %v298_v1 = vor.u32 %v297_v41, %v293_v28  ;;  %v405_v50 = vshll.u32 %v3022_v9, 16  ;;  %v411_v54 = vshll.u32 %v3031_v29, 16  ;;  %v3061_v38 = vld [vmem:[%s2786_s22 + $0x8c] sm:$0x1] }
  0x51   : > { %v415_v3 = vshrl.u32 %v3031_v29, 16  ;;  %v289_v14 = vrot.slane %v288_v60, 4  ;;  %v421_v16 = vshll.u32 %v3039_v48, 16  ;;  %v498_v17 = vshrl.u32 %v3042_v51, 16 }
  0x52   : > { %v3049_v10 = vpack.c.b16 %v648_v59, %v647_v53  ;;  %v299_v19 = vrot.slane %v298_v1, 4  ;;  %v407_v20 = vrot.slane %v405_v50, 5  ;;  %v413_v22 = vrot.slane %v411_v54, 5 }
  0x53   : > { %v417_v13 = vrot.slane %v415_v3, 4  ;;  %v294_v30 = vsel %vm2815_vm4, %v289_v14, %v293_v28  ;;  %v423_v34 = vrot.slane %v421_v16, 5  ;;  %v500_v41 = vrot.slane %v498_v17, 4  ;;  %v3069_v14 = vld [vmem:[%s2786_s22 + $0xb4] sm:$0xf] }
  0x54   : > { %3929 = vst [vmem:[#allocation10_spill] sm:$0xff] %v3049_v10  ;;  %2471 = vmatmul.msk.bf16.gmra.mxu3 %vm667_vm3, %v3049_v10  ;;  %v501_v53 = vshll.u32 %v3042_v51, 16  ;;  %v304_v59 = vsel %vm2815_vm4, %v299_v19, %v303_v47  ;;  %v623_v60 = vunpack.c.l.b16 %v294_v30  ;;  %v408_v1 = vor.u32 %v407_v20, %v404_v61  ;;  %v3075_v61 = vld [vmem:[%s2786_s22 + $0xb8] sm:$0xf] }
  0x55   : > { %v418_v50 = vor.u32 %v417_v13, %v413_v22  ;;  %v624_v54 = vunpack.c.l.b16 %v304_v59  ;;  %v507_v10 = vshll.u32 %v3054_v27, 16  ;;  %v511_v28 = vshrl.u32 %v3054_v27, 16  ;;  %3930 = vst [vmem:[#allocation11_spill] sm:$0xff] %v3069_v14  ;;  %v3082_v59 = vld [vmem:[%s2786_s22 + $0xbc] sm:$0x1] }
  0x56   : > { %v503_v3 = vrot.slane %v501_v53, 5  ;;  %v409_v16 = vrot.slane %v408_v1, 4  ;;  %v517_v6 = vshll.u32 %v3061_v38, 16  ;;  %3931 = vst [vmem:[#allocation12_spill] sm:$0xff] %v3075_v61  ;;  %v594_v1 = vshrl.u32 %v3069_v14, 16 }
  0x57   : > { %v419_v17 = vrot.slane %v418_v50, 4  ;;  %v3072_v18 = vpack.c.b16 %v624_v54, %v623_v60  ;;  %v509_v19 = vrot.slane %v507_v10, 5  ;;  %v513_v30 = vrot.slane %v511_v28, 4  ;;  %3932 = vst [vmem:[#allocation13_spill] sm:$0xff] %v3082_v59 }
  0x58   : > { %v504_v47 = vor.u32 %v503_v3, %v500_v41  ;;  %v414_v20 = vsel %vm2815_vm4, %v409_v16, %v413_v22  ;;  %v519_v53 = vrot.slane %v517_v6, 5  ;;  %v596_v54 = vrot.slane %v594_v1, 4 }
  0x59   : > { %v424_v13 = vsel %vm2815_vm4, %v419_v17, %v423_v34  ;;  %2459 = vmatmul.msk.bf16.gmra.mxu0 %vm667_vm3, %v3072_v18  ;;  %v633_v10 = vunpack.c.l.b16 %v414_v20  ;;  %v514_v50 = vor.u32 %v513_v30, %v509_v19  ;;  %v597_v22 = vshll.u32 %v3069_v14, 16  ;;  %v3091_v34 = vld [vmem:[%s2786_s22 + $0x24] sm:$0xf] }
  0x5a   : > { %v634_v41 = vunpack.c.l.b16 %v424_v13  ;;  %v505_v60 = vrot.slane %v504_v47, 4  ;;  %v603_v3 = vshll.u32 %v3075_v61, 16  ;;  %v607_v6 = vshrl.u32 %v3075_v61, 16  ;;  %v3099_v47 = vld [vmem:[%s2786_s22 + $0x28] sm:$0xf] }
  0x5b   : > { %v515_v17 = vrot.slane %v514_v50, 4  ;;  %v613_v20 = vshll.u32 %v3082_v59, 16  ;;  %v599_v13 = vrot.slane %v597_v22, 5  ;;  %v1053_v61 = vrot.slane %v2841_v62, 5 }
  0x5c   : > { %v3093_v28 = vpack.c.b16 %v634_v41, %v633_v10  ;;  %v510_v16 = vsel %vm2815_vm4, %v505_v60, %v509_v19  ;;  %v605_v1 = vrot.slane %v603_v3, 5  ;;  %v609_v14 = vrot.slane %v607_v6, 4 }
  0x5d   : > { %v641_v30 = vunpack.c.l.b16 %v510_v16  ;;  %v520_v10 = vsel %vm2815_vm4, %v515_v17, %v519_v53  ;;  %v615_v19 = vrot.slane %v613_v20, 5  ;;  %v306_v41 = vshrl.u32 %v3091_v34, 16  ;;  %v2642_v17 = vld [vmem:[%s3878_s1 + $0x18] sm:$0xf] }
  0x5e   : > { %3933 = vst [vmem:[#allocation14_spill] sm:$0xff] %v3093_v28  ;;  %2464 = vmatmul.msk.bf16.gmra.mxu1 %vm667_vm3, %v3093_v28  ;;  %v642_v60 = vunpack.c.l.b16 %v520_v10  ;;  %v600_v50 = vor.u32 %v599_v13, %v596_v54  ;;  %v610_v59 = vor.u32 %v609_v14, %v605_v1  ;;  %v309_v22 = vshll.u32 %v3091_v34, 16  ;;  %v2663_v13 = vld [vmem:[%s3878_s1 + $0x1c] sm:$0xf] }
  0x5f   : > { %v308_v3 = vrot.slane %v306_v41, 4  ;;  %v315_v6 = vshll.u32 %v3099_v47, 16  ;;  %v319_v16 = vshrl.u32 %v3099_v47, 16  ;;  %v325_v62 = vshll.u32 %v3102_v11, 16  ;;  %v2625_v41 = vld [vmem:[%s3878_s1 + $0x14] sm:$0xf] }
  0x60   : > { %v3114_v35 = vpack.c.b16 %v642_v60, %v641_v30  ;;  %v601_v37 = vrot.slane %v600_v50, 4  ;;  %v611_v51 = vrot.slane %v610_v59, 4  ;;  %v311_v53 = vrot.slane %v309_v22, 5  ;;  %v2681_v60 = vld [vmem:[%s3878_s1 + $0x20] sm:$0xf] }
  0x61   : > { %v317_v54 = vrot.slane %v315_v6, 5  ;;  %v321_v14 = vrot.slane %v319_v16, 4  ;;  %v327_v20 = vrot.slane %v325_v62, 5  ;;  %vm1046_vm6 = vcmask 1046532  }
  0x62   : > { %2468 = vmatmul.msk.bf16.gmra.mxu2 %vm667_vm3, %v3114_v35  ;;  %v606_v30 = vsel %vm2815_vm4, %v601_v37, %v605_v1  ;;  %v616_v59 = vsel %vm2815_vm4, %v611_v51, %v615_v19  ;;  %v312_v10 = vor.u32 %v311_v53, %v308_v3  ;;  %vm3134_vm7 = vmor %vm1045_vm5, %vm1046_vm6  ;;  %v2553_v37 = vrot.slane %v2831_v56, 9 }
  0x63   : > { %v649_v50 = vunpack.c.l.b16 %v606_v30  ;;  %v650_v22 = vunpack.c.l.b16 %v616_v59  ;;  %v322_v6 = vor.u32 %v321_v14, %v317_v54  ;;  %v1050_v1 = vrot.slane %v2834_v57, 5 }
  0x64   : > { %v313_v51 = vrot.slane %v312_v10, 4  ;;  %v1823_v19 = vsel %vm716_vm0, %v2642_v17, 0  ;;  %v1979_v3 = vsel %vm716_vm0, %v2663_v13, 0  ;;  %v1689_v14 = vsel %vm716_vm0, %v2625_v41, 0 }
  0x65   : > { %v3142_v62 = vpack.c.b16 %v650_v22, %v649_v50  ;;  %v323_v53 = vrot.slane %v322_v6, 4  ;;  %1832 = vmatpush.bf16.msra.mxu2 %v1823_v19  ;;  %1988 = vmatpush.bf16.msra.mxu3 %v1979_v3  ;;  %v2119_v30 = vsel %vm716_vm0, %v2681_v60, 0  ;;  %v1051_v57 = vsel %vm3134_vm7, %v2553_v37, %v1050_v1  ;;  %v2701_v6 = vld [vmem:[%s2786_s22] sm:$0xff]  ;;  %v2702_v3 = vld [vmem:[%s2786_s22 + $0xc] sm:$0xff] }
  0x66   : > { %v318_v56 = vsel %vm2815_vm4, %v313_v51, %v317_v54  ;;  %v1052_v59 = vrot.slane %v1050_v1, 4  ;;  %1698 = vmatpush.bf16.msra.mxu1 %v1689_v14  ;;  %2128 = vmatpush.bf16.msra.mxu0 %v2119_v30  ;;  %v2554_v17 = vrot.slane %v2916_v39, 9  ;;  %v1162_v41 = vunpack.c.l.b16 %v1051_v57  ;;  %v3181_v14 = vld [vmem:[%s2786_s22 + $0x18] sm:$0xff] }
  0x67   : > { %2472 = vmatmul.msk.bf16.gmra.mxu3 %vm667_vm3, %v3142_v62  ;;  %v328_v13 = vsel %vm2815_vm4, %v323_v53, %v327_v20  ;;  %v625_v10 = vunpack.c.l.b16 %v318_v56  ;;  %v1057_v60 = vrot.slane %v2923_v43, 5  ;;  %v1060_v22 = vrot.slane %v2926_v44, 5 }
  0x68   : > { %v626_v50 = vunpack.c.l.b16 %v328_v13  ;;  %v1054_v54 = vsel %vm3134_vm7, %v1052_v59, %v1053_v61  ;;  %v1064_v53 = vrot.slane %v3009_v52, 5  ;;  %v2555_v30 = vrot.slane %v3003_v32, 9  ;;  %v3201_v13 = vld [vmem:[%s2786_s22 + $0x24] sm:$0xff] }
  0x69   : > { %v1163_v37 = vunpack.c.l.b16 %v1054_v54  ;;  %v1058_v39 = vsel %vm3134_vm7, %v2554_v17, %v1057_v60  ;;  %v1059_v51 = vrot.slane %v1057_v60, 4  ;;  %v1067_v57 = vrot.slane %v3016_v55, 5 }
  0x6a   : > { %v3162_v1 = vpack.c.b16 %v626_v50, %v625_v10  ;;  %v1164_v20 = vunpack.c.l.b16 %v1058_v39  ;;  %v1066_v56 = vrot.slane %v1064_v53, 4  ;;  %v1071_v55 = vrot.slane %v3099_v47, 5 }
  0x6b   : > { %v1194_v19 = vpack.c.b16 %v1163_v37, %v1162_v41  ;;  %v1061_v43 = vsel %vm3134_vm7, %v1059_v51, %v1060_v22  ;;  %v2556_v10 = vrot.slane %v3091_v34, 9  ;;  %v1074_v60 = vrot.slane %v3102_v11, 5  ;;  %v3223_v37 = vld [vmem:[%s2786_s22 + $0x30] sm:$0xff] }
  0x6c   : > { %2460 = vmatmul.msk.bf16.gmra.mxu0 %vm667_vm3, %v3162_v1  ;;  %v1165_v61 = vunpack.c.l.b16 %v1061_v43  ;;  %v1068_v52 = vsel %vm3134_vm7, %v1066_v56, %v1067_v57  ;;  %v1073_v41 = vrot.slane %v1071_v55, 4  ;;  %v1078_v11 = vrot.slane %v2799_v4, 5  ;;  %v3251_v57 = vld [vmem:[%s2786_s22 + $0x3c] sm:$0xff] }
  0x6d   : > { %v1167_v17 = vunpack.c.l.b16 %v1068_v52  ;;  %v1072_v50 = vsel %vm3134_vm7, %v2556_v10, %v1071_v55  ;;  %v2557_v39 = vrot.slane %v2795_v2, 9 }
  0x6e   : > { %2537 = vmatmul.msk.bf16.vlgmr.msrb.gmra.mxu1 %vm667_vm3, %v2701_v6  ;;  %v3169_v44 = vpack.c.b16 %v1165_v61, %v1164_v20  ;;  %v1075_v47 = vsel %vm3134_vm7, %v1073_v41, %v1074_v60  ;;  %v1168_v54 = vunpack.c.l.b16 %v1072_v50  ;;  %v1080_v51 = vrot.slane %v1078_v11, 4 }
  0x6f   : > { %v1169_v22 = vunpack.c.l.b16 %v1075_v47  ;;  %v1081_v20 = vrot.slane %v2802_v5, 5 }
  0x71   : > { %v3215_v34 = vpack.c.b16 %v1169_v22, %v1168_v54  ;;  %v1082_v4 = vsel %vm3134_vm7, %v1080_v51, %v1081_v20  ;;  %v1092_v22 = vrot.slane %v2945_v7, 5  ;;  %v2559_v51 = vrot.slane %v2938_v63, 9 }
  0x72   : > { %2570 = vmatmul.msk.bf16.vlgmr.msrb.gmra.mxu2 %vm667_vm3, %v1194_v19  ;;  %v1079_v19 = vsel %vm3134_vm7, %v2557_v39, %v1078_v11  ;;  %v1171_v61 = vunpack.c.l.b16 %v1082_v4  ;;  %v3285_v39 = vld [vmem:[%s2786_s22 + $0x48] sm:$0xff] }
  0x73   : > { %v1170_v43 = vunpack.c.l.b16 %v1079_v19  ;;  %3938 = vst [vmem:[#allocation17_spill] sm:$0xff] %v3285_v39  ;;  %v1094_v20 = vrot.slane %v1092_v22, 4  ;;  %v1095_v19 = vrot.slane %v2950_v15, 5  ;;  %v1093_v7 = vsel %vm3134_vm7, %v2559_v51, %v1092_v22 }
  0x74   : > { %v1174_v63 = vunpack.c.l.b16 %v1093_v7  ;;  %v2560_v22 = vrot.slane %v3022_v9, 9 }
  0x75   : > { %v3243_v5 = vpack.c.b16 %v1171_v61, %v1170_v43  ;;  %v1096_v61 = vsel %vm3134_vm7, %v1094_v20, %v1095_v19  ;;  %v1102_v20 = vrot.slane %v3039_v48, 5 }
  0x77   : > { %2591 = vmatmul.msk.bf16.vlgmr.msrb.gmra.mxu3 %vm667_vm3, %v2702_v3 }
  0x7c   : > { %2608 = vmatmul.msk.bf16.vlgmr.msrb.gmra.mxu0 %vm667_vm3, %v2984_v8  ;;  %v1065_v8 = vsel %vm3134_vm7, %v2555_v30, %v1064_v53  ;;  %v1085_v30 = vrot.slane %v2872_v26, 5 }
  0x7d   : > { %v1166_v59 = vunpack.c.l.b16 %v1065_v8  ;;  %v2558_v8 = vrot.slane %v2865_v21, 9 }
  0x7e   : > { %2538 = vmatmul.msk.bf16.gmra.mxu1 %vm667_vm3, %v2702_v3  ;;  %v1087_v52 = vrot.slane %v1085_v30, 4 }
  0x7f   : > { %v3195_v32 = vpack.c.b16 %v1167_v17, %v1166_v59  ;;  %v1088_v59 = vrot.slane %v2876_v31, 5  ;;  %v1086_v26 = vsel %vm3134_vm7, %v2558_v8, %v1085_v30  ;;  %v1175_v8 = vunpack.c.l.b16 %v1096_v61 }
  0x80   : > { %v1172_v60 = vunpack.c.l.b16 %v1086_v26  ;;  %v1099_v26 = vrot.slane %v3031_v29, 5 }
  0x81   : > { %v1089_v10 = vsel %vm3134_vm7, %v1087_v52, %v1088_v59  ;;  %v3309_v59 = vpack.c.b16 %v1175_v8, %v1174_v63 }
  0x82   : > { %2571 = vmatmul.msk.bf16.gmra.mxu2 %vm667_vm3, %v3169_v44  ;;  %v1173_v31 = vunpack.c.l.b16 %v1089_v10  ;;  %v1101_v51 = vrot.slane %v1099_v26, 4  ;;  %v1100_v29 = vsel %vm3134_vm7, %v2560_v22, %v1099_v26  ;;  %v2732_v22 = vld [vmem:[%s2786_s22 + $0x64] sm:$0xf] }
  0x83   : > { %3941 = vst [vmem:[#allocation20_spill] sm:$0xff] %v3309_v59  ;;  %v1176_v63 = vunpack.c.l.b16 %v1100_v29 }
  0x84   : > { %v3275_v47 = vpack.c.b16 %v1173_v31, %v1172_v60  ;;  %v3319_v31 = vld [vmem:[%s2786_s22 + $0x54] sm:$0xff]  ;;  %v1103_v61 = vsel %vm3134_vm7, %v1101_v51, %v1102_v20  ;;  %v1106_v51 = vrot.slane %v2732_v22, 5 }
  0x85   : > { %3942 = vst [vmem:[#allocation21_spill] sm:$0xff] %v3319_v31  ;;  %v1177_v48 = vunpack.c.l.b16 %v1103_v61  ;;  %v2733_v61 = vld [vmem:[%s2786_s22 + $0x68] sm:$0x1] }
  0x87   : > { %2592 = vmatmul.msk.bf16.gmra.mxu3 %vm667_vm3, %v3181_v14 }
  0x8c   : > { %2609 = vmatmul.msk.bf16.gmra.mxu0 %vm667_vm3, %v3072_v18 }
  0x8e   : > { %2539 = vmatmul.msk.bf16.gmra.mxu1 %vm667_vm3, %v3181_v14 }
  0x92   : > { %2572 = vmatmul.msk.bf16.gmra.mxu2 %vm667_vm3, %v3195_v32 }
  0x97   : > { %2593 = vmatmul.msk.bf16.gmra.mxu3 %vm667_vm3, %v3201_v13 }
  0x9c   : > { %2610 = vmatmul.msk.bf16.gmra.mxu0 %vm667_vm3, %v3162_v1 }
  0x9e   : > { %2540 = vmatmul.msk.bf16.gmra.mxu1 %vm667_vm3, %v3201_v13 }
  0xa2   : > { %v3218_v6 = vpop.f32.mrf.mxu1  ;;  %2573 = vmatmul.msk.bf16.gmra.mxu2 %vm667_vm3, %v3215_v34 }
  0xa7   : > { %2594 = vmatmul.msk.bf16.gmra.mxu3 %vm667_vm3, %v3223_v37 }
  0xaa   : > { %v3235_v53 = vpop.f32.mrf.mxu1 }
  0xab   : > { %v3233_v3 = vpop.f32.mrf.mxu2 }
  0xac   : > { %2611 = vmatmul.msk.bf16.gmra.mxu0 %vm667_vm3, %v2836_v58 }
  0xae   : > { %2541 = vmatmul.msk.bf16.gmra.mxu1 %vm667_vm3, %v3223_v37 }
  0xaf   : > { %v3246_v56 = vpop.f32.mrf.mxu3 }
  0xb0   : > { %v3241_v2 = vpop.f32.mrf.mxu0  ;;  %3936 = vst [vmem:[#allocation15_spill] sm:$0xff] %v3246_v56 }
  0xb2   : > { %2574 = vmatmul.msk.bf16.gmra.mxu2 %vm667_vm3, %v3243_v5 }
  0xb3   : > { %v3255_v17 = vpop.f32.mrf.mxu2 }
  0xb5   : > { %v3257_v55 = vpop.f32.mrf.mxu1 }
  0xb7   : > { %2595 = vmatmul.msk.bf16.gmra.mxu3 %vm667_vm3, %v3251_v57  ;;  %v3267_v21 = vpop.f32.mrf.mxu3 }
  0xb8   : > { %v3265_v41 = vpop.f32.mrf.mxu0  ;;  %3937 = vst [vmem:[#allocation16_spill] sm:$0xff] %v3267_v21 }
  0xbc   : > { %2612 = vmatmul.msk.bf16.gmra.mxu0 %vm667_vm3, %v2918_v40 }
  0xbd   : > { %v3271_v50 = vpop.f32.mrf.mxu1 }
  0xbe   : > { %2542 = vmatmul.msk.bf16.gmra.mxu1 %vm667_vm3, %v3251_v57 }
  0xbf   : > { %v3277_v54 = vpop.f32.mrf.mxu2 }
  0xc2   : > { %2575 = vmatmul.msk.bf16.gmra.mxu2 %vm667_vm3, %v3275_v47 }
  0xc3   : > { %v3280_v11 = vpop.f32.mrf.mxu0 }
  0xc5   : > { %v3289_v4 = vpop.f32.mrf.mxu3 }
  0xc6   : > { %3939 = vst [vmem:[#allocation18_spill] sm:$0xff] %v3289_v4  ;;  %v3354_v4 = vld [vmem:[%s2786_s22 + $0x60] sm:$0xff] }
  0xc7   : > { %v3291_v43 = vpop.f32.mrf.mxu1  ;;  %2596 = vmatmul.msk.bf16.gmra.mxu3 %vm667_vm3, %v3285_v39  ;;  %v3299_v30 = vpop.f32.mrf.mxu2  ;;  %3946 = vst [vmem:[#allocation25_spill] sm:$0xff] %v3354_v4 }
  0xcb   : > { %v3303_v15 = vpop.f32.mrf.mxu0 }
  0xcc   : > { %2613 = vmatmul.msk.bf16.gmra.mxu0 %vm667_vm3, %v3005_v33 }
  0xcd   : > { %v3305_v52 = vpop.f32.mrf.mxu3 }
  0xce   : > { %3940 = vst [vmem:[#allocation19_spill] sm:$0xff] %v3305_v52  ;;  %2543 = vmatmul.msk.bf16.gmra.mxu1 %vm667_vm3, %v3285_v39  ;;  %v1109_v52 = vrot.slane %v2733_v61, 5 }
  0xcf   : > { %v3312_v10 = vpop.f32.mrf.mxu1 }
  0xd2   : > { %2576 = vmatmul.msk.bf16.gmra.mxu2 %vm667_vm3, %v3309_v59 }
  0xd3   : > { %v3316_v60 = vpop.f32.mrf.mxu2 }
  0xd6   : > { %v3323_v19 = vpop.f32.mrf.mxu0 }
  0xd7   : > { %v3325_v7 = vpop.f32.mrf.mxu3  ;;  %2597 = vmatmul.msk.bf16.gmra.mxu3 %vm667_vm3, %v3319_v31 }
  0xd8   : > { %3943 = vst [vmem:[#allocation22_spill] sm:$0xff] %v3325_v7  ;;  %v3341_v7 = vpack.c.b16 %v1177_v48, %v1176_v63 }
  0xda   : > { %3944 = vst [vmem:[#allocation23_spill] sm:$0xff] %v3341_v7 }
  0xdb   : > { %v3333_v9 = vpop.f32.mrf.mxu1  ;;  %v3335_v8 = vpop.f32.mrf.mxu2 }
  0xdc   : > { %2614 = vmatmul.msk.bf16.gmra.mxu0 %vm667_vm3, %v3093_v28  ;;  %v2734_v28 = vld [vmem:[%s2786_s22 + $0x60] sm:$0xf] }
  0xdd   : > { %v2561_v21 = vrot.slane %v2734_v28, 9 }
  0xde   : > { %2544 = vmatmul.msk.bf16.gmra.mxu1 %vm667_vm3, %v3319_v31  ;;  %v3343_v26 = vpop.f32.mrf.mxu0  ;;  %v1108_v31 = vrot.slane %v1106_v51, 4 }
  0xdf   : > { %v3346_v20 = vpop.f32.mrf.mxu3  ;;  %v1107_v48 = vsel %vm3134_vm7, %v2561_v21, %v1106_v51 }
  0xe0   : > { %3945 = vst [vmem:[#allocation24_spill] sm:$0xff] %v3346_v20  ;;  %v1110_v22 = vsel %vm3134_vm7, %v1108_v31, %v1109_v52  ;;  %v1178_v59 = vunpack.c.l.b16 %v1107_v48  ;;  %v1113_v52 = vrot.slane %v2891_v45, 5  ;;  %v3387_v48 = vld [vmem:[%s2786_s22 + $0x6c] sm:$0xff] }
  0xe1   : > { %v1179_v28 = vunpack.c.l.b16 %v1110_v22 }
  0xe2   : > { %2577 = vmatmul.msk.bf16.gmra.mxu2 %vm667_vm3, %v3341_v7 }
  0xe3   : > { %v3350_v29 = vpop.f32.mrf.mxu1  ;;  %v3376_v21 = vpack.c.b16 %v1179_v28, %v1178_v59  ;;  %v1115_v59 = vrot.slane %v1113_v52, 4 }
  0xe5   : > { %v3357_v63 = vpop.f32.mrf.mxu2  ;;  %3949 = vst [vmem:[#allocation28_spill] sm:$0xff] %v3376_v21 }
  0xe7   : > { %2598 = vmatmul.msk.bf16.gmra.mxu3 %vm667_vm3, %v3354_v4 }
  0xe9   : > { %v3365_v20 = vpop.f32.mrf.mxu0 }
  0xea   : > { %v3367_v61 = vpop.f32.mrf.mxu3 }
  0xeb   : > { %3947 = vst [vmem:[#allocation26_spill] sm:$0xff] %v3367_v61  ;;  %v949_v7 = vpop.f32.mrf.mxu1  ;;  %v2562_v61 = vrot.slane %v2882_v36, 9 }
  0xec   : > { %v950_v33 = vadd.f32 %v949_v7, %v3241_v2  ;;  %2615 = vmatmul.msk.bf16.gmra.mxu0 %vm667_vm3, %v2855_v12  ;;  %v1116_v7 = vrot.slane %v2898_v49, 5 }
  0xed   : > { %v3372_v56 = vpop.f32.mrf.mxu2  ;;  %v1114_v45 = vsel %vm3134_vm7, %v2562_v61, %v1113_v52 }
  0xee   : > { %3948 = vst [vmem:[#allocation27_spill] sm:$0xff] %v3372_v56  ;;  %2545 = vmatmul.msk.bf16.gmra.mxu1 %vm667_vm3, %v3354_v4  ;;  %v1180_v39 = vunpack.c.l.b16 %v1114_v45 }
  0xf1   : > { %v3379_v31 = vpop.f32.mrf.mxu0 }
  0xf2   : > { %v3381_v51 = vpop.f32.mrf.mxu3  ;;  %2578 = vmatmul.msk.bf16.gmra.mxu2 %vm667_vm3, %v3376_v21 }
  0xf3   : > { %3950 = vst [vmem:[#allocation29_spill] sm:$0xff] %v3381_v51  ;;  %v951_v2 = vpop.f32.mrf.mxu1  ;;  %v1117_v51 = vsel %vm3134_vm7, %v1115_v59, %v1116_v7  ;;  %v1120_v7 = vrot.slane %v2967_v42, 5 }
  0xf4   : > { %v952_v22 = vadd.f32 %v951_v2, %v3265_v41  ;;  %v1181_v56 = vunpack.c.l.b16 %v1117_v51  ;;  %v1123_v51 = vrot.slane %v2970_v46, 5 }
  0xf5   : > { %v1270_v28 = vpop.f32.mrf.mxu2 }
  0xf6   : > { %v1350_v12 = vadd.f32 %v1270_v28, %v950_v33  ;;  %v3404_v2 = vpack.c.b16 %v1181_v56, %v1180_v39  ;;  %v3411_v28 = vld [vmem:[%s2786_s22 + $0x78] sm:$0xff] }
  0xf7   : > { %2599 = vmatmul.msk.bf16.gmra.mxu3 %vm667_vm3, %v3387_v48 }
  0xf9   : > { %v1560_v21 = vpop.f32.mrf.mxu0 }
  0xfa   : > { %v1404_v49 = vpop.f32.mrf.mxu3 }
  0xfb   : > { %v954_v4 = vpop.f32.mrf.mxu1  ;;  %v1484_v41 = vadd.f32 %v1404_v49, %v1350_v12 }
  0xfc   : > { %v955_v36 = vadd.f32 %v954_v4, %v3280_v11  ;;  %2616 = vmatmul.msk.bf16.gmra.mxu0 %vm667_vm3, %v2940_v0 }
  0xfd   : > { %v1272_v33 = vpop.f32.mrf.mxu2  ;;  %v3402_v61 = vadd.f32 %v1560_v21, %v1484_v41  ;;  %v2563_v21 = vrot.slane %v2959_v23, 9 }
  0xfe   : > { %2546 = vmatmul.msk.bf16.gmra.mxu1 %vm667_vm3, %v3387_v48  ;;  %v1351_v52 = vadd.f32 %v1272_v33, %v952_v22  ;;  %v1122_v22 = vrot.slane %v1120_v7, 4 }
  0xff   : > { %v1121_v46 = vsel %vm3134_vm7, %v2563_v21, %v1120_v7 }
 0x100   : > { %v1124_v49 = vsel %vm3134_vm7, %v1122_v22, %v1123_v51  ;;  %v1130_v22 = vrot.slane %v3061_v38, 5 }
 0x101   : > { %v1562_v59 = vpop.f32.mrf.mxu0 }
 0x102   : > { %v1406_v12 = vpop.f32.mrf.mxu3  ;;  %2579 = vmatmul.msk.bf16.gmra.mxu2 %vm667_vm3, %v3404_v2 }
 0x103   : > { %v956_v11 = vpop.f32.mrf.mxu1  ;;  %v1485_v4 = vadd.f32 %v1406_v12, %v1351_v52  ;;  %v1183_v12 = vunpack.c.l.b16 %v1124_v49 }
 0x104   : > { %v957_v45 = vadd.f32 %v956_v11, %v3303_v15  ;;  %v1182_v15 = vunpack.c.l.b16 %v1121_v46  ;;  %v3437_v46 = vld [vmem:[%s2786_s22 + $0x84] sm:$0xff] }
 0x105   : > { %v1275_v56 = vpop.f32.mrf.mxu2  ;;  %v3415_v39 = vadd.f32 %v1562_v59, %v1485_v4  ;;  %v1127_v4 = vrot.slane %v3054_v27, 5 }
 0x106   : > { %v1352_v42 = vadd.f32 %v1275_v56, %v955_v36  ;;  %v3430_v51 = vpack.c.b16 %v1183_v12, %v1182_v15 }
 0x107   : > { %2600 = vmatmul.msk.bf16.gmra.mxu3 %vm667_vm3, %v3411_v28 }
 0x109   : > { %v1565_v41 = vpop.f32.mrf.mxu0 }
 0x10a   : > { %v1409_v33 = vpop.f32.mrf.mxu3 }
 0x10b   : > { %v959_v52 = vpop.f32.mrf.mxu1  ;;  %v1486_v23 = vadd.f32 %v1409_v33, %v1352_v42 }
 0x10c   : > { %v960_v59 = vadd.f32 %v959_v52, %v3323_v19  ;;  %2617 = vmatmul.msk.bf16.gmra.mxu0 %vm667_vm3, %v3028_v24 }
 0x10d   : > { %v1277_v36 = vpop.f32.mrf.mxu2  ;;  %v3428_v7 = vadd.f32 %v1565_v41, %v1486_v23  ;;  %v3951_v41 = vld [vmem:[#allocation9_spill] sm:$0xff] }
 0x10e   : > { %2547 = vmatmul.msk.bf16.gmra.mxu1 %vm667_vm3, %v3411_v28  ;;  %v1353_v11 = vadd.f32 %v1277_v36, %v957_v45  ;;  %v2564_v33 = vrot.slane %v3951_v41, 9  ;;  %v1129_v45 = vrot.slane %v1127_v4, 4  ;;  %v2735_v41 = vld [vmem:[%s2786_s22 + $0x94] sm:$0xf] }
 0x110   : > { %v1128_v38 = vsel %vm3134_vm7, %v2564_v33, %v1127_v4  ;;  %v1131_v12 = vsel %vm3134_vm7, %v1129_v45, %v1130_v22  ;;  %v1134_v33 = vrot.slane %v2735_v41, 5 }
 0x111   : > { %v1567_v21 = vpop.f32.mrf.mxu0 }
 0x112   : > { %v1411_v56 = vpop.f32.mrf.mxu3  ;;  %2580 = vmatmul.msk.bf16.gmra.mxu2 %vm667_vm3, %v3430_v51 }
 0x113   : > { %v961_v19 = vpop.f32.mrf.mxu1  ;;  %v1487_v42 = vadd.f32 %v1411_v56, %v1353_v11  ;;  %v1184_v11 = vunpack.c.l.b16 %v1128_v38  ;;  %v1185_v56 = vunpack.c.l.b16 %v1131_v12 }
 0x114   : > { %v962_v49 = vadd.f32 %v961_v19, %v3343_v26 }
 0x115   : > { %v1280_v52 = vpop.f32.mrf.mxu2  ;;  %v3441_v15 = vadd.f32 %v1567_v21, %v1487_v42  ;;  %v3456_v42 = vpack.c.b16 %v1185_v56, %v1184_v11 }
 0x116   : > { %v1354_v27 = vadd.f32 %v1280_v52, %v960_v59  ;;  %v2736_v52 = vld [vmem:[%s2786_s22 + $0x98] sm:$0x1] }
 0x117   : > { %3952 = vst [vmem:[#allocation9_spill] sm:$0xff] %v3441_v15  ;;  %2601 = vmatmul.msk.bf16.gmra.mxu3 %vm667_vm3, %v3437_v46  ;;  %v2740_v15 = vld [vmem:[%s2786_s22 + $0x9c] sm:$0xf] }
 0x118   : > { %3954 = vst [vmem:[#allocation31_spill] sm:$0xff] %v3456_v42 }
 0x119   : > { %v1570_v23 = vpop.f32.mrf.mxu0 }
 0x11a   : > { %v1414_v26 = vpop.f32.mrf.mxu3 }
 0x11b   : > { %v964_v36 = vpop.f32.mrf.mxu1  ;;  %v1488_v19 = vadd.f32 %v1414_v26, %v1354_v27  ;;  %v1137_v27 = vrot.slane %v2736_v52, 5  ;;  %v3463_v26 = vld [vmem:[%s2786_s22 + $0x90] sm:$0xff] }
 0x11c   : > { %v965_v21 = vadd.f32 %v964_v36, %v3365_v20  ;;  %2618 = vmatmul.msk.bf16.gmra.mxu0 %vm667_vm3, %v3114_v35  ;;  %3955 = vst [vmem:[#allocation32_spill] sm:$0xff] %v3463_v26 }
 0x11d   : > { %v1282_v59 = vpop.f32.mrf.mxu2  ;;  %v3454_v4 = vadd.f32 %v1570_v23, %v1488_v19  ;;  %v2737_v23 = vld [vmem:[%s2786_s22 + $0x90] sm:$0xf] }
 0x11e   : > { %2548 = vmatmul.msk.bf16.gmra.mxu1 %vm667_vm3, %v3437_v46  ;;  %v1355_v22 = vadd.f32 %v1282_v59, %v962_v49  ;;  %v2565_v19 = vrot.slane %v2737_v23, 9  ;;  %v1136_v49 = vrot.slane %v1134_v33, 4 }
 0x11f   : > { %3953 = vst [vmem:[#allocation30_spill] sm:$0xff] %v3454_v4 }
 0x120   : > { %v1135_v41 = vsel %vm3134_vm7, %v2565_v19, %v1134_v33  ;;  %v2738_v19 = vld [vmem:[%s2786_s22 + $0xa0] sm:$0xf] }
 0x121   : > { %v1572_v45 = vpop.f32.mrf.mxu0 }
 0x122   : > { %v1416_v20 = vpop.f32.mrf.mxu3  ;;  %2581 = vmatmul.msk.bf16.gmra.mxu2 %vm667_vm3, %v3456_v42 }
 0x123   : > { %v966_v38 = vpop.f32.mrf.mxu1  ;;  %v1489_v12 = vadd.f32 %v1416_v20, %v1355_v22  ;;  %v1138_v22 = vsel %vm3134_vm7, %v1136_v49, %v1137_v27  ;;  %v1141_v49 = vrot.slane %v2738_v19, 5 }
 0x124   : > { %v967_v36 = vadd.f32 %v966_v38, %v3379_v31  ;;  %v1186_v38 = vunpack.c.l.b16 %v1135_v41  ;;  %v1187_v23 = vunpack.c.l.b16 %v1138_v22  ;;  %v2739_v22 = vld [vmem:[%s2786_s22 + $0xa4] sm:$0x1] }
 0x125   : > { %v1285_v11 = vpop.f32.mrf.mxu2  ;;  %v3467_v56 = vadd.f32 %v1572_v45, %v1489_v12  ;;  %v3957_v45 = vld [vmem:[#allocation3_spill] sm:$0xff] }
 0x126   : > { %v1356_v59 = vadd.f32 %v1285_v11, %v965_v21  ;;  %v3481_v27 = vpack.c.b16 %v1187_v23, %v1186_v38 }
 0x127   : > { %3956 = vst [vmem:[#allocation33_spill] sm:$0xff] %v3467_v56  ;;  %2602 = vmatmul.msk.bf16.gmra.mxu3 %vm667_vm3, %v3463_v26 }
 0x128   : > { %3959 = vst [vmem:[#allocation35_spill] sm:$0xff] %v3481_v27 }
 0x129   : > { %v1575_v52 = vpop.f32.mrf.mxu0 }
 0x12a   : > { %v1419_v20 = vpop.f32.mrf.mxu3 }
 0x12b   : > { %v969_v31 = vpop.f32.mrf.mxu1  ;;  %v1490_v4 = vadd.f32 %v1419_v20, %v1356_v59  ;;  %v1144_v20 = vrot.slane %v2739_v22, 5 }
 0x12c   : > { %2619 = vmatmul.msk.bf16.gmra.mxu0 %vm667_vm3, %v3957_v45  ;;  %v3488_v45 = vld [vmem:[%s2786_s22 + $0x9c] sm:$0xff] }
 0x12d   : > { %v1287_v21 = vpop.f32.mrf.mxu2  ;;  %v3479_v33 = vadd.f32 %v1575_v52, %v1490_v4  ;;  %3960 = vst [vmem:[#allocation36_spill] sm:$0xff] %v3488_v45  ;;  %v1143_v4 = vrot.slane %v1141_v49, 4 }
 0x12e   : > { %2549 = vmatmul.msk.bf16.gmra.mxu1 %vm667_vm3, %v3463_v26  ;;  %v1357_v12 = vadd.f32 %v1287_v21, %v967_v36  ;;  %v2566_v26 = vrot.slane %v2740_v15, 9  ;;  %v970_v36 = vadd.f32 %v969_v31, %v3218_v6  ;;  %v3962_v31 = vld [vmem:[#allocation4_spill] sm:$0xff] }
 0x12f   : > { %3958 = vst [vmem:[#allocation34_spill] sm:$0xff] %v3479_v33 }
 0x130   : > { %v1142_v21 = vsel %vm3134_vm7, %v2566_v26, %v1141_v49 }
 0x131   : > { %v1577_v11 = vpop.f32.mrf.mxu0  ;;  %v1188_v15 = vunpack.c.l.b16 %v1142_v21 }
 0x132   : > { %v1421_v41 = vpop.f32.mrf.mxu3  ;;  %2582 = vmatmul.msk.bf16.gmra.mxu2 %vm667_vm3, %v3481_v27 }
 0x133   : > { %v971_v59 = vpop.f32.mrf.mxu1  ;;  %v1491_v56 = vadd.f32 %v1421_v41, %v1357_v12  ;;  %v1145_v12 = vsel %vm3134_vm7, %v1143_v4, %v1144_v20  ;;  %v3965_v4 = vld [vmem:[#allocation6_spill] sm:$0xff] }
 0x134   : > { %v1189_v33 = vunpack.c.l.b16 %v1145_v12  ;;  %v3966_v12 = vld [vmem:[#allocation7_spill] sm:$0xff] }
 0x135   : > { %v1290_v52 = vpop.f32.mrf.mxu2  ;;  %v3492_v38 = vadd.f32 %v1577_v11, %v1491_v56  ;;  %v972_v56 = vadd.f32 %v971_v59, %v3235_v53  ;;  %v3514_v59 = vld [vmem:[%s2786_s22 + $0xa8] sm:$0xff] }
 0x136   : > { %v1358_v23 = vadd.f32 %v1290_v52, %v970_v36  ;;  %v3507_v20 = vpack.c.b16 %v1189_v33, %v1188_v15  ;;  %v1148_v36 = vrot.slane %v3965_v4, 5  ;;  %3967 = vst [vmem:[#allocation6_spill] sm:$0xff] %v3514_v59 }
 0x137   : > { %3961 = vst [vmem:[#allocation37_spill] sm:$0xff] %v3492_v38  ;;  %2603 = vmatmul.msk.bf16.gmra.mxu3 %vm667_vm3, %v3488_v45  ;;  %v3968_v38 = vld [vmem:[#allocation5_spill] sm:$0xff] }
 0x138   : > { %3964 = vst [vmem:[#allocation39_spill] sm:$0xff] %v3507_v20 }
 0x139   : > { %v1580_v19 = vpop.f32.mrf.mxu0 }
 0x13a   : > { %v1424_v41 = vpop.f32.mrf.mxu3 }
 0x13b   : > { %v974_v22 = vpop.f32.mrf.mxu1  ;;  %v1492_v6 = vadd.f32 %v1424_v41, %v1358_v23  ;;  %v1151_v41 = vrot.slane %v3966_v12, 5 }
 0x13c   : > { %2620 = vmatmul.msk.bf16.gmra.mxu0 %vm667_vm3, %v3962_v31  ;;  %v2567_v31 = vrot.slane %v3968_v38, 9 }
 0x13d   : > { %v1292_v11 = vpop.f32.mrf.mxu2  ;;  %v3505_v26 = vadd.f32 %v1580_v19, %v1492_v6  ;;  %v1150_v19 = vrot.slane %v1148_v36, 4  ;;  %v975_v6 = vadd.f32 %v974_v22, %v3257_v55 }
 0x13e   : > { %2550 = vmatmul.msk.bf16.gmra.mxu1 %vm667_vm3, %v3488_v45  ;;  %v1359_v49 = vadd.f32 %v1292_v11, %v972_v56  ;;  %v1149_v11 = vsel %vm3134_vm7, %v2567_v31, %v1148_v36  ;;  %v3532_v31 = vld [vmem:[%s2786_s22 + $0xc0] sm:$0xf] }
 0x13f   : > { %3963 = vst [vmem:[#allocation38_spill] sm:$0xff] %v3505_v26  ;;  %v1190_v12 = vunpack.c.l.b16 %v1149_v11  ;;  %v3970_v26 = vld [vmem:[#allocation10_spill] sm:$0xff]  ;;  %v1517_v11 = vshrl.u32 %v3532_v31, 16 }
 0x140   : > { %3971 = vst [vmem:[#allocation5_spill] sm:$0xff] %v3532_v31 }
 0x141   : > { %v1582_v52 = vpop.f32.mrf.mxu0 }
 0x142   : > { %v1426_v21 = vpop.f32.mrf.mxu3  ;;  %2583 = vmatmul.msk.bf16.gmra.mxu2 %vm667_vm3, %v3507_v20 }
 0x143   : > { %v976_v23 = vpop.f32.mrf.mxu1  ;;  %v1493_v53 = vadd.f32 %v1426_v21, %v1359_v49  ;;  %v1152_v49 = vsel %vm3134_vm7, %v1150_v19, %v1151_v41 }
 0x144   : > { %v1191_v55 = vunpack.c.l.b16 %v1152_v49 }
 0x145   : > { %v1295_v33 = vpop.f32.mrf.mxu2  ;;  %v3518_v15 = vadd.f32 %v1582_v52, %v1493_v53  ;;  %v977_v52 = vadd.f32 %v976_v23, %v3271_v50  ;;  %v1520_v50 = vshll.u32 %v3532_v31, 16 }
 0x146   : > { %v1360_v56 = vadd.f32 %v1295_v33, %v975_v6  ;;  %v3536_v19 = vpack.c.b16 %v1191_v55, %v1190_v12  ;;  %v3539_v6 = vld [vmem:[%s2786_s22 + $0xc4] sm:$0xf]  ;;  %v3975_v33 = vld [vmem:[#allocation12_spill] sm:$0xff]  ;;  %v3976_v12 = vld [vmem:[#allocation13_spill] sm:$0xff] }
 0x147   : > { %3969 = vst [vmem:[#allocation7_spill] sm:$0xff] %v3518_v15  ;;  %2604 = vmatmul.msk.bf16.gmra.mxu3 %vm667_vm3, %v3514_v59  ;;  %v1526_v23 = vshll.u32 %v3539_v6, 16  ;;  %v1158_v55 = vrot.slane %v3976_v12, 5  ;;  %v1522_v20 = vrot.slane %v1520_v50, 5 }
 0x148   : > { %3973 = vst [vmem:[#allocation41_spill] sm:$0xff] %v3536_v19 }
 0x149   : > { %v1585_v4 = vpop.f32.mrf.mxu0  ;;  %3974 = vst [vmem:[#allocation42_spill] sm:$0xff] %v3539_v6 }
 0x14a   : > { %v1429_v38 = vpop.f32.mrf.mxu3 }
 0x14b   : > { %v979_v21 = vpop.f32.mrf.mxu1  ;;  %v1494_v22 = vadd.f32 %v1429_v38, %v1360_v56  ;;  %v1155_v56 = vrot.slane %v3975_v33, 5  ;;  %v1530_v38 = vshrl.u32 %v3539_v6, 16  ;;  %v1528_v6 = vrot.slane %v1526_v23, 5 }
 0x14c   : > { %2621 = vmatmul.msk.bf16.gmra.mxu0 %vm667_vm3, %v3970_v26  ;;  %v980_v31 = vadd.f32 %v979_v21, %v3291_v43  ;;  %v1519_v26 = vrot.slane %v1517_v11, 4 }
 0x14d   : > { %v1297_v53 = vpop.f32.mrf.mxu2  ;;  %v3534_v36 = vadd.f32 %v1585_v4, %v1494_v22  ;;  %v1532_v45 = vrot.slane %v1530_v38, 4 }
 0x14e   : > { %2551 = vmatmul.msk.bf16.gmra.mxu1 %vm667_vm3, %v3514_v59  ;;  %v1361_v41 = vadd.f32 %v1297_v53, %v977_v52  ;;  %v3550_v52 = vld [vmem:[%s2786_s22 + $0xb4] sm:$0xff]  ;;  %v3977_v53 = vld [vmem:[#allocation11_spill] sm:$0xff]  ;;  %v1523_v21 = vor.u32 %v1522_v20, %v1519_v26 }
 0x14f   : > { %3972 = vst [vmem:[#allocation40_spill] sm:$0xff] %v3534_v36  ;;  %v2568_v33 = vrot.slane %v3977_v53, 9  ;;  %v1157_v36 = vrot.slane %v1155_v56, 4  ;;  %v1533_v11 = vor.u32 %v1532_v45, %v1528_v6 }
 0x151   : > { %v1587_v49 = vpop.f32.mrf.mxu0  ;;  %v1534_v26 = vrot.slane %v1533_v11, 4 }
 0x152   : > { %v1431_v15 = vpop.f32.mrf.mxu3  ;;  %2584 = vmatmul.msk.bf16.gmra.mxu2 %vm667_vm3, %v3536_v19  ;;  %v3557_v19 = vld [vmem:[%s2786_s22 + $0xc8] sm:$0x1] }
 0x153   : > { %v981_v4 = vpop.f32.mrf.mxu1  ;;  %v1495_v22 = vadd.f32 %v1431_v15, %v1361_v41  ;;  %v1156_v15 = vsel %vm3134_vm7, %v2568_v33, %v1155_v56  ;;  %v1159_v41 = vsel %vm3134_vm7, %v1157_v36, %v1158_v55  ;;  %v1536_v50 = vshll.u32 %v3557_v19, 16 }
 0x154   : > { %v1192_v38 = vunpack.c.l.b16 %v1156_v15  ;;  %v982_v12 = vadd.f32 %v981_v4, %v3312_v10  ;;  %v1524_v36 = vrot.slane %v1523_v21, 4 }
 0x155   : > { %v1300_v59 = vpop.f32.mrf.mxu2  ;;  %v3554_v27 = vadd.f32 %v1587_v49, %v1495_v22  ;;  %v1538_v45 = vrot.slane %v1536_v50, 5 }
 0x156   : > { %v1362_v42 = vadd.f32 %v1300_v59, %v980_v31  ;;  %v1193_v59 = vunpack.c.l.b16 %v1159_v41  ;;  %v3582_v41 = vld [vmem:[%s2786_s22 + $0xc0] sm:$0xff] }
 0x157   : > { %2605 = vmatmul.msk.bf16.gmra.mxu3 %vm667_vm3, %v3550_v52  ;;  %v1539_v10 = vsel %vm2815_vm4, %v1534_v26, %v1538_v45 }
 0x158   : > { %v3573_v22 = vpack.c.b16 %v1193_v59, %v1192_v38  ;;  %v1543_v11 = vunpack.c.l.b16 %v1539_v10 }
 0x159   : > { %v1590_v43 = vpop.f32.mrf.mxu0 }
 0x15a   : > { %v1434_v23 = vpop.f32.mrf.mxu3 }
 0x15b   : > { %v984_v49 = vpop.f32.mrf.mxu1  ;;  %v1496_v31 = vadd.f32 %v1434_v23, %v1362_v42  ;;  %v1529_v42 = vsel %vm2815_vm4, %v1524_v36, %v1528_v6 }
 0x15c   : > { %2622 = vmatmul.msk.bf16.gmra.mxu0 %vm667_vm3, %v3142_v62  ;;  %v1542_v21 = vunpack.c.l.b16 %v1529_v42 }
 0x15d   : > { %v1302_v56 = vpop.f32.mrf.mxu2  ;;  %v3571_v20 = vadd.f32 %v1590_v43, %v1496_v31  ;;  %v985_v43 = vadd.f32 %v984_v49, %v3333_v9 }
 0x15e   : > { %2552 = vmatmul.msk.bf16.gmra.mxu1 %vm667_vm3, %v3550_v52  ;;  %v1363_v55 = vadd.f32 %v1302_v56, %v982_v12  ;;  %v3589_v6 = vpack.c.b16 %v1543_v11, %v1542_v21 }
 0x161   : > { %v1592_v53 = vpop.f32.mrf.mxu0 }
 0x162   : > { %v1436_v4 = vpop.f32.mrf.mxu3  ;;  %2585 = vmatmul.msk.bf16.gmra.mxu2 %vm667_vm3, %v3573_v22 }
 0x163   : > { %v986_v33 = vpop.f32.mrf.mxu1  ;;  %v1497_v15 = vadd.f32 %v1436_v4, %v1363_v55 }
 0x164   : > { %v987_v9 = vadd.f32 %v986_v33, %v3350_v29 }
 0x165   : > { %v1305_v50 = vpop.f32.mrf.mxu2  ;;  %v3585_v23 = vadd.f32 %v1592_v53, %v1497_v15 }
 0x166   : > { %v1364_v38 = vadd.f32 %v1305_v50, %v985_v43 }
 0x167   : > { %2606 = vmatmul.msk.bf16.gmra.mxu3 %vm667_vm3, %v3582_v41 }
 0x169   : > { %v1595_v59 = vpop.f32.mrf.mxu0 }
 0x16a   : > { %v1439_v31 = vpop.f32.mrf.mxu3 }
 0x16b   : > { %v989_v12 = vpop.f32.mrf.mxu1  ;;  %v1498_v56 = vadd.f32 %v1439_v31, %v1364_v38 }
 0x16c   : > { %2623 = vmatmul.msk.bf16.gmra.mxu0 %vm667_vm3, %v3589_v6  ;;  %v990_v10 = vadd.f32 %v989_v12, %v3233_v3 }
 0x16d   : > { %v1307_v49 = vpop.f32.mrf.mxu2  ;;  %v3596_v36 = vadd.f32 %v1595_v59, %v1498_v56 }
 0x16e   : > { %2626 = vmatmul.msk.bf16.vlgmr.msra.gmra.mxu1 %vm667_vm3, %v3169_v44  ;;  %v1365_v26 = vadd.f32 %v1307_v49, %v987_v9 }
 0x171   : > { %v1597_v45 = vpop.f32.mrf.mxu0 }
 0x172   : > { %v1441_v55 = vpop.f32.mrf.mxu3  ;;  %2647 = vmatmul.msk.bf16.vlgmr.msra.gmra.mxu2 %vm667_vm3, %v3181_v14 }
 0x173   : > { %v991_v53 = vpop.f32.mrf.mxu1  ;;  %v1499_v42 = vadd.f32 %v1441_v55, %v1365_v26 }
 0x174   : > { %v992_v14 = vadd.f32 %v991_v53, %v3255_v17 }
 0x175   : > { %v1310_v4 = vpop.f32.mrf.mxu2  ;;  %v3601_v15 = vadd.f32 %v1597_v45, %v1499_v42 }
 0x176   : > { %v1366_v29 = vadd.f32 %v1310_v4, %v990_v10 }
 0x177   : > { %2664 = vmatmul.msk.bf16.vlgmr.msra.gmra.mxu3 %vm667_vm3, %v3072_v18 }
 0x179   : > { %v1600_v44 = vpop.f32.mrf.mxu0 }
 0x17a   : > { %v1444_v33 = vpop.f32.mrf.mxu3 }
 0x17b   : > { %v994_v43 = vpop.f32.mrf.mxu1  ;;  %v1500_v21 = vadd.f32 %v1444_v33, %v1366_v29 }
 0x17c   : > { %2682 = vmatmul.msk.bf16.vlgmr.msra.gmra.mxu0 %vm667_vm3, %v3195_v32  ;;  %v995_v12 = vadd.f32 %v994_v43, %v3277_v54 }
 0x17d   : > { %v1312_v11 = vpop.f32.mrf.mxu2  ;;  %v3610_v3 = vadd.f32 %v1600_v44, %v1500_v21 }
 0x17e   : > { %2627 = vmatmul.msk.bf16.gmra.mxu1 %vm667_vm3, %v3195_v32  ;;  %v1367_v50 = vadd.f32 %v1312_v11, %v992_v14 }
 0x181   : > { %v1602_v38 = vpop.f32.mrf.mxu0 }
 0x182   : > { %v1446_v59 = vpop.f32.mrf.mxu3  ;;  %2648 = vmatmul.msk.bf16.gmra.mxu2 %vm667_vm3, %v3201_v13 }
 0x183   : > { %v996_v18 = vpop.f32.mrf.mxu1  ;;  %v1501_v31 = vadd.f32 %v1446_v59, %v1367_v50 }
 0x184   : > { %v997_v13 = vadd.f32 %v996_v18, %v3299_v30 }
 0x185   : > { %v1315_v56 = vpop.f32.mrf.mxu2  ;;  %v3615_v9 = vadd.f32 %v1602_v38, %v1501_v31 }
 0x186   : > { %v1368_v17 = vadd.f32 %v1315_v56, %v995_v12 }
 0x187   : > { %2665 = vmatmul.msk.bf16.gmra.mxu3 %vm667_vm3, %v3162_v1 }
 0x189   : > { %v1605_v32 = vpop.f32.mrf.mxu0 }
 0x18a   : > { %v1449_v49 = vpop.f32.mrf.mxu3 }
 0x18b   : > { %v999_v26 = vpop.f32.mrf.mxu1  ;;  %v1502_v45 = vadd.f32 %v1449_v49, %v1368_v17 }
 0x18c   : > { %2683 = vmatmul.msk.bf16.gmra.mxu0 %vm667_vm3, %v3215_v34  ;;  %v1000_v29 = vadd.f32 %v999_v26, %v3316_v60  ;;  %v3978_v26 = vld [vmem:[#allocation27_spill] sm:$0xff] }
 0x18d   : > { %v1317_v55 = vpop.f32.mrf.mxu2  ;;  %v3624_v54 = vadd.f32 %v1605_v32, %v1502_v45 }
 0x18e   : > { %2628 = vmatmul.msk.bf16.gmra.mxu1 %vm667_vm3, %v3215_v34  ;;  %v1369_v53 = vadd.f32 %v1317_v55, %v997_v13 }
 0x191   : > { %v1607_v42 = vpop.f32.mrf.mxu0 }
 0x192   : > { %v1451_v10 = vpop.f32.mrf.mxu3  ;;  %2649 = vmatmul.msk.bf16.gmra.mxu2 %vm667_vm3, %v3223_v37 }
 0x193   : > { %v1001_v1 = vpop.f32.mrf.mxu1  ;;  %v1503_v4 = vadd.f32 %v1451_v10, %v1369_v53 }
 0x194   : > { %v1002_v37 = vadd.f32 %v1001_v1, %v3335_v8  ;;  %v3980_v1 = vld [vmem:[#allocation15_spill] sm:$0xff] }
 0x195   : > { %v1320_v44 = vpop.f32.mrf.mxu2  ;;  %v3629_v33 = vadd.f32 %v1607_v42, %v1503_v4  ;;  %v3979_v42 = vld [vmem:[#allocation17_spill] sm:$0xff] }
 0x196   : > { %v1370_v30 = vadd.f32 %v1320_v44, %v1000_v29 }
 0x197   : > { %2666 = vmatmul.msk.bf16.gmra.mxu3 %vm667_vm3, %v2836_v58 }
 0x199   : > { %v1610_v34 = vpop.f32.mrf.mxu0 }
 0x19a   : > { %v1454_v43 = vpop.f32.mrf.mxu3 }
 0x19b   : > { %v1004_v21 = vpop.f32.mrf.mxu1  ;;  %v1504_v14 = vadd.f32 %v1454_v43, %v1370_v30 }
 0x19c   : > { %2684 = vmatmul.msk.bf16.gmra.mxu0 %vm667_vm3, %v3243_v5  ;;  %v1005_v31 = vadd.f32 %v1004_v21, %v3357_v63 }
 0x19d   : > { %v1322_v11 = vpop.f32.mrf.mxu2  ;;  %v3638_v60 = vadd.f32 %v1610_v34, %v1504_v14  ;;  %v3981_v34 = vld [vmem:[#allocation8_spill] sm:$0xff] }
 0x19e   : > { %2629 = vmatmul.msk.bf16.gmra.mxu1 %vm667_vm3, %v3243_v5  ;;  %v1371_v50 = vadd.f32 %v1322_v11, %v1002_v37  ;;  %v3982_v37 = vld [vmem:[#allocation20_spill] sm:$0xff] }
 0x19f   : > { %v3983_v11 = vld [vmem:[#allocation16_spill] sm:$0xff] }
 0x1a1   : > { %v1612_v38 = vpop.f32.mrf.mxu0 }
 0x1a2   : > { %v1456_v59 = vpop.f32.mrf.mxu3  ;;  %2650 = vmatmul.msk.bf16.gmra.mxu2 %vm667_vm3, %v3251_v57 }
 0x1a3   : > { %v1006_v58 = vpop.f32.mrf.mxu1  ;;  %v1505_v18 = vadd.f32 %v1456_v59, %v1371_v50 }
 0x1a4   : > { %v1007_v57 = vadd.f32 %v1006_v58, %v3978_v26 }
 0x1a5   : > { %v1325_v12 = vpop.f32.mrf.mxu2  ;;  %v3643_v56 = vadd.f32 %v1612_v38, %v1505_v18 }
 0x1a6   : > { %v1372_v8 = vadd.f32 %v1325_v12, %v1005_v31  ;;  %v3984_v12 = vld [vmem:[#allocation21_spill] sm:$0xff] }
 0x1a7   : > { %2667 = vmatmul.msk.bf16.gmra.mxu3 %vm667_vm3, %v2918_v40 }
 0x1a9   : > { %v1615_v5 = vpop.f32.mrf.mxu0 }
 0x1aa   : > { %v1459_v17 = vpop.f32.mrf.mxu3 }
 0x1ab   : > { %v1009_v32 = vpop.f32.mrf.mxu1  ;;  %v1506_v49 = vadd.f32 %v1459_v17, %v1372_v8  ;;  %v3985_v17 = vld [vmem:[#allocation18_spill] sm:$0xff] }
 0x1ac   : > { %2685 = vmatmul.msk.bf16.gmra.mxu0 %vm667_vm3, %v3275_v47  ;;  %v1010_v4 = vadd.f32 %v1009_v32, %v3980_v1 }
 0x1ad   : > { %v1327_v45 = vpop.f32.mrf.mxu2  ;;  %v3652_v63 = vadd.f32 %v1615_v5, %v1506_v49 }
 0x1ae   : > { %2630 = vmatmul.msk.bf16.gmra.mxu1 %vm667_vm3, %v3275_v47  ;;  %v1373_v13 = vadd.f32 %v1327_v45, %v1007_v57  ;;  %v3986_v45 = vld [vmem:[#allocation14_spill] sm:$0xff] }
 0x1b1   : > { %v1617_v55 = vpop.f32.mrf.mxu0 }
 0x1b2   : > { %v1461_v53 = vpop.f32.mrf.mxu3  ;;  %2651 = vmatmul.msk.bf16.gmra.mxu2 %vm667_vm3, %v3979_v42 }
 0x1b3   : > { %v1011_v40 = vpop.f32.mrf.mxu1  ;;  %v1507_v10 = vadd.f32 %v1461_v53, %v1373_v13 }
 0x1b4   : > { %v1012_v50 = vadd.f32 %v1011_v40, %v3983_v11  ;;  %v3987_v40 = vld [vmem:[#allocation23_spill] sm:$0xff] }
 0x1b5   : > { %v1330_v29 = vpop.f32.mrf.mxu2  ;;  %v3657_v44 = vadd.f32 %v1617_v55, %v1507_v10  ;;  %v3988_v10 = vld [vmem:[#allocation19_spill] sm:$0xff] }
 0x1b6   : > { %v1374_v30 = vadd.f32 %v1330_v29, %v1010_v4 }
 0x1b7   : > { %2668 = vmatmul.msk.bf16.gmra.mxu3 %vm667_vm3, %v3981_v34 }
 0x1b9   : > { %v1620_v47 = vpop.f32.mrf.mxu0 }
 0x1ba   : > { %v1464_v43 = vpop.f32.mrf.mxu3 }
 0x1bb   : > { %v1014_v21 = vpop.f32.mrf.mxu1  ;;  %v1508_v14 = vadd.f32 %v1464_v43, %v1374_v30  ;;  %v3989_v43 = vld [vmem:[#allocation25_spill] sm:$0xff] }
 0x1bc   : > { %2686 = vmatmul.msk.bf16.gmra.mxu0 %vm667_vm3, %v3982_v37  ;;  %v1015_v32 = vadd.f32 %v1014_v21, %v3985_v17  ;;  %v3992_v17 = vld [vmem:[#allocation28_spill] sm:$0xff] }
 0x1bd   : > { %v1332_v38 = vpop.f32.mrf.mxu2  ;;  %v3666_v59 = vadd.f32 %v1620_v47, %v1508_v14 }
 0x1be   : > { %2631 = vmatmul.msk.bf16.gmra.mxu1 %vm667_vm3, %v3982_v37  ;;  %v1375_v58 = vadd.f32 %v1332_v38, %v1012_v50  ;;  %v3990_v37 = vld [vmem:[#allocation22_spill] sm:$0xff] }
 0x1c1   : > { %v1622_v18 = vpop.f32.mrf.mxu0 }
 0x1c2   : > { %v1466_v31 = vpop.f32.mrf.mxu3  ;;  %2652 = vmatmul.msk.bf16.gmra.mxu2 %vm667_vm3, %v3984_v12 }
 0x1c3   : > { %v1016_v8 = vpop.f32.mrf.mxu1  ;;  %v1509_v5 = vadd.f32 %v1466_v31, %v1375_v58 }
 0x1c4   : > { %v1017_v1 = vadd.f32 %v1016_v8, %v3988_v10  ;;  %v3994_v10 = vld [vmem:[#allocation26_spill] sm:$0xff] }
 0x1c5   : > { %v1335_v49 = vpop.f32.mrf.mxu2  ;;  %v3671_v26 = vadd.f32 %v1622_v18, %v1509_v5  ;;  %v3991_v18 = vld [vmem:[#allocation2_spill] sm:$0xff] }
 0x1c6   : > { %v1376_v57 = vadd.f32 %v1335_v49, %v1015_v32  ;;  %v3993_v32 = vld [vmem:[#allocation24_spill] sm:$0xff] }
 0x1c7   : > { %2669 = vmatmul.msk.bf16.gmra.mxu3 %vm667_vm3, %v3986_v45 }
 0x1c9   : > { %v1625_v13 = vpop.f32.mrf.mxu0 }
 0x1ca   : > { %v1469_v55 = vpop.f32.mrf.mxu3 }
 0x1cb   : > { %v1019_v53 = vpop.f32.mrf.mxu1  ;;  %v1510_v42 = vadd.f32 %v1469_v55, %v1376_v57 }
 0x1cc   : > { %2687 = vmatmul.msk.bf16.gmra.mxu0 %vm667_vm3, %v3987_v40  ;;  %v1020_v11 = vadd.f32 %v1019_v53, %v3990_v37  ;;  %v3995_v37 = vld [vmem:[#allocation29_spill] sm:$0xff] }
 0x1cd   : > { %v1337_v4 = vpop.f32.mrf.mxu2  ;;  %v3680_v29 = vadd.f32 %v1625_v13, %v1510_v42 }
 0x1ce   : > { %2632 = vmatmul.msk.bf16.gmra.mxu1 %vm667_vm3, %v3987_v40  ;;  %v1377_v30 = vadd.f32 %v1337_v4, %v1017_v1 }
 0x1d1   : > { %v1627_v34 = vpop.f32.mrf.mxu0 }
 0x1d2   : > { %v1471_v47 = vpop.f32.mrf.mxu3  ;;  %2653 = vmatmul.msk.bf16.gmra.mxu2 %vm667_vm3, %v3989_v43 }
 0x1d3   : > { %v1021_v21 = vpop.f32.mrf.mxu1  ;;  %v1511_v14 = vadd.f32 %v1471_v47, %v1377_v30 }
 0x1d4   : > { %v1022_v49 = vadd.f32 %v1021_v21, %v3993_v32 }
 0x1d5   : > { %v1340_v50 = vpop.f32.mrf.mxu2  ;;  %v3685_v38 = vadd.f32 %v1627_v34, %v1511_v14 }
 0x1d6   : > { %v1378_v58 = vadd.f32 %v1340_v50, %v1020_v11 }
 0x1d7   : > { %2670 = vmatmul.msk.bf16.gmra.mxu3 %vm667_vm3, %v3991_v18 }
 0x1d9   : > { %v1630_v31 = vpop.f32.mrf.mxu0 }
 0x1da   : > { %v1474_v12 = vpop.f32.mrf.mxu3 }
 0x1db   : > { %v1024_v8 = vpop.f32.mrf.mxu1  ;;  %v1512_v5 = vadd.f32 %v1474_v12, %v1378_v58 }
 0x1dc   : > { %2688 = vmatmul.msk.bf16.gmra.mxu0 %vm667_vm3, %v3992_v17  ;;  %v1025_v1 = vadd.f32 %v1024_v8, %v3994_v10 }
 0x1dd   : > { %v1342_v57 = vpop.f32.mrf.mxu2  ;;  %v3694_v45 = vadd.f32 %v1630_v31, %v1512_v5 }
 0x1de   : > { %2633 = vmatmul.msk.bf16.gmra.mxu1 %vm667_vm3, %v3992_v17  ;;  %v1379_v13 = vadd.f32 %v1342_v57, %v1022_v49 }
 0x1e1   : > { %v1632_v55 = vpop.f32.mrf.mxu0 }
 0x1e2   : > { %v1476_v53 = vpop.f32.mrf.mxu3  ;;  %2654 = vmatmul.msk.bf16.gmra.mxu2 %vm667_vm3, %v3387_v48 }
 0x1e3   : > { %v1026_v42 = vpop.f32.mrf.mxu1  ;;  %v1513_v40 = vadd.f32 %v1476_v53, %v1379_v13 }
 0x1e4   : > { %v1027_v48 = vadd.f32 %v1026_v42, %v3995_v37 }
 0x1e5   : > { %v1345_v4 = vpop.f32.mrf.mxu2  ;;  %v3699_v30 = vadd.f32 %v1632_v55, %v1513_v40 }
 0x1e6   : > { %v1380_v34 = vadd.f32 %v1345_v4, %v1025_v1 }
 0x1e7   : > { %2671 = vmatmul.msk.bf16.gmra.mxu3 %vm667_vm3, %v2940_v0 }
 0x1e9   : > { %v1635_v47 = vpop.f32.mrf.mxu0 }
 0x1ea   : > { %v1479_v43 = vpop.f32.mrf.mxu3 }
 0x1eb   : > { %v1700_v21 = vpop.f32.mrf.mxu1  ;;  %v1514_v14 = vadd.f32 %v1479_v43, %v1380_v34 }
 0x1ec   : > { %2689 = vmatmul.msk.bf16.gmra.mxu0 %vm667_vm3, %v3404_v2  ;;  %v1780_v8 = vadd.f32 %v1700_v21, %v3402_v61 }
 0x1ed   : > { %v1347_v11 = vpop.f32.mrf.mxu2  ;;  %v3708_v50 = vadd.f32 %v1635_v47, %v1514_v14 }
 0x1ee   : > { %2634 = vmatmul.msk.bf16.gmra.mxu1 %vm667_vm3, %v3404_v2  ;;  %v1381_v58 = vadd.f32 %v1347_v11, %v1027_v48  ;;  %v3996_v11 = vld [vmem:[#allocation31_spill] sm:$0xff] }
 0x1f1   : > { %v1637_v18 = vpop.f32.mrf.mxu0 }
 0x1f2   : > { %v1481_v31 = vpop.f32.mrf.mxu3  ;;  %2655 = vmatmul.msk.bf16.gmra.mxu2 %vm667_vm3, %v3411_v28 }
 0x1f3   : > { %v1702_v0 = vpop.f32.mrf.mxu1  ;;  %v1515_v12 = vadd.f32 %v1481_v31, %v1381_v58 }
 0x1f4   : > { %v1781_v55 = vadd.f32 %v1702_v0, %v3415_v39 }
 0x1f5   : > { %v1834_v5 = vpop.f32.mrf.mxu2  ;;  %v3713_v17 = vadd.f32 %v1637_v18, %v1515_v12 }
 0x1f6   : > { %v1914_v2 = vadd.f32 %v1834_v5, %v1780_v8 }
 0x1f7   : > { %2672 = vmatmul.msk.bf16.gmra.mxu3 %vm667_vm3, %v3028_v24 }
 0x1f9   : > { %v2130_v32 = vpop.f32.mrf.mxu0 }
 0x1fa   : > { %v1990_v49 = vpop.f32.mrf.mxu3 }
 0x1fb   : > { %v1705_v57 = vpop.f32.mrf.mxu1  ;;  %v2070_v13 = vadd.f32 %v1990_v49, %v1914_v2 }
 0x1fc   : > { %2690 = vmatmul.msk.bf16.gmra.mxu0 %vm667_vm3, %v3430_v51  ;;  %v1782_v4 = vadd.f32 %v1705_v57, %v3428_v7  ;;  %v3997_v7 = vld [vmem:[#allocation9_spill] sm:$0xff] }
 0x1fd   : > { %v2210_v28 = vadd.f32 %v2130_v32, %v2070_v13  ;;  %v1836_v53 = vpop.f32.mrf.mxu2  ;;  %v3998_v32 = vld [vmem:[#allocation32_spill] sm:$0xff] }
 0x1fe   : > { %2635 = vmatmul.msk.bf16.gmra.mxu1 %vm667_vm3, %v3430_v51  ;;  %v1915_v61 = vadd.f32 %v1836_v53, %v1781_v55 }
 0x1ff   : > { %2242 = vst [vmem:[%s2781_s19] sm:$0xff] %v2210_v28  ;;  %v2315_v47 = vmul.f32 %v2210_v28, %v2210_v28 }
 0x201   : > { %v2132_v42 = vpop.f32.mrf.mxu0 }
 0x202   : > { %v1992_v24 = vpop.f32.mrf.mxu3  ;;  %2656 = vmatmul.msk.bf16.gmra.mxu2 %vm667_vm3, %v3437_v46 }
 0x203   : > { %v1707_v40 = vpop.f32.mrf.mxu1  ;;  %v2071_v10 = vadd.f32 %v1992_v24, %v1915_v61  ;;  %v4000_v24 = vld [vmem:[#allocation3_spill] sm:$0xff] }
 0x204   : > { %v1783_v18 = vadd.f32 %v1707_v40, %v3997_v7 }
 0x205   : > { %v2211_v1 = vadd.f32 %v2132_v42, %v2071_v10  ;;  %v1839_v34 = vpop.f32.mrf.mxu2 }
 0x206   : > { %v1916_v51 = vadd.f32 %v1839_v34, %v1782_v4 }
 0x207   : > { %2243 = vst [vmem:[%s2781_s19 + $0x8] sm:$0xff] %v2211_v1  ;;  %v2275_v39 = vadd.f32 %v2211_v1, %v2210_v28  ;;  %v2316_v43 = vmul.f32 %v2211_v1, %v2211_v1  ;;  %2673 = vmatmul.msk.bf16.gmra.mxu3 %vm667_vm3, %v3114_v35  ;;  %v3999_v28 = vld [vmem:[#allocation30_spill] sm:$0xff] }
 0x209   : > { %v2347_v21 = vadd.f32 %v2316_v43, %v2315_v47  ;;  %v2135_v14 = vpop.f32.mrf.mxu0 }
 0x20a   : > { %v1995_v37 = vpop.f32.mrf.mxu3 }
 0x20b   : > { %v1710_v48 = vpop.f32.mrf.mxu1  ;;  %v2072_v46 = vadd.f32 %v1995_v37, %v1916_v51  ;;  %v4002_v51 = vld [vmem:[#allocation33_spill] sm:$0xff] }
 0x20c   : > { %2691 = vmatmul.msk.bf16.gmra.mxu0 %vm667_vm3, %v3996_v11  ;;  %v1784_v55 = vadd.f32 %v1710_v48, %v3999_v28 }
 0x20d   : > { %v2212_v58 = vadd.f32 %v2135_v14, %v2072_v46  ;;  %v1841_v31 = vpop.f32.mrf.mxu2 }
 0x20e   : > { %2636 = vmatmul.msk.bf16.gmra.mxu1 %vm667_vm3, %v3996_v11  ;;  %v1917_v12 = vadd.f32 %v1841_v31, %v1783_v18  ;;  %v4003_v18 = vld [vmem:[#allocation36_spill] sm:$0xff] }
 0x20f   : > { %2244 = vst [vmem:[%s2781_s19 + $0x10] sm:$0xff] %v2212_v58  ;;  %v2276_v0 = vadd.f32 %v2275_v39, %v2212_v58  ;;  %v2317_v35 = vmul.f32 %v2212_v58, %v2212_v58  ;;  %v4001_v39 = vld [vmem:[#allocation35_spill] sm:$0xff] }
 0x211   : > { %v2348_v8 = vadd.f32 %v2347_v21, %v2317_v35  ;;  %v2137_v5 = vpop.f32.mrf.mxu0 }
 0x212   : > { %v1997_v2 = vpop.f32.mrf.mxu3  ;;  %2657 = vmatmul.msk.bf16.gmra.mxu2 %vm667_vm3, %v3998_v32 }
 0x213   : > { %v1712_v49 = vpop.f32.mrf.mxu1  ;;  %v2073_v57 = vadd.f32 %v1997_v2, %v1917_v12  ;;  %v4004_v12 = vld [vmem:[#allocation34_spill] sm:$0xff] }
 0x214   : > { %v1785_v21 = vadd.f32 %v1712_v49, %v4002_v51  ;;  %v4005_v49 = vld [vmem:[#allocation4_spill] sm:$0xff] }
 0x215   : > { %v2213_v13 = vadd.f32 %v2137_v5, %v2073_v57  ;;  %v1844_v53 = vpop.f32.mrf.mxu2 }
 0x216   : > { %v1918_v40 = vadd.f32 %v1844_v53, %v1784_v55 }
 0x217   : > { %2245 = vst [vmem:[%s2781_s19 + $0x18] sm:$0xff] %v2213_v13  ;;  %v2277_v61 = vadd.f32 %v2276_v0, %v2213_v13  ;;  %v2318_v42 = vmul.f32 %v2213_v13, %v2213_v13  ;;  %2674 = vmatmul.msk.bf16.gmra.mxu3 %vm667_vm3, %v4000_v24 }
 0x219   : > { %v2349_v10 = vadd.f32 %v2348_v8, %v2318_v42  ;;  %v2140_v1 = vpop.f32.mrf.mxu0  ;;  %v4006_v42 = vld [vmem:[#allocation39_spill] sm:$0xff] }
 0x21a   : > { %v2000_v4 = vpop.f32.mrf.mxu3 }
 0x21b   : > { %v1715_v34 = vpop.f32.mrf.mxu1  ;;  %v2074_v47 = vadd.f32 %v2000_v4, %v1918_v40  ;;  %v4007_v40 = vld [vmem:[#allocation37_spill] sm:$0xff] }
 0x21c   : > { %2692 = vmatmul.msk.bf16.gmra.mxu0 %vm667_vm3, %v4001_v39  ;;  %v1786_v8 = vadd.f32 %v1715_v34, %v4004_v12 }
 0x21d   : > { %v2214_v43 = vadd.f32 %v2140_v1, %v2074_v47  ;;  %v1846_v14 = vpop.f32.mrf.mxu2 }
 0x21e   : > { %2637 = vmatmul.msk.bf16.gmra.mxu1 %vm667_vm3, %v4001_v39  ;;  %v1919_v46 = vadd.f32 %v1846_v14, %v1785_v21  ;;  %v4008_v21 = vld [vmem:[#allocation6_spill] sm:$0xff] }
 0x21f   : > { %2246 = vst [vmem:[%s2781_s19 + $0x20] sm:$0xff] %v2214_v43  ;;  %v2278_v37 = vadd.f32 %v2277_v61, %v2214_v43  ;;  %v2319_v48 = vmul.f32 %v2214_v43, %v2214_v43 }
 0x221   : > { %v2350_v11 = vadd.f32 %v2349_v10, %v2319_v48  ;;  %v2142_v58 = vpop.f32.mrf.mxu0 }
 0x222   : > { %v2002_v7 = vpop.f32.mrf.mxu3  ;;  %2658 = vmatmul.msk.bf16.gmra.mxu2 %vm667_vm3, %v4003_v18 }
 0x223   : > { %v1717_v31 = vpop.f32.mrf.mxu1  ;;  %v2075_v0 = vadd.f32 %v2002_v7, %v1919_v46  ;;  %v4009_v46 = vld [vmem:[#allocation38_spill] sm:$0xff] }
 0x224   : > { %v1787_v10 = vadd.f32 %v1717_v31, %v4007_v40  ;;  %v4010_v31 = vld [vmem:[#allocation10_spill] sm:$0xff] }
 0x225   : > { %v2215_v35 = vadd.f32 %v2142_v58, %v2075_v0  ;;  %v1849_v5 = vpop.f32.mrf.mxu2 }
 0x226   : > { %v1920_v57 = vadd.f32 %v1849_v5, %v1786_v8 }
 0x227   : > { %2247 = vst [vmem:[%s2781_s19 + $0x28] sm:$0xff] %v2215_v35  ;;  %v2279_v2 = vadd.f32 %v2278_v37, %v2215_v35  ;;  %v2320_v32 = vmul.f32 %v2215_v35, %v2215_v35  ;;  %2675 = vmatmul.msk.bf16.gmra.mxu3 %vm667_vm3, %v4005_v49 }
 0x229   : > { %v2351_v13 = vadd.f32 %v2350_v11, %v2320_v32  ;;  %v2145_v28 = vpop.f32.mrf.mxu0  ;;  %v4011_v32 = vld [vmem:[#allocation41_spill] sm:$0xff] }
 0x22a   : > { %v2005_v55 = vpop.f32.mrf.mxu3 }
 0x22b   : > { %v1720_v53 = vpop.f32.mrf.mxu1  ;;  %v2076_v61 = vadd.f32 %v2005_v55, %v1920_v57  ;;  %v4012_v57 = vld [vmem:[#allocation7_spill] sm:$0xff] }
 0x22c   : > { %2693 = vmatmul.msk.bf16.gmra.mxu0 %vm667_vm3, %v4006_v42  ;;  %v1788_v11 = vadd.f32 %v1720_v53, %v4009_v46  ;;  %v4014_v46 = vld [vmem:[#allocation42_spill] sm:$0xff] }
 0x22d   : > { %v2216_v24 = vadd.f32 %v2145_v28, %v2076_v61  ;;  %v1851_v1 = vpop.f32.mrf.mxu2 }
 0x22e   : > { %2638 = vmatmul.msk.bf16.gmra.mxu1 %vm667_vm3, %v4006_v42  ;;  %v1921_v47 = vadd.f32 %v1851_v1, %v1787_v10 }
 0x22f   : > { %2248 = vst [vmem:[%s2781_s19 + $0x30] sm:$0xff] %v2216_v24  ;;  %v2280_v4 = vadd.f32 %v2279_v2, %v2216_v24  ;;  %v2321_v34 = vmul.f32 %v2216_v24, %v2216_v24 }
 0x231   : > { %v2352_v39 = vadd.f32 %v2351_v13, %v2321_v34  ;;  %v2147_v43 = vpop.f32.mrf.mxu0  ;;  %v4013_v34 = vld [vmem:[#allocation40_spill] sm:$0xff] }
 0x232   : > { %v2007_v51 = vpop.f32.mrf.mxu3  ;;  %2659 = vmatmul.msk.bf16.gmra.mxu2 %vm667_vm3, %v4008_v21 }
 0x233   : > { %v1722_v14 = vpop.f32.mrf.mxu1  ;;  %v2077_v37 = vadd.f32 %v2007_v51, %v1921_v47 }
 0x234   : > { %v1789_v13 = vadd.f32 %v1722_v14, %v4012_v57  ;;  %v3778_v14 = vld [vmem:[%s2786_s22 + $0xcc] sm:$0xf]  ;;  %v1678_v57 = vrot.slane %v3557_v19, 5 }
 0x235   : > { %v2217_v48 = vadd.f32 %v2147_v43, %v2077_v37  ;;  %v1854_v58 = vpop.f32.mrf.mxu2 }
 0x236   : > { %v1922_v0 = vadd.f32 %v1854_v58, %v1788_v11  ;;  %v1675_v11 = vrot.slane %v4014_v46, 5 }
 0x237   : > { %2249 = vst [vmem:[%s2781_s19 + $0x38] sm:$0xff] %v2217_v48  ;;  %v2281_v7 = vadd.f32 %v2280_v4, %v2217_v48  ;;  %v2322_v18 = vmul.f32 %v2217_v48, %v2217_v48  ;;  %2676 = vmatmul.msk.bf16.gmra.mxu3 %vm667_vm3, %v4010_v31 }
 0x239   : > { %v2353_v35 = vadd.f32 %v2352_v39, %v2322_v18  ;;  %v2150_v12 = vpop.f32.mrf.mxu0  ;;  %v1947_v18 = vshrl.u32 %v3778_v14, 16 }
 0x23a   : > { %v2010_v8 = vpop.f32.mrf.mxu3 }
 0x23b   : > { %v1725_v5 = vpop.f32.mrf.mxu1  ;;  %v2078_v2 = vadd.f32 %v2010_v8, %v1922_v0  ;;  %v1950_v0 = vshll.u32 %v3778_v14, 16 }
 0x23c   : > { %2694 = vmatmul.msk.bf16.gmra.mxu0 %vm667_vm3, %v4011_v32  ;;  %v1790_v47 = vadd.f32 %v1725_v5, %v4013_v34 }
 0x23d   : > { %v2218_v49 = vadd.f32 %v2150_v12, %v2078_v2  ;;  %v1856_v28 = vpop.f32.mrf.mxu2 }
 0x23e   : > { %2639 = vmatmul.msk.bf16.gmra.mxu1 %vm667_vm3, %v4011_v32  ;;  %v1923_v61 = vadd.f32 %v1856_v28, %v1789_v13  ;;  %v1949_v13 = vrot.slane %v1947_v18, 4 }
 0x23f   : > { %2250 = vst [vmem:[%s2781_s19 + $0x40] sm:$0xff] %v2218_v49  ;;  %v2282_v55 = vadd.f32 %v2281_v7, %v2218_v49  ;;  %v2323_v53 = vmul.f32 %v2218_v49, %v2218_v49  ;;  %v1677_v49 = vrot.slane %v1675_v11, 4 }
 0x241   : > { %v2354_v42 = vadd.f32 %v2353_v35, %v2323_v53  ;;  %v2152_v24 = vpop.f32.mrf.mxu0 }
 0x242   : > { %v2012_v40 = vpop.f32.mrf.mxu3  ;;  %2660 = vmatmul.msk.bf16.gmra.mxu2 %vm667_vm3, %v3550_v52  ;;  %v3782_v52 = vld [vmem:[%s2786_s22 + $0xd0] sm:$0xf] }
 0x243   : > { %v1727_v10 = vpop.f32.mrf.mxu1  ;;  %v2079_v1 = vadd.f32 %v2012_v40, %v1923_v61  ;;  %v1956_v12 = vshll.u32 %v3782_v52, 16  ;;  %v1960_v8 = vshrl.u32 %v3782_v52, 16  ;;  %v1952_v61 = vrot.slane %v1950_v0, 5 }
 0x244   : > { %v1791_v2 = vadd.f32 %v1727_v10, %v3554_v27  ;;  %v228_v10 = vld [vmem:[%s2786_s22 + $0xd4] sm:$0x1] }
 0x245   : > { %v2219_v4 = vadd.f32 %v2152_v24, %v2079_v1  ;;  %v1859_v39 = vpop.f32.mrf.mxu2  ;;  %v1962_v24 = vrot.slane %v1960_v8, 4  ;;  %v2105_v8 = vrot.slane %v3782_v52, 5 }
 0x246   : > { %v1924_v21 = vadd.f32 %v1859_v39, %v1790_v47  ;;  %v1953_v47 = vor.u32 %v1952_v61, %v1949_v13 }
 0x247   : > { %2251 = vst [vmem:[%s2781_s19 + $0x48] sm:$0xff] %v2219_v4  ;;  %v2283_v43 = vadd.f32 %v2282_v55, %v2219_v4  ;;  %v2324_v51 = vmul.f32 %v2219_v4, %v2219_v4  ;;  %2677 = vmatmul.msk.bf16.gmra.mxu3 %vm667_vm3, %v3142_v62  ;;  %v4015_v62 = vld [vmem:[#allocation5_spill] sm:$0xff]  ;;  %v2107_v52 = vrot.slane %v2105_v8, 4 }
 0x248   : > { %v2624_v35 = vrot.slane %v4015_v62, 9 }
 0x249   : > { %v2355_v37 = vadd.f32 %v2354_v42, %v2324_v51  ;;  %v2155_v48 = vpop.f32.mrf.mxu0  ;;  %v1958_v42 = vrot.slane %v1956_v12, 5 }
 0x24a   : > { %v2015_v58 = vpop.f32.mrf.mxu3  ;;  %v1676_v27 = vsel %vm3134_vm7, %v2624_v35, %v1675_v11 }
 0x24b   : > { %v1730_v7 = vpop.f32.mrf.mxu1  ;;  %v2080_v31 = vadd.f32 %v2015_v58, %v1924_v21  ;;  %v1682_v39 = vunpack.c.l.b16 %v1676_v27  ;;  %v1963_v51 = vor.u32 %v1962_v24, %v1958_v42  ;;  %v1966_v21 = vshll.u32 %v228_v10, 16 }
 0x24c   : > { %2695 = vmatmul.msk.bf16.gmra.mxu0 %vm667_vm3, %v3573_v22 }
 0x24d   : > { %v2220_v5 = vadd.f32 %v2155_v48, %v2080_v31  ;;  %v1861_v32 = vpop.f32.mrf.mxu2  ;;  %v1792_v48 = vadd.f32 %v1730_v7, %v3571_v20  ;;  %v1954_v31 = vrot.slane %v1953_v47, 4  ;;  %v1964_v0 = vrot.slane %v1963_v51, 4 }
 0x24e   : > { %2640 = vmatmul.msk.bf16.gmra.mxu1 %vm667_vm3, %v3573_v22  ;;  %v1925_v53 = vadd.f32 %v1861_v32, %v1791_v2  ;;  %v1679_v22 = vsel %vm3134_vm7, %v1677_v49, %v1678_v57  ;;  %v1968_v62 = vrot.slane %v1966_v21, 5  ;;  %v2680_v32 = vrot.slane %v3778_v14, 9 }
 0x24f   : > { %2252 = vst [vmem:[%s2781_s19 + $0x50] sm:$0xff] %v2220_v5  ;;  %v2284_v28 = vadd.f32 %v2283_v43, %v2220_v5  ;;  %v2325_v55 = vmul.f32 %v2220_v5, %v2220_v5  ;;  %v1683_v43 = vunpack.c.l.b16 %v1679_v22  ;;  %v1959_v2 = vsel %vm2815_vm4, %v1954_v31, %v1958_v42 }
 0x250   : > { %v2106_v14 = vsel %vm3134_vm7, %v2680_v32, %v2105_v8 }
 0x251   : > { %v2356_v40 = vadd.f32 %v2355_v37, %v2325_v55  ;;  %v2157_v1 = vpop.f32.mrf.mxu0  ;;  %v2718_v55 = vld [vmem:[%s2786_s22 + $0xcc] sm:$0xff] }
 0x252   : > { %v2017_v4 = vpop.f32.mrf.mxu3  ;;  %2661 = vmatmul.msk.bf16.gmra.mxu2 %vm667_vm3, %v3582_v41  ;;  %v1684_v41 = vpack.c.b16 %v1683_v43, %v1682_v39 }
 0x253   : > { %v1732_v19 = vpop.f32.mrf.mxu1  ;;  %v2081_v34 = vadd.f32 %v2017_v4, %v1925_v53  ;;  %v1972_v53 = vunpack.c.l.b16 %v1959_v2 }
 0x254   : > { %v1793_v57 = vadd.f32 %v1732_v19, %v3585_v23  ;;  %v2112_v19 = vunpack.c.l.b16 %v2106_v14 }
 0x255   : > { %v2221_v37 = vadd.f32 %v2157_v1, %v2081_v34  ;;  %v1864_v46 = vpop.f32.mrf.mxu2 }
 0x256   : > { %v1926_v18 = vadd.f32 %v1864_v46, %v1792_v48 }
 0x257   : > { %2253 = vst [vmem:[%s2781_s19 + $0x58] sm:$0xff] %v2221_v37  ;;  %v2285_v11 = vadd.f32 %v2284_v28, %v2221_v37  ;;  %v2326_v58 = vmul.f32 %v2221_v37, %v2221_v37  ;;  %2678 = vmatmul.msk.bf16.gmra.mxu3 %vm667_vm3, %v3589_v6  ;;  %v1969_v6 = vsel %vm2815_vm4, %v1964_v0, %v1968_v62  ;;  %v2108_v28 = vrot.slane %v228_v10, 5 }
 0x259   : > { %v2357_v35 = vadd.f32 %v2356_v40, %v2326_v58  ;;  %v2160_v12 = vpop.f32.mrf.mxu0  ;;  %v1973_v40 = vunpack.c.l.b16 %v1969_v6  ;;  %v2109_v23 = vsel %vm3134_vm7, %v2107_v52, %v2108_v28 }
 0x25a   : > { %v2020_v5 = vpop.f32.mrf.mxu3  ;;  %v2113_v34 = vunpack.c.l.b16 %v2109_v23 }
 0x25b   : > { %v1735_v20 = vpop.f32.mrf.mxu1  ;;  %v2082_v7 = vadd.f32 %v2020_v5, %v1926_v18  ;;  %v1974_v4 = vpack.c.b16 %v1973_v40, %v1972_v53 }
 0x25c   : > { %2696 = vmatmul.msk.bf16.gmra.mxu0 %vm667_vm3, %v1684_v41  ;;  %v1794_v39 = vadd.f32 %v1735_v20, %v3596_v36  ;;  %v2114_v37 = vpack.c.b16 %v2113_v34, %v2112_v19 }
 0x25d   : > { %v2222_v49 = vadd.f32 %v2160_v12, %v2082_v7  ;;  %v1866_v13 = vpop.f32.mrf.mxu2 }
 0x25e   : > { %2641 = vmatmul.msk.bf16.gmra.mxu1 %vm667_vm3, %v1684_v41  ;;  %v1927_v24 = vadd.f32 %v1866_v13, %v1793_v57 }
 0x25f   : > { %2254 = vst [vmem:[%s2781_s19 + $0x60] sm:$0xff] %v2222_v49  ;;  %v2286_v61 = vadd.f32 %v2285_v11, %v2222_v49  ;;  %v2327_v42 = vmul.f32 %v2222_v49, %v2222_v49 }
 0x261   : > { %v2358_v25 = vadd.f32 %v2357_v35, %v2327_v42  ;;  %v2162_v1 = vpop.f32.mrf.mxu0 }
 0x262   : > { %v2022_v27 = vpop.f32.mrf.mxu3  ;;  %2662 = vmatmul.msk.bf16.gmra.mxu2 %vm667_vm3, %v2718_v55 }
 0x263   : > { %v1737_v22 = vpop.f32.mrf.mxu1  ;;  %v2083_v10 = vadd.f32 %v2022_v27, %v1927_v24 }
 0x264   : > { %v1795_v36 = vadd.f32 %v1737_v22, %v3601_v15 }
 0x265   : > { %v2223_v47 = vadd.f32 %v2162_v1, %v2083_v10  ;;  %v1869_v43 = vpop.f32.mrf.mxu2 }
 0x266   : > { %v1928_v16 = vadd.f32 %v1869_v43, %v1794_v39 }
 0x267   : > { %2255 = vst [vmem:[%s2781_s19 + $0x68] sm:$0xff] %v2223_v47  ;;  %v2287_v51 = vadd.f32 %v2286_v61, %v2223_v47  ;;  %v2328_v21 = vmul.f32 %v2223_v47, %v2223_v47  ;;  %2679 = vmatmul.msk.bf16.gmra.mxu3 %vm667_vm3, %v1974_v4 }
 0x269   : > { %v2359_v48 = vadd.f32 %v2358_v25, %v2328_v21  ;;  %v2165_v46 = vpop.f32.mrf.mxu0 }
 0x26a   : > { %v2025_v11 = vpop.f32.mrf.mxu3 }
 0x26b   : > { %v1740_v58 = vpop.f32.mrf.mxu1  ;;  %v2084_v18 = vadd.f32 %v2025_v11, %v1928_v16 }
 0x26c   : > { %2697 = vmatmul.msk.bf16.gmra.mxu0 %vm667_vm3, %v2114_v37  ;;  %v1796_v6 = vadd.f32 %v1740_v58, %v3610_v3 }
 0x26d   : > { %v2224_v31 = vadd.f32 %v2165_v46, %v2084_v18  ;;  %v1871_v41 = vpop.f32.mrf.mxu2 }
 0x26e   : > { %v1929_v35 = vadd.f32 %v1871_v41, %v1795_v36 }
 0x26f   : > { %2256 = vst [vmem:[%s2781_s19 + $0x70] sm:$0xff] %v2224_v31  ;;  %v2288_v0 = vadd.f32 %v2287_v51, %v2224_v31  ;;  %v2329_v62 = vmul.f32 %v2224_v31, %v2224_v31 }
 0x271   : > { %v2360_v12 = vadd.f32 %v2359_v48, %v2329_v62  ;;  %v2167_v8 = vpop.f32.mrf.mxu0 }
 0x272   : > { %v2027_v5 = vpop.f32.mrf.mxu3 }
 0x273   : > { %v1742_v20 = vpop.f32.mrf.mxu1  ;;  %v2085_v7 = vadd.f32 %v2027_v5, %v1929_v35 }
 0x274   : > { %v1797_v42 = vadd.f32 %v1742_v20, %v3615_v9 }
 0x275   : > { %v2225_v2 = vadd.f32 %v2167_v8, %v2085_v7  ;;  %v1874_v32 = vpop.f32.mrf.mxu2 }
 0x276   : > { %v1930_v13 = vadd.f32 %v1874_v32, %v1796_v6 }
 0x277   : > { %2257 = vst [vmem:[%s2781_s19 + $0x78] sm:$0xff] %v2225_v2  ;;  %v2289_v49 = vadd.f32 %v2288_v0, %v2225_v2  ;;  %v2330_v57 = vmul.f32 %v2225_v2, %v2225_v2 }
 0x279   : > { %v2361_v15 = vadd.f32 %v2360_v12, %v2330_v57  ;;  %v2170_v52 = vpop.f32.mrf.mxu0 }
 0x27a   : > { %v2030_v28 = vpop.f32.mrf.mxu3 }
 0x27b   : > { %v1745_v55 = vpop.f32.mrf.mxu1  ;;  %v2086_v53 = vadd.f32 %v2030_v28, %v1930_v13 }
 0x27c   : > { %v1798_v4 = vadd.f32 %v1745_v55, %v3624_v54 }
 0x27d   : > { %v2226_v61 = vadd.f32 %v2170_v52, %v2086_v53  ;;  %v1876_v24 = vpop.f32.mrf.mxu2 }
 0x27e   : > { %v1931_v1 = vadd.f32 %v1876_v24, %v1797_v42 }
 0x27f   : > { %2258 = vst [vmem:[%s2781_s19 + $0x80] sm:$0xff] %v2226_v61  ;;  %v2290_v40 = vadd.f32 %v2289_v49, %v2226_v61  ;;  %v2331_v25 = vmul.f32 %v2226_v61, %v2226_v61 }
 0x281   : > { %v2362_v3 = vadd.f32 %v2361_v15, %v2331_v25  ;;  %v2172_v14 = vpop.f32.mrf.mxu0 }
 0x282   : > { %v2032_v23 = vpop.f32.mrf.mxu3 }
 0x283   : > { %v1747_v27 = vpop.f32.mrf.mxu1  ;;  %v2087_v22 = vadd.f32 %v2032_v23, %v1931_v1 }
 0x284   : > { %v1799_v48 = vadd.f32 %v1747_v27, %v3629_v33 }
 0x285   : > { %v2227_v10 = vadd.f32 %v2172_v14, %v2087_v22  ;;  %v1879_v19 = vpop.f32.mrf.mxu2 }
 0x286   : > { %v1932_v39 = vadd.f32 %v1879_v19, %v1798_v4 }
 0x287   : > { %2259 = vst [vmem:[%s2781_s19 + $0x88] sm:$0xff] %v2227_v10  ;;  %v2291_v34 = vadd.f32 %v2290_v40, %v2227_v10  ;;  %v2332_v47 = vmul.f32 %v2227_v10, %v2227_v10 }
 0x289   : > { %v2363_v9 = vadd.f32 %v2362_v3, %v2332_v47  ;;  %v2175_v43 = vpop.f32.mrf.mxu0 }
 0x28a   : > { %v2035_v51 = vpop.f32.mrf.mxu3 }
 0x28b   : > { %v1750_v21 = vpop.f32.mrf.mxu1  ;;  %v2088_v16 = vadd.f32 %v2035_v51, %v1932_v39 }
 0x28c   : > { %v1800_v35 = vadd.f32 %v1750_v21, %v3638_v60 }
 0x28d   : > { %v2228_v37 = vadd.f32 %v2175_v43, %v2088_v16  ;;  %v1881_v46 = vpop.f32.mrf.mxu2 }
 0x28e   : > { %v1933_v18 = vadd.f32 %v1881_v46, %v1799_v48 }
 0x28f   : > { %2260 = vst [vmem:[%s2781_s19 + $0x90] sm:$0xff] %v2228_v37  ;;  %v2292_v11 = vadd.f32 %v2291_v34, %v2228_v37  ;;  %v2333_v58 = vmul.f32 %v2228_v37, %v2228_v37 }
 0x291   : > { %v2364_v54 = vadd.f32 %v2363_v9, %v2333_v58  ;;  %v2177_v31 = vpop.f32.mrf.mxu0 }
 0x292   : > { %v2037_v36 = vpop.f32.mrf.mxu3 }
 0x293   : > { %v1752_v41 = vpop.f32.mrf.mxu1  ;;  %v2089_v0 = vadd.f32 %v2037_v36, %v1933_v18 }
 0x294   : > { %v1801_v57 = vadd.f32 %v1752_v41, %v3643_v56 }
 0x295   : > { %v2229_v62 = vadd.f32 %v2177_v31, %v2089_v0  ;;  %v1884_v12 = vpop.f32.mrf.mxu2 }
 0x296   : > { %v1934_v20 = vadd.f32 %v1884_v12, %v1800_v35 }
 0x297   : > { %2261 = vst [vmem:[%s2781_s19 + $0x98] sm:$0xff] %v2229_v62  ;;  %v2293_v8 = vadd.f32 %v2292_v11, %v2229_v62  ;;  %v2334_v5 = vmul.f32 %v2229_v62, %v2229_v62 }
 0x299   : > { %v2365_v33 = vadd.f32 %v2364_v54, %v2334_v5  ;;  %v2180_v7 = vpop.f32.mrf.mxu0 }
 0x29a   : > { %v2040_v2 = vpop.f32.mrf.mxu3 }
 0x29b   : > { %v1755_v6 = vpop.f32.mrf.mxu1  ;;  %v2090_v32 = vadd.f32 %v2040_v2, %v1934_v20 }
 0x29c   : > { %v1802_v40 = vadd.f32 %v1755_v6, %v3652_v63 }
 0x29d   : > { %v2230_v49 = vadd.f32 %v2180_v7, %v2090_v32  ;;  %v1886_v13 = vpop.f32.mrf.mxu2 }
 0x29e   : > { %v1935_v28 = vadd.f32 %v1886_v13, %v1801_v57 }
 0x29f   : > { %2262 = vst [vmem:[%s2781_s19 + $0xa0] sm:$0xff] %v2230_v49  ;;  %v2294_v15 = vadd.f32 %v2293_v8, %v2230_v49  ;;  %v2335_v52 = vmul.f32 %v2230_v49, %v2230_v49 }
 0x2a1   : > { %v2366_v60 = vadd.f32 %v2365_v33, %v2335_v52  ;;  %v2182_v55 = vpop.f32.mrf.mxu0 }
 0x2a2   : > { %v2042_v53 = vpop.f32.mrf.mxu3 }
 0x2a3   : > { %v1757_v61 = vpop.f32.mrf.mxu1  ;;  %v2091_v42 = vadd.f32 %v2042_v53, %v1935_v28 }
 0x2a4   : > { %v1803_v19 = vadd.f32 %v1757_v61, %v3657_v44 }
 0x2a5   : > { %v2231_v24 = vadd.f32 %v2182_v55, %v2091_v42  ;;  %v1889_v25 = vpop.f32.mrf.mxu2 }
 0x2a6   : > { %v1936_v14 = vadd.f32 %v1889_v25, %v1802_v40 }
 0x2a7   : > { %2263 = vst [vmem:[%s2781_s19 + $0xa8] sm:$0xff] %v2231_v24  ;;  %v2295_v1 = vadd.f32 %v2294_v15, %v2231_v24  ;;  %v2336_v3 = vmul.f32 %v2231_v24, %v2231_v24 }
 0x2a9   : > { %v2367_v56 = vadd.f32 %v2366_v60, %v2336_v3  ;;  %v2185_v23 = vpop.f32.mrf.mxu0 }
 0x2aa   : > { %v2045_v27 = vpop.f32.mrf.mxu3 }
 0x2ab   : > { %v1760_v22 = vpop.f32.mrf.mxu1  ;;  %v2092_v10 = vadd.f32 %v2045_v27, %v1936_v14 }
 0x2ac   : > { %v1804_v48 = vadd.f32 %v1760_v22, %v3666_v59 }
 0x2ad   : > { %v2232_v4 = vadd.f32 %v2185_v23, %v2092_v10  ;;  %v1891_v34 = vpop.f32.mrf.mxu2 }
 0x2ae   : > { %v1937_v9 = vadd.f32 %v1891_v34, %v1803_v19 }
 0x2af   : > { %2264 = vst [vmem:[%s2781_s19 + $0xb0] sm:$0xff] %v2232_v4  ;;  %v2296_v47 = vadd.f32 %v2295_v1, %v2232_v4  ;;  %v2337_v39 = vmul.f32 %v2232_v4, %v2232_v4 }
 0x2b1   : > { %v2368_v63 = vadd.f32 %v2367_v56, %v2337_v39  ;;  %v2187_v43 = vpop.f32.mrf.mxu0 }
 0x2b2   : > { %v2047_v51 = vpop.f32.mrf.mxu3 }
 0x2b3   : > { %v1762_v21 = vpop.f32.mrf.mxu1  ;;  %v2093_v16 = vadd.f32 %v2047_v51, %v1937_v9 }
 0x2b4   : > { %v1805_v62 = vadd.f32 %v1762_v21, %v3671_v26 }
 0x2b5   : > { %v2233_v37 = vadd.f32 %v2187_v43, %v2093_v16  ;;  %v1894_v46 = vpop.f32.mrf.mxu2 }
 0x2b6   : > { %v1938_v18 = vadd.f32 %v1894_v46, %v1804_v48 }
 0x2b7   : > { %2265 = vst [vmem:[%s2781_s19 + $0xb8] sm:$0xff] %v2233_v37  ;;  %v2297_v11 = vadd.f32 %v2296_v47, %v2233_v37  ;;  %v2338_v58 = vmul.f32 %v2233_v37, %v2233_v37 }
 0x2b9   : > { %v2369_v44 = vadd.f32 %v2368_v63, %v2338_v58  ;;  %v2190_v54 = vpop.f32.mrf.mxu0 }
 0x2ba   : > { %v2050_v31 = vpop.f32.mrf.mxu3 }
 0x2bb   : > { %v1765_v36 = vpop.f32.mrf.mxu1  ;;  %v2094_v41 = vadd.f32 %v2050_v31, %v1938_v18 }
 0x2bc   : > { %v1806_v32 = vadd.f32 %v1765_v36, %v3680_v29 }
 0x2bd   : > { %v2234_v0 = vadd.f32 %v2190_v54, %v2094_v41  ;;  %v1896_v35 = vpop.f32.mrf.mxu2 }
 0x2be   : > { %v1939_v5 = vadd.f32 %v1896_v35, %v1805_v62 }
 0x2bf   : > { %2266 = vst [vmem:[%s2781_s19 + $0xc0] sm:$0xff] %v2234_v0  ;;  %v2298_v12 = vadd.f32 %v2297_v11, %v2234_v0  ;;  %v2339_v8 = vmul.f32 %v2234_v0, %v2234_v0 }
 0x2c1   : > { %v2370_v59 = vadd.f32 %v2369_v44, %v2339_v8  ;;  %v2192_v20 = vpop.f32.mrf.mxu0 }
 0x2c2   : > { %v2052_v33 = vpop.f32.mrf.mxu3 }
 0x2c3   : > { %v1767_v7 = vpop.f32.mrf.mxu1  ;;  %v2095_v2 = vadd.f32 %v2052_v33, %v1939_v5 }
 0x2c4   : > { %v1807_v61 = vadd.f32 %v1767_v7, %v3685_v38 }
 0x2c5   : > { %v2235_v6 = vadd.f32 %v2192_v20, %v2095_v2  ;;  %v1899_v49 = vpop.f32.mrf.mxu2 }
 0x2c6   : > { %v1940_v15 = vadd.f32 %v1899_v49, %v1806_v32 }
 0x2c7   : > { %2267 = vst [vmem:[%s2781_s19 + $0xc8] sm:$0xff] %v2235_v6  ;;  %v2299_v57 = vadd.f32 %v2298_v12, %v2235_v6  ;;  %v2340_v13 = vmul.f32 %v2235_v6, %v2235_v6 }
 0x2c9   : > { %v2371_v26 = vadd.f32 %v2370_v59, %v2340_v13  ;;  %v2195_v52 = vpop.f32.mrf.mxu0 }
 0x2ca   : > { %v2055_v28 = vpop.f32.mrf.mxu3 }
 0x2cb   : > { %v2096_v60 = vadd.f32 %v2055_v28, %v1940_v15  ;;  %v1770_v55 = vpop.f32.mrf.mxu1 }
 0x2cc   : > { %v1808_v23 = vadd.f32 %v1770_v55, %v3694_v45 }
 0x2cd   : > { %v2236_v53 = vadd.f32 %v2195_v52, %v2096_v60  ;;  %v1901_v42 = vpop.f32.mrf.mxu2 }
 0x2ce   : > { %v1941_v25 = vadd.f32 %v1901_v42, %v1807_v61  ;;  %v2274_v42 = vld [vmem:[%s3880_s3] sm:$0x1] }
 0x2cf   : > { %2268 = vst [vmem:[%s2781_s19 + $0xd0] sm:$0xff] %v2236_v53  ;;  %v2300_v24 = vadd.f32 %v2299_v57, %v2236_v53  ;;  %v2341_v40 = vmul.f32 %v2236_v53, %v2236_v53 }
 0x2d1   : > { %v2372_v29 = vadd.f32 %v2371_v26, %v2341_v40  ;;  %v2197_v1 = vpop.f32.mrf.mxu0 }
 0x2d2   : > { %v2057_v3 = vpop.f32.mrf.mxu3 }
 0x2d3   : > { %v2097_v14 = vadd.f32 %v2057_v3, %v1941_v25  ;;  %v1772_v22 = vpop.f32.mrf.mxu1  ;;  %v2314_v25 = vld [vmem:[%s3880_s3 + $0x1] sm:$0x1] }
 0x2d4   : > { %v1809_v63 = vadd.f32 %v1772_v22, %v3699_v30 }
 0x2d5   : > { %v2237_v56 = vadd.f32 %v2197_v1, %v2097_v14  ;;  %v1904_v27 = vpop.f32.mrf.mxu2 }
 0x2d6   : > { %v1942_v19 = vadd.f32 %v1904_v27, %v1808_v23 }
 0x2d7   : > { %2269 = vst [vmem:[%s2781_s19 + $0xd8] sm:$0xff] %v2237_v56  ;;  %v2301_v10 = vadd.f32 %v2300_v24, %v2237_v56  ;;  %v2342_v4 = vmul.f32 %v2237_v56, %v2237_v56 }
 0x2d9   : > { %v2373_v38 = vadd.f32 %v2372_v29, %v2342_v4  ;;  %v2200_v34 = vpop.f32.mrf.mxu0 }
 0x2da   : > { %v2060_v47 = vpop.f32.mrf.mxu3 }
 0x2db   : > { %v2098_v39 = vadd.f32 %v2060_v47, %v1942_v19  ;;  %v1775_v45 = vpop.f32.mrf.mxu1 }
 0x2dc   : > { %v1810_v18 = vadd.f32 %v1775_v45, %v3708_v50 }
 0x2dd   : > { %v2238_v9 = vadd.f32 %v2200_v34, %v2098_v39  ;;  %v1906_v43 = vpop.f32.mrf.mxu2 }
 0x2de   : > { %v1943_v16 = vadd.f32 %v1906_v43, %v1809_v63 }
 0x2df   : > { %2270 = vst [vmem:[%s2781_s19 + $0xe0] sm:$0xff] %v2238_v9  ;;  %v2302_v51 = vadd.f32 %v2301_v10, %v2238_v9  ;;  %v2343_v21 = vmul.f32 %v2238_v9, %v2238_v9 }
 0x2e1   : > { %v2374_v37 = vadd.f32 %v2373_v38, %v2343_v21  ;;  %v2202_v48 = vpop.f32.mrf.mxu0 }
 0x2e2   : > { %v2062_v46 = vpop.f32.mrf.mxu3 }
 0x2e3   : > { %v2099_v11 = vadd.f32 %v2062_v46, %v1943_v16  ;;  %v1777_v41 = vpop.f32.mrf.mxu1 }
 0x2e4   : > { %v1811_v8 = vadd.f32 %v1777_v41, %v3713_v17 }
 0x2e5   : > { %v2239_v58 = vadd.f32 %v2202_v48, %v2099_v11  ;;  %v1909_v44 = vpop.f32.mrf.mxu2 }
 0x2e6   : > { %v1944_v36 = vadd.f32 %v1909_v44, %v1810_v18 }
 0x2e7   : > { %2271 = vst [vmem:[%s2781_s19 + $0xe8] sm:$0xff] %v2239_v58  ;;  %v2303_v54 = vadd.f32 %v2302_v51, %v2239_v58  ;;  %v2344_v31 = vmul.f32 %v2239_v58, %v2239_v58 }
 0x2e9   : > { %v2375_v30 = vadd.f32 %v2374_v37, %v2344_v31  ;;  %v2205_v0 = vpop.f32.mrf.mxu0 }
 0x2ea   : > { %v2065_v62 = vpop.f32.mrf.mxu3 }
 0x2eb   : > { %v2100_v35 = vadd.f32 %v2065_v62, %v1944_v36 }
 0x2ed   : > { %v2240_v12 = vadd.f32 %v2205_v0, %v2100_v35  ;;  %v1911_v5 = vpop.f32.mrf.mxu2 }
 0x2ee   : > { %v1945_v33 = vadd.f32 %v1911_v5, %v1811_v8 }
 0x2ef   : > { %2272 = vst [vmem:[%s2781_s19 + $0xf0] sm:$0xff] %v2240_v12  ;;  %v2304_v59 = vadd.f32 %v2303_v54, %v2240_v12  ;;  %v2345_v20 = vmul.f32 %v2240_v12, %v2240_v12 }
 0x2f1   : > { %v2376_v50 = vadd.f32 %v2375_v30, %v2345_v20  ;;  %v2207_v6 = vpop.f32.mrf.mxu0 }
 0x2f2   : > { %v2067_v7 = vpop.f32.mrf.mxu3 }
 0x2f3   : > { %v2101_v2 = vadd.f32 %v2067_v7, %v1945_v33 }
 0x2f5   : > { %v2241_v32 = vadd.f32 %v2207_v6, %v2101_v2 }
 0x2f7   : > { %2273 = vst [vmem:[%s2781_s19 + $0xf8] sm:$0xff] %v2241_v32  ;;  %v2305_v49 = vadd.f32 %v2304_v59, %v2241_v32  ;;  %v2346_v57 = vmul.f32 %v2241_v32, %v2241_v32 }
 0x2f9   : > { %v2306_v13 = vrot.slane %v2305_v49, 4  ;;  %v2377_v15 = vadd.f32 %v2376_v50, %v2346_v57 }
 0x2fb   : > { %v2307_v26 = vadd.f32 %v2306_v13, %v2305_v49  ;;  %v2378_v52 = vrot.slane %v2377_v15, 4 }
 0x2fd   : > { %v2308_v28 = vrot.slane %v2307_v26, 2  ;;  %v2379_v60 = vadd.f32 %v2378_v52, %v2377_v15 }
 0x2ff   : > { %v2309_v17 = vadd.f32 %v2308_v28, %v2307_v26  ;;  %v2380_v55 = vrot.slane %v2379_v60, 2 }
 0x301   : > { %v2310_v53 = vrot.slane %v2309_v17, 1  ;;  %v2381_v61 = vadd.f32 %v2380_v55, %v2379_v60 }
 0x303   : > { %v2311_v24 = vadd.f32 %v2310_v53, %v2309_v17  ;;  %v2382_v40 = vrot.slane %v2381_v61, 1 }
 0x305   : > { %v2312_v29 = vadd.f32 %v2311_v24, %v2274_v42  ;;  %v2383_v1 = vadd.f32 %v2382_v40, %v2381_v61 }
 0x307   : > { %2313 = vst [vmem:[%s3880_s3] sm:$0x1] %v2312_v29  ;;  %v2384_v3 = vadd.f32 %v2383_v1, %v2314_v25 }
 0x309   : > { %2385 = vst [vmem:[%s3880_s3 + $0x1] sm:$0x1] %v2384_v3 }
 0x30a PF: > { %s14_s12 = sadd.s32 1, %s2747_s12  }
 0x30b   : > { %p11_p5 = scmp.ge.s32.totalorder %s14_s12, 4  }
 0x30d   :  { %13 = sbr.rel (!%p11_p5) target bundleno = 1 (0x1), region = 78 }

</bundles_post_ra>
